<compile_context>
chip_gen: v7x
topology: tpu7x:2x2x1
jax: 0.10.0
libtpu: 0.0.40
codegen_flags: <defaults>
</compile_context>

<pallas_src>
from functools import partial

import jax
import jax.numpy as jnp
from jax.experimental import pallas as pl
from jax.experimental.pallas import tpu as pltpu


# ---------------------------------------------------------------------------
# In-kernel helpers
# ---------------------------------------------------------------------------
def _zero_halo(pad_ref):
    """Zero only the 1-px halo border of the padded activation scratch.

    The interior is fully overwritten every grid step, so a full-tile memset
    is unnecessary.  Done every step (not @ program_id==0) so it stays correct
    when the batch axis is sharded across TensorCores ("parallel").
    """
    Hp, Wp, C = pad_ref.shape
    dt = pad_ref.dtype
    pad_ref[0:1, :, :] = jnp.zeros((1, Wp, C), dt)
    pad_ref[Hp - 1:Hp, :, :] = jnp.zeros((1, Wp, C), dt)
    pad_ref[:, 0:1, :] = jnp.zeros((Hp, 1, C), dt)
    pad_ref[:, Wp - 1:Wp, :] = jnp.zeros((Hp, 1, C), dt)


def _conv3x3_im2col(pad_ref, col_ref, w_ref, b_ref, Ho, Wo):
    """3x3 'same' conv as ONE MXU matmul (bf16 operands, f32 accumulation).

    The 9 shifted windows of the zero-halo'd bf16 tile are written once into
    a bf16 im2col scratch (Ho*Wo, 9*C); a single dot with K = 9*C replaces the
    previous 9 tiny-K dots and their 8 full-tile f32 accumulates.
    """
    C = pad_ref.shape[-1]
    for dy in range(3):
        for dx in range(3):
            t = dy * 3 + dx
            col_ref[:, t * C:(t + 1) * C] = (
                pad_ref[dy:dy + Ho, dx:dx + Wo, :].reshape(Ho * Wo, C))
    y = jnp.dot(col_ref[...], w_ref[...], preferred_element_type=jnp.float32)
    return y + b_ref[...]                                   # (Ho*Wo, Cout) f32


def _instance_norm_relu(y, normalize, eps):
    """InstanceNorm2d (affine=False, biased variance) + ReLU, f32 epilogue."""
    if normalize:
        inv_n = 1.0 / float(y.shape[0])
        mean = jnp.sum(y, axis=0, keepdims=True) * inv_n
        centered = y - mean
        var = jnp.sum(centered * centered, axis=0, keepdims=True) * inv_n
        y = centered * jax.lax.rsqrt(var + eps)
    return jnp.maximum(y, 0.0)


# ---------------------------------------------------------------------------
# Fused kernel: maxpool(2) -> conv1 -> [IN] -> ReLU -> conv2 -> [IN] -> ReLU
# One grid step == one batch instance; everything stays in VMEM.
# ---------------------------------------------------------------------------
def _down_kernel(x_ref, w1_ref, b1_ref, w2_ref, b2_ref, o_ref,
                 pad1_ref, col1_ref, pad2_ref, col2_ref, *, normalize, eps):
    # x_ref : (1, Ho, 2, Wo, 2*Cin) f32 — free NHWC reshape; the 2x2 pooling
    #         window lives on axis 2 (row pair) and on two Cin-wide lane
    #         groups of the last axis (column pair).
    # w*_ref: (9*C, Cout) bf16     b*_ref: (1, Cout) f32
    # o_ref : (1, Ho, Wo, Cout)
    # pad*  : (Ho+2, Wo+2, C) bf16 scratch   col*: (Ho*Wo, 9*C) bf16 scratch
    Ho, Wo, Cout = o_ref.shape[1], o_ref.shape[2], o_ref.shape[3]
    Cin = pad1_ref.shape[-1]

    # --- 2x2 max pool, fully in-kernel (no wrapper-side window gather) ------
    xq = x_ref[0]                                        # (Ho, 2, Wo, 2*Cin)
    xw = jnp.maximum(xq[..., :Cin], xq[..., Cin:])       # max over W pair
    pooled = jnp.maximum(xw[:, 0], xw[:, 1])             # max over H pair -> (Ho, Wo, Cin)

    # --- conv1 + IN + ReLU ---------------------------------------------------
    _zero_halo(pad1_ref)
    pad1_ref[1:Ho + 1, 1:Wo + 1, :] = pooled.astype(pad1_ref.dtype)   # single bf16 cast
    y1 = _conv3x3_im2col(pad1_ref, col1_ref, w1_ref, b1_ref, Ho, Wo)
    y1 = _instance_norm_relu(y1, normalize, eps)

    # --- conv2 + IN + ReLU (conv1 output never leaves VMEM) ------------------
    _zero_halo(pad2_ref)
    pad2_ref[1:Ho + 1, 1:Wo + 1, :] = y1.reshape(Ho, Wo, Cout).astype(pad2_ref.dtype)
    y2 = _conv3x3_im2col(pad2_ref, col2_ref, w2_ref, b2_ref, Ho, Wo)
    y2 = _instance_norm_relu(y2, normalize, eps)

    o_ref[0] = y2.reshape(Ho, Wo, Cout).astype(o_ref.dtype)


# ---------------------------------------------------------------------------
# Parameters (HWIO conv weights; cross-correlation taps like PyTorch)
# ---------------------------------------------------------------------------
def init_down_params(key, in_channels, out_channels):
    k1, k2, k3, k4 = jax.random.split(key, 4)
    s1 = (1.0 / (9 * in_channels)) ** 0.5
    s2 = (1.0 / (9 * out_channels)) ** 0.5
    return {
        "w1": jax.random.normal(k1, (3, 3, in_channels, out_channels), jnp.float32) * s1,
        "b1": jax.random.normal(k2, (out_channels,), jnp.float32) * 0.01,
        "w2": jax.random.normal(k3, (3, 3, out_channels, out_channels), jnp.float32) * s2,
        "b2": jax.random.normal(k4, (out_channels,), jnp.float32) * 0.01,
    }


# ---------------------------------------------------------------------------
# Down forward: equivalent of Down(in_ch, out_ch, is_normalize) on NCHW input.
# ---------------------------------------------------------------------------
@partial(jax.jit, static_argnames=("is_normalize",))
def down_forward(x_nchw, params, *, is_normalize=True):
    x = jnp.transpose(x_nchw, (0, 2, 3, 1))                 # NCHW -> NHWC (boundary only)
    N, H, W, Cin = x.shape
    Ho, Wo = H // 2, W // 2
    Cout = params["w1"].shape[-1]

    # PyTorch MaxPool2d(2) floors odd sizes -> crop to even extent.
    x = x[:, :2 * Ho, :2 * Wo, :]
    # FREE (layout-preserving) reshape: puts the 2x2 pool pairs on a tiny axis
    # and on two Cin-wide lane groups.  No extra HBM copy (unlike the previous
    # 6-D window-gather transpose) — the max happens inside the kernel.
    x5 = x.reshape(N, Ho, 2, Wo, 2 * Cin)

    # bf16 MXU operands; biases stay f32 (added after f32 accumulation).
    w1 = params["w1"].astype(jnp.bfloat16).reshape(9 * Cin, Cout)
    w2 = params["w2"].astype(jnp.bfloat16).reshape(9 * Cout, Cout)
    b1 = params["b1"].astype(jnp.float32).reshape(1, Cout)
    b2 = params["b2"].astype(jnp.float32).reshape(1, Cout)

    kern = partial(_down_kernel, normalize=is_normalize, eps=1e-5)
    out = pl.pallas_call(
        kern,
        out_shape=jax.ShapeDtypeStruct((N, Ho, Wo, Cout), x.dtype),
        grid=(N,),
        in_specs=[
            pl.BlockSpec((1, Ho, 2, Wo, 2 * Cin), lambda n: (n, 0, 0, 0, 0)),
            pl.BlockSpec((9 * Cin, Cout), lambda n: (0, 0)),
            pl.BlockSpec((1, Cout), lambda n: (0, 0)),
            pl.BlockSpec((9 * Cout, Cout), lambda n: (0, 0)),
            pl.BlockSpec((1, Cout), lambda n: (0, 0)),
        ],
        out_specs=pl.BlockSpec((1, Ho, Wo, Cout), lambda n: (n, 0, 0, 0)),
        scratch_shapes=[
            pltpu.VMEM((Ho + 2, Wo + 2, Cin), jnp.bfloat16),   # conv1 padded acts
            pltpu.VMEM((Ho * Wo, 9 * Cin), jnp.bfloat16),      # conv1 im2col
            pltpu.VMEM((Ho + 2, Wo + 2, Cout), jnp.bfloat16),  # conv2 padded acts
            pltpu.VMEM((Ho * Wo, 9 * Cout), jnp.bfloat16),     # conv2 im2col
        ],
        compiler_params=pltpu.CompilerParams(
            dimension_semantics=("parallel",),
            vmem_limit_bytes=32 * 1024 * 1024,
        ),
    )(x5, w1, b1, w2, b2)

    return jnp.transpose(out, (0, 3, 1, 2))                  # NHWC -> NCHW


# ---------------------------------------------------------------------------
# Pure-JAX reference (f32) for a tolerance check (bf16 MXU => not bit-exact).
# ---------------------------------------------------------------------------
def _down_reference(x_nchw, params, *, is_normalize=True):
    x = jnp.transpose(x_nchw, (0, 2, 3, 1))
    N, H, W, Cin = x.shape
    Ho, Wo = H // 2, W // 2
    x = x[:, :2 * Ho, :2 * Wo, :]
    pooled = jnp.max(x.reshape(N, Ho, 2, Wo, 2, Cin), axis=(2, 4))

    def conv_in_relu(h, w, b):
        y = jax.lax.conv_general_dilated(
            h, w, window_strides=(1, 1), padding=((1, 1), (1, 1)),
            dimension_numbers=("NHWC", "HWIO", "NHWC"))
        y = y + b
        if is_normalize:
            mean = jnp.mean(y, axis=(1, 2), keepdims=True)
            var = jnp.mean((y - mean) ** 2, axis=(1, 2), keepdims=True)
            y = (y - mean) * jax.lax.rsqrt(var + 1e-5)
        return jnp.maximum(y, 0.0)

    y = conv_in_relu(pooled, params["w1"], params["b1"])
    y = conv_in_relu(y, params["w2"], params["b2"])
    return jnp.transpose(y, (0, 3, 1, 2))


if __name__ == "__main__":
    key = jax.random.PRNGKey(0)
    kx, kp = jax.random.split(key)

    N, C_in, H, W = 2, 4, 16, 16
    C_out = 8
    x = jax.random.normal(kx, (N, C_in, H, W), jnp.float32)  # NCHW like PyTorch
    params = init_down_params(kp, C_in, C_out)

    for is_norm in (True, False):
        y = down_forward(x, params, is_normalize=is_norm)
        y = jax.block_until_ready(y)
        assert y.shape == (N, C_out, H // 2, W // 2), y.shape
        assert bool(jnp.all(jnp.isfinite(y)))
        y_ref = _down_reference(x, params, is_normalize=is_norm)
        err = float(jnp.max(jnp.abs(y - y_ref)))
        # bf16 MXU operands -> expect ~1e-3 absolute deviation; 5e-2 is ample.
        assert err < 5e-2, f"max |pallas - ref| = {err} (is_normalize={is_norm})"

    print("KERNEL_OK")
</pallas_src>

<mosaic_0001>
module attributes {stable_mosaic.version = 11 : i64} {
  func.func @_down_kernel(%arg0: i32, %arg1: memref<1x8x2x8x8xf32, #tpu.memory_space<vmem>>, %arg2: memref<36x8xbf16, #tpu.memory_space<vmem>>, %arg3: memref<1x8xf32, #tpu.memory_space<vmem>>, %arg4: memref<72x8xbf16, #tpu.memory_space<vmem>>, %arg5: memref<1x8xf32, #tpu.memory_space<vmem>>, %arg6: memref<1x8x8x8xf32, #tpu.memory_space<vmem>>, %arg7: memref<10x10x4xbf16, #tpu.memory_space<vmem>>, %arg8: memref<64x36xbf16, #tpu.memory_space<vmem>>, %arg9: memref<10x10x8xbf16, #tpu.memory_space<vmem>>, %arg10: memref<64x72xbf16, #tpu.memory_space<vmem>>) attributes {dimension_semantics = [#tpu.dimension_semantics<parallel>], iteration_bounds = array<i64: 2>, scalar_prefetch = 0 : i64, scratch_operands = 4 : i64, tpu.core_type = #tpu.core_type<tc>, window_params = [{transform_indices = @transform_0, window_bounds = array<i64: 1, 8, 2, 8, 8>}, {pipeline_mode = #tpu.pipeline_mode<synchronous>, transform_indices = @transform_1, window_bounds = array<i64: 36, 8>}, {pipeline_mode = #tpu.pipeline_mode<synchronous>, transform_indices = @transform_2, window_bounds = array<i64: 1, 8>}, {pipeline_mode = #tpu.pipeline_mode<synchronous>, transform_indices = @transform_3, window_bounds = array<i64: 72, 8>}, {pipeline_mode = #tpu.pipeline_mode<synchronous>, transform_indices = @transform_4, window_bounds = array<i64: 1, 8>}, {transform_indices = @transform_5, window_bounds = array<i64: 1, 8, 8, 8>}]} {
    %c0 = arith.constant 0 : index
    %c0_0 = arith.constant 0 : index
    %c0_1 = arith.constant 0 : index
    %c0_2 = arith.constant 0 : index
    %c0_3 = arith.constant 0 : index
    %0 = vector.load %arg1[%c0, %c0_0, %c0_1, %c0_2, %c0_3] : memref<1x8x2x8x8xf32, #tpu.memory_space<vmem>>, vector<1x8x2x8x8xf32>
    %1 = vector.shape_cast %0 : vector<1x8x2x8x8xf32> to vector<8x2x8x8xf32>
    %2 = vector.extract_strided_slice %1 {offsets = [0, 0, 0, 0], sizes = [8, 2, 8, 4], strides = [1, 1, 1, 1]} : vector<8x2x8x8xf32> to vector<8x2x8x4xf32>
    %3 = vector.extract_strided_slice %1 {offsets = [0, 0, 0, 4], sizes = [8, 2, 8, 4], strides = [1, 1, 1, 1]} : vector<8x2x8x8xf32> to vector<8x2x8x4xf32>
    %4 = arith.maximumf %2, %3 : vector<8x2x8x4xf32>
    %5 = vector.extract_strided_slice %4 {offsets = [0, 0, 0, 0], sizes = [8, 1, 8, 4], strides = [1, 1, 1, 1]} : vector<8x2x8x4xf32> to vector<8x1x8x4xf32>
    %6 = vector.shape_cast %5 : vector<8x1x8x4xf32> to vector<8x8x4xf32>
    %7 = vector.extract_strided_slice %4 {offsets = [0, 1, 0, 0], sizes = [8, 1, 8, 4], strides = [1, 1, 1, 1]} : vector<8x2x8x4xf32> to vector<8x1x8x4xf32>
    %8 = vector.shape_cast %7 : vector<8x1x8x4xf32> to vector<8x8x4xf32>
    %9 = arith.maximumf %6, %8 : vector<8x8x4xf32>
    %cst = arith.constant 0.000000e+00 : bf16
    %10 = vector.broadcast %cst : bf16 to vector<1x10x4xbf16>
    %c0_4 = arith.constant 0 : index
    %c0_5 = arith.constant 0 : index
    %c0_6 = arith.constant 0 : index
    %11 = vector.load %arg7[%c0_4, %c0_5, %c0_6] : memref<10x10x4xbf16, #tpu.memory_space<vmem>>, vector<1x10x4xbf16>
    tpu.vector_store %arg7[%c0_4, %c0_5, %c0_6], %10 {strides = array<i32>} : memref<10x10x4xbf16, #tpu.memory_space<vmem>>, vector<1x10x4xbf16>,
    %cst_7 = arith.constant 0.000000e+00 : bf16
    %12 = vector.broadcast %cst_7 : bf16 to vector<1x10x4xbf16>
    %c9 = arith.constant 9 : index
    %c0_8 = arith.constant 0 : index
    %c0_9 = arith.constant 0 : index
    %13 = vector.load %arg7[%c9, %c0_8, %c0_9] : memref<10x10x4xbf16, #tpu.memory_space<vmem>>, vector<1x10x4xbf16>
    tpu.vector_store %arg7[%c9, %c0_8, %c0_9], %12 {strides = array<i32>} : memref<10x10x4xbf16, #tpu.memory_space<vmem>>, vector<1x10x4xbf16>,
    %cst_10 = arith.constant 0.000000e+00 : bf16
    %14 = vector.broadcast %cst_10 : bf16 to vector<10x1x4xbf16>
    %c0_11 = arith.constant 0 : index
    %c0_12 = arith.constant 0 : index
    %c0_13 = arith.constant 0 : index
    %15 = vector.load %arg7[%c0_11, %c0_12, %c0_13] : memref<10x10x4xbf16, #tpu.memory_space<vmem>>, vector<10x1x4xbf16>
    tpu.vector_store %arg7[%c0_11, %c0_12, %c0_13], %14 {strides = array<i32>} : memref<10x10x4xbf16, #tpu.memory_space<vmem>>, vector<10x1x4xbf16>,
    %cst_14 = arith.constant 0.000000e+00 : bf16
    %16 = vector.broadcast %cst_14 : bf16 to vector<10x1x4xbf16>
    %c0_15 = arith.constant 0 : index
    %c9_16 = arith.constant 9 : index
    %c0_17 = arith.constant 0 : index
    %17 = vector.load %arg7[%c0_15, %c9_16, %c0_17] : memref<10x10x4xbf16, #tpu.memory_space<vmem>>, vector<10x1x4xbf16>
    tpu.vector_store %arg7[%c0_15, %c9_16, %c0_17], %16 {strides = array<i32>} : memref<10x10x4xbf16, #tpu.memory_space<vmem>>, vector<10x1x4xbf16>,
    %18 = arith.truncf %9 : vector<8x8x4xf32> to vector<8x8x4xbf16>
    %c1 = arith.constant 1 : index
    %c1_18 = arith.constant 1 : index
    %c0_19 = arith.constant 0 : index
    %19 = vector.load %arg7[%c1, %c1_18, %c0_19] : memref<10x10x4xbf16, #tpu.memory_space<vmem>>, vector<8x8x4xbf16>
    tpu.vector_store %arg7[%c1, %c1_18, %c0_19], %18 {strides = array<i32>} : memref<10x10x4xbf16, #tpu.memory_space<vmem>>, vector<8x8x4xbf16>,
    %c0_20 = arith.constant 0 : index
    %c0_21 = arith.constant 0 : index
    %c0_22 = arith.constant 0 : index
    %20 = vector.load %arg7[%c0_20, %c0_21, %c0_22] : memref<10x10x4xbf16, #tpu.memory_space<vmem>>, vector<8x8x4xbf16>
    %21 = vector.shape_cast %20 : vector<8x8x4xbf16> to vector<64x4xbf16>
    %c0_23 = arith.constant 0 : index
    %c0_24 = arith.constant 0 : index
    %22 = vector.load %arg8[%c0_23, %c0_24] : memref<64x36xbf16, #tpu.memory_space<vmem>>, vector<64x4xbf16>
    tpu.vector_store %arg8[%c0_23, %c0_24], %21 {strides = array<i32>} : memref<64x36xbf16, #tpu.memory_space<vmem>>, vector<64x4xbf16>,
    %c0_25 = arith.constant 0 : index
    %c1_26 = arith.constant 1 : index
    %c0_27 = arith.constant 0 : index
    %23 = vector.load %arg7[%c0_25, %c1_26, %c0_27] : memref<10x10x4xbf16, #tpu.memory_space<vmem>>, vector<8x8x4xbf16>
    %24 = vector.shape_cast %23 : vector<8x8x4xbf16> to vector<64x4xbf16>
    %c0_28 = arith.constant 0 : index
    %c4 = arith.constant 4 : index
    %25 = vector.load %arg8[%c0_28, %c4] : memref<64x36xbf16, #tpu.memory_space<vmem>>, vector<64x4xbf16>
    tpu.vector_store %arg8[%c0_28, %c4], %24 {strides = array<i32>} : memref<64x36xbf16, #tpu.memory_space<vmem>>, vector<64x4xbf16>,
    %c0_29 = arith.constant 0 : index
    %c2 = arith.constant 2 : index
    %c0_30 = arith.constant 0 : index
    %26 = vector.load %arg7[%c0_29, %c2, %c0_30] : memref<10x10x4xbf16, #tpu.memory_space<vmem>>, vector<8x8x4xbf16>
    %27 = vector.shape_cast %26 : vector<8x8x4xbf16> to vector<64x4xbf16>
    %c0_31 = arith.constant 0 : index
    %c8 = arith.constant 8 : index
    %28 = vector.load %arg8[%c0_31, %c8] : memref<64x36xbf16, #tpu.memory_space<vmem>>, vector<64x4xbf16>
    tpu.vector_store %arg8[%c0_31, %c8], %27 {strides = array<i32>} : memref<64x36xbf16, #tpu.memory_space<vmem>>, vector<64x4xbf16>,
    %c1_32 = arith.constant 1 : index
    %c0_33 = arith.constant 0 : index
    %c0_34 = arith.constant 0 : index
    %29 = vector.load %arg7[%c1_32, %c0_33, %c0_34] : memref<10x10x4xbf16, #tpu.memory_space<vmem>>, vector<8x8x4xbf16>
    %30 = vector.shape_cast %29 : vector<8x8x4xbf16> to vector<64x4xbf16>
    %c0_35 = arith.constant 0 : index
    %c12 = arith.constant 12 : index
    %31 = vector.load %arg8[%c0_35, %c12] : memref<64x36xbf16, #tpu.memory_space<vmem>>, vector<64x4xbf16>
    tpu.vector_store %arg8[%c0_35, %c12], %30 {strides = array<i32>} : memref<64x36xbf16, #tpu.memory_space<vmem>>, vector<64x4xbf16>,
    %c1_36 = arith.constant 1 : index
    %c1_37 = arith.constant 1 : index
    %c0_38 = arith.constant 0 : index
    %32 = vector.load %arg7[%c1_36, %c1_37, %c0_38] : memref<10x10x4xbf16, #tpu.memory_space<vmem>>, vector<8x8x4xbf16>
    %33 = vector.shape_cast %32 : vector<8x8x4xbf16> to vector<64x4xbf16>
    %c0_39 = arith.constant 0 : index
    %c16 = arith.constant 16 : index
    %34 = vector.load %arg8[%c0_39, %c16] : memref<64x36xbf16, #tpu.memory_space<vmem>>, vector<64x4xbf16>
    tpu.vector_store %arg8[%c0_39, %c16], %33 {strides = array<i32>} : memref<64x36xbf16, #tpu.memory_space<vmem>>, vector<64x4xbf16>,
    %c1_40 = arith.constant 1 : index
    %c2_41 = arith.constant 2 : index
    %c0_42 = arith.constant 0 : index
    %35 = vector.load %arg7[%c1_40, %c2_41, %c0_42] : memref<10x10x4xbf16, #tpu.memory_space<vmem>>, vector<8x8x4xbf16>
    %36 = vector.shape_cast %35 : vector<8x8x4xbf16> to vector<64x4xbf16>
    %c0_43 = arith.constant 0 : index
    %c20 = arith.constant 20 : index
    %37 = vector.load %arg8[%c0_43, %c20] : memref<64x36xbf16, #tpu.memory_space<vmem>>, vector<64x4xbf16>
    tpu.vector_store %arg8[%c0_43, %c20], %36 {strides = array<i32>} : memref<64x36xbf16, #tpu.memory_space<vmem>>, vector<64x4xbf16>,
    %c2_44 = arith.constant 2 : index
    %c0_45 = arith.constant 0 : index
    %c0_46 = arith.constant 0 : index
    %38 = vector.load %arg7[%c2_44, %c0_45, %c0_46] : memref<10x10x4xbf16, #tpu.memory_space<vmem>>, vector<8x8x4xbf16>
    %39 = vector.shape_cast %38 : vector<8x8x4xbf16> to vector<64x4xbf16>
    %c0_47 = arith.constant 0 : index
    %c24 = arith.constant 24 : index
    %40 = vector.load %arg8[%c0_47, %c24] : memref<64x36xbf16, #tpu.memory_space<vmem>>, vector<64x4xbf16>
    tpu.vector_store %arg8[%c0_47, %c24], %39 {strides = array<i32>} : memref<64x36xbf16, #tpu.memory_space<vmem>>, vector<64x4xbf16>,
    %c2_48 = arith.constant 2 : index
    %c1_49 = arith.constant 1 : index
    %c0_50 = arith.constant 0 : index
    %41 = vector.load %arg7[%c2_48, %c1_49, %c0_50] : memref<10x10x4xbf16, #tpu.memory_space<vmem>>, vector<8x8x4xbf16>
    %42 = vector.shape_cast %41 : vector<8x8x4xbf16> to vector<64x4xbf16>
    %c0_51 = arith.constant 0 : index
    %c28 = arith.constant 28 : index
    %43 = vector.load %arg8[%c0_51, %c28] : memref<64x36xbf16, #tpu.memory_space<vmem>>, vector<64x4xbf16>
    tpu.vector_store %arg8[%c0_51, %c28], %42 {strides = array<i32>} : memref<64x36xbf16, #tpu.memory_space<vmem>>, vector<64x4xbf16>,
    %c2_52 = arith.constant 2 : index
    %c2_53 = arith.constant 2 : index
    %c0_54 = arith.constant 0 : index
    %44 = vector.load %arg7[%c2_52, %c2_53, %c0_54] : memref<10x10x4xbf16, #tpu.memory_space<vmem>>, vector<8x8x4xbf16>
    %45 = vector.shape_cast %44 : vector<8x8x4xbf16> to vector<64x4xbf16>
    %c0_55 = arith.constant 0 : index
    %c32 = arith.constant 32 : index
    %46 = vector.load %arg8[%c0_55, %c32] : memref<64x36xbf16, #tpu.memory_space<vmem>>, vector<64x4xbf16>
    tpu.vector_store %arg8[%c0_55, %c32], %45 {strides = array<i32>} : memref<64x36xbf16, #tpu.memory_space<vmem>>, vector<64x4xbf16>,
    %c0_56 = arith.constant 0 : index
    %c0_57 = arith.constant 0 : index
    %47 = vector.load %arg8[%c0_56, %c0_57] : memref<64x36xbf16, #tpu.memory_space<vmem>>, vector<64x36xbf16>
    %c0_58 = arith.constant 0 : index
    %c0_59 = arith.constant 0 : index
    %48 = vector.load %arg2[%c0_58, %c0_59] : memref<36x8xbf16, #tpu.memory_space<vmem>>, vector<36x8xbf16>
    %cst_60 = arith.constant dense<0.000000e+00> : vector<64x8xf32>
    %49 = tpu.matmul %47, %48, %cst_60 {dimension_numbers = #tpu.dot_dimension_numbers<[1], [0], [0], [1], [0, 0, 1, 1], [], []>} : vector<64x36xbf16>, vector<36x8xbf16>, vector<64x8xf32> -> vector<64x8xf32>
    %c0_61 = arith.constant 0 : index
    %c0_62 = arith.constant 0 : index
    %50 = vector.load %arg3[%c0_61, %c0_62] : memref<1x8xf32, #tpu.memory_space<vmem>>, vector<1x8xf32>
    %51 = vector.broadcast %50 : vector<1x8xf32> to vector<64x8xf32>
    %52 = arith.addf %49, %51 : vector<64x8xf32>
    %cst_63 = arith.constant dense<0.000000e+00> : vector<8xf32>
    %53 = vector.multi_reduction <add>, %52, %cst_63 [0] : vector<64x8xf32> to vector<8xf32>
    %54 = vector.shape_cast %53 : vector<8xf32> to vector<1x8xf32>
    %cst_64 = arith.constant 1.562500e-02 : f32
    %55 = vector.broadcast %cst_64 : f32 to vector<1x8xf32>
    %56 = arith.mulf %54, %55 : vector<1x8xf32>
    %57 = vector.broadcast %56 : vector<1x8xf32> to vector<64x8xf32>
    %58 = arith.subf %52, %57 : vector<64x8xf32>
    %59 = arith.mulf %58, %58 : vector<64x8xf32>
    %cst_65 = arith.constant dense<0.000000e+00> : vector<8xf32>
    %60 = vector.multi_reduction <add>, %59, %cst_65 [0] : vector<64x8xf32> to vector<8xf32>
    %61 = vector.shape_cast %60 : vector<8xf32> to vector<1x8xf32>
    %cst_66 = arith.constant 1.562500e-02 : f32
    %62 = vector.broadcast %cst_66 : f32 to vector<1x8xf32>
    %63 = arith.mulf %61, %62 : vector<1x8xf32>
    %cst_67 = arith.constant 9.99999974E-6 : f32
    %64 = vector.broadcast %cst_67 : f32 to vector<1x8xf32>
    %65 = arith.addf %63, %64 : vector<1x8xf32>
    %66 = math.rsqrt %65 : vector<1x8xf32>
    %67 = vector.broadcast %66 : vector<1x8xf32> to vector<64x8xf32>
    %68 = arith.mulf %58, %67 : vector<64x8xf32>
    %cst_68 = arith.constant 0.000000e+00 : f32
    %69 = vector.broadcast %cst_68 : f32 to vector<64x8xf32>
    %70 = arith.maximumf %68, %69 : vector<64x8xf32>
    %cst_69 = arith.constant 0.000000e+00 : bf16
    %71 = vector.broadcast %cst_69 : bf16 to vector<1x10x8xbf16>
    %c0_70 = arith.constant 0 : index
    %c0_71 = arith.constant 0 : index
    %c0_72 = arith.constant 0 : index
    %72 = vector.load %arg9[%c0_70, %c0_71, %c0_72] : memref<10x10x8xbf16, #tpu.memory_space<vmem>>, vector<1x10x8xbf16>
    tpu.vector_store %arg9[%c0_70, %c0_71, %c0_72], %71 {strides = array<i32>} : memref<10x10x8xbf16, #tpu.memory_space<vmem>>, vector<1x10x8xbf16>,
    %cst_73 = arith.constant 0.000000e+00 : bf16
    %73 = vector.broadcast %cst_73 : bf16 to vector<1x10x8xbf16>
    %c9_74 = arith.constant 9 : index
    %c0_75 = arith.constant 0 : index
    %c0_76 = arith.constant 0 : index
    %74 = vector.load %arg9[%c9_74, %c0_75, %c0_76] : memref<10x10x8xbf16, #tpu.memory_space<vmem>>, vector<1x10x8xbf16>
    tpu.vector_store %arg9[%c9_74, %c0_75, %c0_76], %73 {strides = array<i32>} : memref<10x10x8xbf16, #tpu.memory_space<vmem>>, vector<1x10x8xbf16>,
    %cst_77 = arith.constant 0.000000e+00 : bf16
    %75 = vector.broadcast %cst_77 : bf16 to vector<10x1x8xbf16>
    %c0_78 = arith.constant 0 : index
    %c0_79 = arith.constant 0 : index
    %c0_80 = arith.constant 0 : index
    %76 = vector.load %arg9[%c0_78, %c0_79, %c0_80] : memref<10x10x8xbf16, #tpu.memory_space<vmem>>, vector<10x1x8xbf16>
    tpu.vector_store %arg9[%c0_78, %c0_79, %c0_80], %75 {strides = array<i32>} : memref<10x10x8xbf16, #tpu.memory_space<vmem>>, vector<10x1x8xbf16>,
    %cst_81 = arith.constant 0.000000e+00 : bf16
    %77 = vector.broadcast %cst_81 : bf16 to vector<10x1x8xbf16>
    %c0_82 = arith.constant 0 : index
    %c9_83 = arith.constant 9 : index
    %c0_84 = arith.constant 0 : index
    %78 = vector.load %arg9[%c0_82, %c9_83, %c0_84] : memref<10x10x8xbf16, #tpu.memory_space<vmem>>, vector<10x1x8xbf16>
    tpu.vector_store %arg9[%c0_82, %c9_83, %c0_84], %77 {strides = array<i32>} : memref<10x10x8xbf16, #tpu.memory_space<vmem>>, vector<10x1x8xbf16>,
    %79 = vector.shape_cast %70 : vector<64x8xf32> to vector<8x8x8xf32>
    %80 = arith.truncf %79 : vector<8x8x8xf32> to vector<8x8x8xbf16>
    %c1_85 = arith.constant 1 : index
    %c1_86 = arith.constant 1 : index
    %c0_87 = arith.constant 0 : index
    %81 = vector.load %arg9[%c1_85, %c1_86, %c0_87] : memref<10x10x8xbf16, #tpu.memory_space<vmem>>, vector<8x8x8xbf16>
    tpu.vector_store %arg9[%c1_85, %c1_86, %c0_87], %80 {strides = array<i32>} : memref<10x10x8xbf16, #tpu.memory_space<vmem>>, vector<8x8x8xbf16>,
    %c0_88 = arith.constant 0 : index
    %c0_89 = arith.constant 0 : index
    %c0_90 = arith.constant 0 : index
    %82 = vector.load %arg9[%c0_88, %c0_89, %c0_90] : memref<10x10x8xbf16, #tpu.memory_space<vmem>>, vector<8x8x8xbf16>
    %83 = vector.shape_cast %82 : vector<8x8x8xbf16> to vector<64x8xbf16>
    %c0_91 = arith.constant 0 : index
    %c0_92 = arith.constant 0 : index
    %84 = vector.load %arg10[%c0_91, %c0_92] : memref<64x72xbf16, #tpu.memory_space<vmem>>, vector<64x8xbf16>
    tpu.vector_store %arg10[%c0_91, %c0_92], %83 {strides = array<i32>} : memref<64x72xbf16, #tpu.memory_space<vmem>>, vector<64x8xbf16>,
    %c0_93 = arith.constant 0 : index
    %c1_94 = arith.constant 1 : index
    %c0_95 = arith.constant 0 : index
    %85 = vector.load %arg9[%c0_93, %c1_94, %c0_95] : memref<10x10x8xbf16, #tpu.memory_space<vmem>>, vector<8x8x8xbf16>
    %86 = vector.shape_cast %85 : vector<8x8x8xbf16> to vector<64x8xbf16>
    %c0_96 = arith.constant 0 : index
    %c8_97 = arith.constant 8 : index
    %87 = vector.load %arg10[%c0_96, %c8_97] : memref<64x72xbf16, #tpu.memory_space<vmem>>, vector<64x8xbf16>
    tpu.vector_store %arg10[%c0_96, %c8_97], %86 {strides = array<i32>} : memref<64x72xbf16, #tpu.memory_space<vmem>>, vector<64x8xbf16>,
    %c0_98 = arith.constant 0 : index
    %c2_99 = arith.constant 2 : index
    %c0_100 = arith.constant 0 : index
    %88 = vector.load %arg9[%c0_98, %c2_99, %c0_100] : memref<10x10x8xbf16, #tpu.memory_space<vmem>>, vector<8x8x8xbf16>
    %89 = vector.shape_cast %88 : vector<8x8x8xbf16> to vector<64x8xbf16>
    %c0_101 = arith.constant 0 : index
    %c16_102 = arith.constant 16 : index
    %90 = vector.load %arg10[%c0_101, %c16_102] : memref<64x72xbf16, #tpu.memory_space<vmem>>, vector<64x8xbf16>
    tpu.vector_store %arg10[%c0_101, %c16_102], %89 {strides = array<i32>} : memref<64x72xbf16, #tpu.memory_space<vmem>>, vector<64x8xbf16>,
    %c1_103 = arith.constant 1 : index
    %c0_104 = arith.constant 0 : index
    %c0_105 = arith.constant 0 : index
    %91 = vector.load %arg9[%c1_103, %c0_104, %c0_105] : memref<10x10x8xbf16, #tpu.memory_space<vmem>>, vector<8x8x8xbf16>
    %92 = vector.shape_cast %91 : vector<8x8x8xbf16> to vector<64x8xbf16>
    %c0_106 = arith.constant 0 : index
    %c24_107 = arith.constant 24 : index
    %93 = vector.load %arg10[%c0_106, %c24_107] : memref<64x72xbf16, #tpu.memory_space<vmem>>, vector<64x8xbf16>
    tpu.vector_store %arg10[%c0_106, %c24_107], %92 {strides = array<i32>} : memref<64x72xbf16, #tpu.memory_space<vmem>>, vector<64x8xbf16>,
    %c1_108 = arith.constant 1 : index
    %c1_109 = arith.constant 1 : index
    %c0_110 = arith.constant 0 : index
    %94 = vector.load %arg9[%c1_108, %c1_109, %c0_110] : memref<10x10x8xbf16, #tpu.memory_space<vmem>>, vector<8x8x8xbf16>
    %95 = vector.shape_cast %94 : vector<8x8x8xbf16> to vector<64x8xbf16>
    %c0_111 = arith.constant 0 : index
    %c32_112 = arith.constant 32 : index
    %96 = vector.load %arg10[%c0_111, %c32_112] : memref<64x72xbf16, #tpu.memory_space<vmem>>, vector<64x8xbf16>
    tpu.vector_store %arg10[%c0_111, %c32_112], %95 {strides = array<i32>} : memref<64x72xbf16, #tpu.memory_space<vmem>>, vector<64x8xbf16>,
    %c1_113 = arith.constant 1 : index
    %c2_114 = arith.constant 2 : index
    %c0_115 = arith.constant 0 : index
    %97 = vector.load %arg9[%c1_113, %c2_114, %c0_115] : memref<10x10x8xbf16, #tpu.memory_space<vmem>>, vector<8x8x8xbf16>
    %98 = vector.shape_cast %97 : vector<8x8x8xbf16> to vector<64x8xbf16>
    %c0_116 = arith.constant 0 : index
    %c40 = arith.constant 40 : index
    %99 = vector.load %arg10[%c0_116, %c40] : memref<64x72xbf16, #tpu.memory_space<vmem>>, vector<64x8xbf16>
    tpu.vector_store %arg10[%c0_116, %c40], %98 {strides = array<i32>} : memref<64x72xbf16, #tpu.memory_space<vmem>>, vector<64x8xbf16>,
    %c2_117 = arith.constant 2 : index
    %c0_118 = arith.constant 0 : index
    %c0_119 = arith.constant 0 : index
    %100 = vector.load %arg9[%c2_117, %c0_118, %c0_119] : memref<10x10x8xbf16, #tpu.memory_space<vmem>>, vector<8x8x8xbf16>
    %101 = vector.shape_cast %100 : vector<8x8x8xbf16> to vector<64x8xbf16>
    %c0_120 = arith.constant 0 : index
    %c48 = arith.constant 48 : index
    %102 = vector.load %arg10[%c0_120, %c48] : memref<64x72xbf16, #tpu.memory_space<vmem>>, vector<64x8xbf16>
    tpu.vector_store %arg10[%c0_120, %c48], %101 {strides = array<i32>} : memref<64x72xbf16, #tpu.memory_space<vmem>>, vector<64x8xbf16>,
    %c2_121 = arith.constant 2 : index
    %c1_122 = arith.constant 1 : index
    %c0_123 = arith.constant 0 : index
    %103 = vector.load %arg9[%c2_121, %c1_122, %c0_123] : memref<10x10x8xbf16, #tpu.memory_space<vmem>>, vector<8x8x8xbf16>
    %104 = vector.shape_cast %103 : vector<8x8x8xbf16> to vector<64x8xbf16>
    %c0_124 = arith.constant 0 : index
    %c56 = arith.constant 56 : index
    %105 = vector.load %arg10[%c0_124, %c56] : memref<64x72xbf16, #tpu.memory_space<vmem>>, vector<64x8xbf16>
    tpu.vector_store %arg10[%c0_124, %c56], %104 {strides = array<i32>} : memref<64x72xbf16, #tpu.memory_space<vmem>>, vector<64x8xbf16>,
    %c2_125 = arith.constant 2 : index
    %c2_126 = arith.constant 2 : index
    %c0_127 = arith.constant 0 : index
    %106 = vector.load %arg9[%c2_125, %c2_126, %c0_127] : memref<10x10x8xbf16, #tpu.memory_space<vmem>>, vector<8x8x8xbf16>
    %107 = vector.shape_cast %106 : vector<8x8x8xbf16> to vector<64x8xbf16>
    %c0_128 = arith.constant 0 : index
    %c64 = arith.constant 64 : index
    %108 = vector.load %arg10[%c0_128, %c64] : memref<64x72xbf16, #tpu.memory_space<vmem>>, vector<64x8xbf16>
    tpu.vector_store %arg10[%c0_128, %c64], %107 {strides = array<i32>} : memref<64x72xbf16, #tpu.memory_space<vmem>>, vector<64x8xbf16>,
    %c0_129 = arith.constant 0 : index
    %c0_130 = arith.constant 0 : index
    %109 = vector.load %arg10[%c0_129, %c0_130] : memref<64x72xbf16, #tpu.memory_space<vmem>>, vector<64x72xbf16>
    %c0_131 = arith.constant 0 : index
    %c0_132 = arith.constant 0 : index
    %110 = vector.load %arg4[%c0_131, %c0_132] : memref<72x8xbf16, #tpu.memory_space<vmem>>, vector<72x8xbf16>
    %cst_133 = arith.constant dense<0.000000e+00> : vector<64x8xf32>
    %111 = tpu.matmul %109, %110, %cst_133 {dimension_numbers = #tpu.dot_dimension_numbers<[1], [0], [0], [1], [0, 0, 1, 1], [], []>} : vector<64x72xbf16>, vector<72x8xbf16>, vector<64x8xf32> -> vector<64x8xf32>
    %c0_134 = arith.constant 0 : index
    %c0_135 = arith.constant 0 : index
    %112 = vector.load %arg5[%c0_134, %c0_135] : memref<1x8xf32, #tpu.memory_space<vmem>>, vector<1x8xf32>
    %113 = vector.broadcast %112 : vector<1x8xf32> to vector<64x8xf32>
    %114 = arith.addf %111, %113 : vector<64x8xf32>
    %cst_136 = arith.constant dense<0.000000e+00> : vector<8xf32>
    %115 = vector.multi_reduction <add>, %114, %cst_136 [0] : vector<64x8xf32> to vector<8xf32>
    %116 = vector.shape_cast %115 : vector<8xf32> to vector<1x8xf32>
    %cst_137 = arith.constant 1.562500e-02 : f32
    %117 = vector.broadcast %cst_137 : f32 to vector<1x8xf32>
    %118 = arith.mulf %116, %117 : vector<1x8xf32>
    %119 = vector.broadcast %118 : vector<1x8xf32> to vector<64x8xf32>
    %120 = arith.subf %114, %119 : vector<64x8xf32>
    %121 = arith.mulf %120, %120 : vector<64x8xf32>
    %cst_138 = arith.constant dense<0.000000e+00> : vector<8xf32>
    %122 = vector.multi_reduction <add>, %121, %cst_138 [0] : vector<64x8xf32> to vector<8xf32>
    %123 = vector.shape_cast %122 : vector<8xf32> to vector<1x8xf32>
    %cst_139 = arith.constant 1.562500e-02 : f32
    %124 = vector.broadcast %cst_139 : f32 to vector<1x8xf32>
    %125 = arith.mulf %123, %124 : vector<1x8xf32>
    %cst_140 = arith.constant 9.99999974E-6 : f32
    %126 = vector.broadcast %cst_140 : f32 to vector<1x8xf32>
    %127 = arith.addf %125, %126 : vector<1x8xf32>
    %128 = math.rsqrt %127 : vector<1x8xf32>
    %129 = vector.broadcast %128 : vector<1x8xf32> to vector<64x8xf32>
    %130 = arith.mulf %120, %129 : vector<64x8xf32>
    %cst_141 = arith.constant 0.000000e+00 : f32
    %131 = vector.broadcast %cst_141 : f32 to vector<64x8xf32>
    %132 = arith.maximumf %130, %131 : vector<64x8xf32>
    %133 = vector.shape_cast %132 : vector<64x8xf32> to vector<8x8x8xf32>
    %c0_142 = arith.constant 0 : index
    %c0_143 = arith.constant 0 : index
    %c0_144 = arith.constant 0 : index
    %c0_145 = arith.constant 0 : index
    %134 = vector.load %arg6[%c0_142, %c0_143, %c0_144, %c0_145] : memref<1x8x8x8xf32, #tpu.memory_space<vmem>>, vector<1x8x8x8xf32>
    %135 = vector.shape_cast %134 : vector<1x8x8x8xf32> to vector<8x8x8xf32>
    %136 = vector.shape_cast %133 : vector<8x8x8xf32> to vector<1x8x8x8xf32>
    tpu.vector_store %arg6[%c0_142, %c0_143, %c0_144, %c0_145], %136 {strides = array<i32>} : memref<1x8x8x8xf32, #tpu.memory_space<vmem>>, vector<1x8x8x8xf32>,
    return
  }
  func.func @transform_0(%arg0: i32) -> (i32, i32, i32, i32, i32) {
    %c0_i32 = arith.constant 0 : i32
    %c0_i32_0 = arith.constant 0 : i32
    %c0_i32_1 = arith.constant 0 : i32
    %c0_i32_2 = arith.constant 0 : i32
    %c0_i32_3 = arith.constant 0 : i32
    return %arg0, %c0_i32, %c0_i32_0, %c0_i32_1, %c0_i32_2 : i32, i32, i32, i32, i32
  }
  func.func @transform_1(%arg0: i32) -> (i32, i32) {
    %c0_i32 = arith.constant 0 : i32
    %c0_i32_0 = arith.constant 0 : i32
    %c0_i32_1 = arith.constant 0 : i32
    return %c0_i32, %c0_i32_0 : i32, i32
  }
  func.func @transform_2(%arg0: i32) -> (i32, i32) {
    %c0_i32 = arith.constant 0 : i32
    %c0_i32_0 = arith.constant 0 : i32
    %c0_i32_1 = arith.constant 0 : i32
    return %c0_i32, %c0_i32_0 : i32, i32
  }
  func.func @transform_3(%arg0: i32) -> (i32, i32) {
    %c0_i32 = arith.constant 0 : i32
    %c0_i32_0 = arith.constant 0 : i32
    %c0_i32_1 = arith.constant 0 : i32
    return %c0_i32, %c0_i32_0 : i32, i32
  }
  func.func @transform_4(%arg0: i32) -> (i32, i32) {
    %c0_i32 = arith.constant 0 : i32
    %c0_i32_0 = arith.constant 0 : i32
    %c0_i32_1 = arith.constant 0 : i32
    return %c0_i32, %c0_i32_0 : i32, i32
  }
  func.func @transform_5(%arg0: i32) -> (i32, i32, i32, i32) {
    %c0_i32 = arith.constant 0 : i32
    %c0_i32_0 = arith.constant 0 : i32
    %c0_i32_1 = arith.constant 0 : i32
    %c0_i32_2 = arith.constant 0 : i32
    return %arg0, %c0_i32, %c0_i32_0, %c0_i32_1 : i32, i32, i32, i32
  }
}

</mosaic_0001>

<bundles_post_ra>
// kernel: down_forward.1
= control target key start
LH: loop header
LB: loop body
LE: loop exit
PB: predicated region body
PF: predicated region fallthrough
CT: control target
= control target key end

     0   :  { %s3404_s18 = smov 0   ;;  %s4329_s0 = inlined_call_operand.vmem [shape: f32[2,8,2,8,8], index: 0, kind: input, shape index: {}]   ;;  %s4330_s1 = inlined_call_operand.vmem [shape: bf16[36,8], index: 1, kind: input, shape index: {}]   ;;  %s4331_s2 = inlined_call_operand.vmem [shape: f32[1,8], index: 2, kind: input, shape index: {}]   ;;  %s4332_s3 = inlined_call_operand.vmem [shape: bf16[72,8], index: 3, kind: input, shape index: {}]   ;;  %s4333_s4 = inlined_call_operand.vmem [shape: f32[1,8], index: 4, kind: input, shape index: {}]   ;;  %s4334_s5 = inlined_call_operand.vmem [shape: f32[2,8,8,8], index: 5, kind: output, shape index: {}]  }
   0x1 LB: > { %s3021_s19 = sadd.s32 4294967295, %s3358_s18   ;;  %p3025_p0 = scmp.ge.s32.totalorder %s3358_s18, 1  ;;  %s3358_s18 = sphi %s3404_s18, %s15_s18  }
   0x2   : > { %p187_p1 = scmp.lt.s32.totalorder %s3358_s18, 3 }
   0x4   : > { %p188_p2 = pnand %p3025_p0, %p187_p1 }
   0x5   : > { %p3412_p3 = scmp.lt.s32.totalorder (!%p188_p2), %s3021_s19, 1  ;;  %vm330_vm0 = vcmask (!%p188_p2), 27648   ;;  %vm332_vm1 = vcmask (!%p188_p2), 24576   ;;  %vm1643_vm2 = vcmask (!%p188_p2), 57344   ;;  %v3360_v0 = vmov (!%p188_p2), 0   ;;  %s3361_s25 = smov (!%p188_p2), 124  }
   0x6   : > { %191 = sbr.rel (%p188_p2) target bundleno = 1182 (0x49e), region = 40  ;;  %331 = vst.msk [vmem:[#allocation2] sm:$0xf] (!%p188_p2), %vm330_vm0, %v3360_v0  ;;  %335 = vst.msk [vmem:[#allocation2 + $0x48] sm:$0xf] (!%p188_p2), %vm330_vm0, %v3360_v0  ;;  %vm794_vm9 = vcmask (!%p188_p2), 1042432  }
   0x7   : > { %vm338_vm3 = vsmask.f32 (!%p188_p2), 256  ;;  %v349_v1 = vld [vmem:[#allocation2 + $0x18] sm:$0x1] (!%p188_p2)  ;;  %vm370_vm4 = vsmask.f32 (!%p188_p2), 7938 }
   0x8   : > { %333 = vst.msk [vmem:[#allocation2 + $0x4] sm:$0x1] (!%p188_p2), %vm332_vm1, %v3360_v0  ;;  %336 = vst.msk [vmem:[#allocation2 + $0x4c] sm:$0x1] (!%p188_p2), %vm332_vm1, %v3360_v0  ;;  %v381_v3 = vld [vmem:[#allocation2 + $0x1c] sm:$0x1] (!%p188_p2) }
   0x9   : > { %1644 = vst.msk [vmem:[#allocation4 + $0x4] sm:$0x1] (!%p188_p2), %vm1643_vm2, %v3360_v0  ;;  %1647 = vst.msk [vmem:[#allocation4 + $0x4c] sm:$0x1] (!%p188_p2), %vm1643_vm2, %v3360_v0  ;;  %v343_v4 = vld [vmem:[#allocation2 + $0x8] sm:$0x1] (!%p188_p2) }
   0xa   : > { %vm3434_vm5 = vmand (!%p188_p2), %vm332_vm1, %vm338_vm3  ;;  %v375_v8 = vld [vmem:[#allocation2 + $0xc] sm:$0x1] (!%p188_p2)  ;;  %v352_v12 = vld [vmem:[#allocation2 + $0x20] sm:$0x1] (!%p188_p2)  ;;  %vm795_vm10 = vcmask (!%p188_p2), 1046532   ;;  %s3362_s26 = smov (!%p188_p2), 12  }
   0xb   : > { %v350_v5 = vsel (!%p188_p2), %vm3434_vm5, 0, %v349_v1  ;;  %vm3442_vm6 = vmand (!%p188_p2), %vm332_vm1, %vm370_vm4  ;;  %v344_v7 = vsel (!%p188_p2), %vm3434_vm5, 0, %v343_v4  ;;  %v384_v13 = vld [vmem:[#allocation2 + $0x24] sm:$0x1] (!%p188_p2)  ;;  %v353_v17 = vsel (!%p188_p2), %vm3434_vm5, 0, %v352_v12  ;;  %s3363_s27 = smov (!%p188_p2), 24  }
   0xc   : > { %351 = vst [vmem:[#allocation2 + $0x18] sm:$0x1] (!%p188_p2), %v350_v5  ;;  %v382_v9 = vsel (!%p188_p2), %vm3442_vm6, 0, %v381_v3  ;;  %345 = vst [vmem:[#allocation2 + $0x8] sm:$0x1] (!%p188_p2), %v344_v7  ;;  %v376_v10 = vsel (!%p188_p2), %vm3442_vm6, 0, %v375_v8 }
   0xd   : > { %s4353_s19 = smov (!%p3412_p3, %s3021_s19), 1  ;;  %383 = vst [vmem:[#allocation2 + $0x1c] sm:$0x1] %v382_v9  ;;  %vm3460_vm7 = vmand %vm1643_vm2, %vm338_vm3  ;;  %v385_v18 = vsel %vm3442_vm6, 0, %v384_v13  ;;  %v340_v32 = vld [vmem:[#allocation2] sm:$0x1] }
   0xe   : > { %s3186_s21 = sshll.u32 %s4353_s19, 7  ;;  %377 = vst [vmem:[#allocation2 + $0xc] sm:$0x1] %v376_v10  ;;  %354 = vst [vmem:[#allocation2 + $0x20] sm:$0x1] %v353_v17  ;;  %v341_v33 = vsel %vm3434_vm5, 0, %v340_v32 }
   0xf   : > { %s3456_s24 = scalar_lea.vmem %s4329_s0, %s3186_s21  ;;  %386 = vst [vmem:[#allocation2 + $0x24] sm:$0x1] %v385_v18  ;;  %342 = vst [vmem:[#allocation2] sm:$0x1] %v341_v33  ;;  %v346_v36 = vld [vmem:[#allocation2 + $0x10] sm:$0x1] }
  0x10   : > { %v3465_v14 = vld [vmem:[%s3456_s24 + $0x20] sm:$0xff]  ;;  %v3468_v15 = vld [vmem:[%s3456_s24 + $0x28] sm:$0xff]  ;;  %v3483_v21 = vld [vmem:[%s3456_s24 + $0x30] sm:$0xff]  ;;  %v347_v42 = vsel %vm3434_vm5, 0, %v346_v36  ;;  %vm618_vm11 = vsmask.f32 3328 }
  0x11   : > { %v3471_v16 = vld [vmem:[%s3456_s24] sm:$0xff]  ;;  %v3286_v19 = vpack.i.bf16 %v3468_v15, %v3465_v14  ;;  %v3480_v20 = vld [vmem:[%s3456_s24 + $0x8] sm:$0xff]  ;;  %v3486_v22 = vld [vmem:[%s3456_s24 + $0x38] sm:$0xff]  ;;  %348 = vst [vmem:[#allocation2 + $0x10] sm:$0x1] %v347_v42  ;;  %s3364_s28 = smov 8  }
  0x12   : > { %v3276_v23 = vpack.i.bf16 %v3480_v20, %v3471_v16  ;;  %v3491_v24 = vld [vmem:[%s3456_s24 + $0x10] sm:$0xff]  ;;  %v3494_v25 = vld [vmem:[%s3456_s24 + $0x18] sm:$0xff]  ;;  %v3291_v26 = vpack.i.bf16 %v3486_v22, %v3483_v21  ;;  %v3509_v30 = vld [vmem:[%s3456_s24 + $0x40] sm:$0xff]  ;;  %vm619_vm12 = vsmask.f32 7440  ;;  %s3365_s29 = smov 20  }
  0x13   : > { %3287 = vrot.lane.b32.xlu1 %v3286_v19, %s3361_s25  ;;  %v3281_v27 = vpack.i.bf16 %v3494_v25, %v3491_v24  ;;  %v3503_v28 = vld [vmem:[%s3456_s24 + $0x50] sm:$0xff]  ;;  %v3506_v29 = vld [vmem:[%s3456_s24 + $0x58] sm:$0xff]  ;;  %v3512_v31 = vld [vmem:[%s3456_s24 + $0x48] sm:$0xff]  ;;  %s3366_s30 = smov 32   ;;  %s3367_s6 = smov 4   ;;  %vm597_vm15 = vcmask 31744  }
  0x14   : > { %3277 = vrot.lane.b32.xlu0 %v3276_v23, %s3361_s25  ;;  %v3301_v34 = vpack.i.bf16 %v3506_v29, %v3503_v28  ;;  %v3520_v35 = vld [vmem:[%s3456_s24 + $0x70] sm:$0xff]  ;;  %v3296_v38 = vpack.i.bf16 %v3512_v31, %v3509_v30  ;;  %v3526_v39 = vld [vmem:[%s3456_s24 + $0x78] sm:$0xff]  ;;  %v3529_v40 = vld [vmem:[%s3456_s24 + $0x60] sm:$0xff]  ;;  %s3368_s7 = smov 16   ;;  %s3369_s10 = smov 28   ;;  %vm757_vm1 = vcmask 64544  }
  0x15   : > { %v378_v37 = vld [vmem:[#allocation2 + $0x14] sm:$0x1]  ;;  %v3532_v41 = vld [vmem:[%s3456_s24 + $0x68] sm:$0xff]  ;;  %v358_v44 = vld [vmem:[#allocation2 + $0x30] sm:$0x1]  ;;  %v3311_v51 = vpack.i.bf16 %v3526_v39, %v3520_v35  ;;  %vm853_vm3 = vcmask 97344  }
  0x16   : > { %v379_v43 = vsel %vm3442_vm6, 0, %v378_v37  ;;  %v390_v45 = vld [vmem:[#allocation2 + $0x34] sm:$0x1]  ;;  %v355_v46 = vld [vmem:[#allocation2 + $0x28] sm:$0x1]  ;;  %v359_v47 = vsel %vm3434_vm5, 0, %v358_v44  ;;  %v3306_v53 = vpack.i.bf16 %v3532_v41, %v3529_v40  ;;  %vm3598_vm8 = vmand %vm330_vm0, %vm370_vm4 }
  0x17   : > { %3292 = vrot.lane.b32.xlu1 %v3291_v26, %s3361_s25  ;;  %380 = vst [vmem:[#allocation2 + $0x14] sm:$0x1] %v379_v43  ;;  %v391_v48 = vsel %vm3442_vm6, 0, %v390_v45  ;;  %v356_v49 = vsel %vm3434_vm5, 0, %v355_v46  ;;  %v387_v50 = vld [vmem:[#allocation2 + $0x2c] sm:$0x1]  ;;  %vm3676_vm13 = vmor %vm794_vm9, %vm795_vm10 }
  0x18   : > { %3282 = vrot.lane.b32.xlu0 %v3281_v27, %s3361_s25  ;;  %360 = vst [vmem:[#allocation2 + $0x30] sm:$0x1] %v359_v47  ;;  %392 = vst [vmem:[#allocation2 + $0x34] sm:$0x1] %v391_v48  ;;  %v388_v52 = vsel %vm3442_vm6, 0, %v387_v50  ;;  %vm1493_vm0 = vcmask 1041408  }
  0x19   : > { %357 = vst [vmem:[#allocation2 + $0x28] sm:$0x1] %v356_v49  ;;  %389 = vst [vmem:[#allocation2 + $0x2c] sm:$0x1] %v388_v52  ;;  %v364_v54 = vld [vmem:[#allocation2 + $0x40] sm:$0x1] }
  0x1a   : > { %v396_v55 = vld [vmem:[#allocation2 + $0x44] sm:$0x1]  ;;  %v361_v56 = vld [vmem:[#allocation2 + $0x38] sm:$0x1]  ;;  %v365_v57 = vsel %vm3434_vm5, 0, %v364_v54  ;;  %vm3702_vm14 = vmor %vm618_vm11, %vm619_vm12  ;;  %vm1194_vm9 = vcmask 228544  }
  0x1b   : > { %3302 = vrot.lane.b32.xlu1 %v3301_v34, %s3361_s25  ;;  %v397_v58 = vsel %vm3442_vm6, 0, %v396_v55  ;;  %v362_v59 = vsel %vm3434_vm5, 0, %v361_v56  ;;  %v393_v60 = vld [vmem:[#allocation2 + $0x3c] sm:$0x1]  ;;  %366 = vst [vmem:[#allocation2 + $0x40] sm:$0x1] %v365_v57 }
  0x1c   : > { %3297 = vrot.lane.b32.xlu0 %v3296_v38, %s3361_s25  ;;  %398 = vst [vmem:[#allocation2 + $0x44] sm:$0x1] %v397_v58  ;;  %363 = vst [vmem:[#allocation2 + $0x38] sm:$0x1] %v362_v59  ;;  %v394_v61 = vsel %vm3442_vm6, 0, %v393_v60  ;;  %vm1351_vm10 = vcmask 261344  }
  0x1d   : > { %v372_v62 = vld [vmem:[#allocation2 + $0x4] sm:$0x1]  ;;  %395 = vst [vmem:[#allocation2 + $0x3c] sm:$0x1] %v394_v61  ;;  %v367_v1 = vld [vmem:[#allocation2 + $0x48] sm:$0x1] }
  0x1e   : > { %v373_v63 = vsel %vm3442_vm6, 0, %v372_v62  ;;  %v368_v3 = vsel %vm3434_vm5, 0, %v367_v1  ;;  %v399_v4 = vld [vmem:[#allocation2 + $0x4c] sm:$0x1]  ;;  %v602_v7 = vld [vmem:[#allocation2] sm:$0xf] }
  0x1f   : > { %3312 = vrot.lane.b32.xlu1 %v3311_v51, %s3361_s25  ;;  %374 = vst [vmem:[#allocation2 + $0x4] sm:$0x1] %v373_v63  ;;  %369 = vst [vmem:[#allocation2 + $0x48] sm:$0x1] %v368_v3  ;;  %v400_v5 = vsel %vm3442_vm6, 0, %v399_v4  ;;  %v622_v8 = vshrl.u32 %v602_v7, 16 }
  0x20   : > { %3307 = vrot.lane.b32.xlu0 %v3306_v53, %s3361_s25  ;;  %401 = vst [vmem:[#allocation2 + $0x4c] sm:$0x1] %v400_v5  ;;  %v625_v9 = vshll.u32 %v602_v7, 16  ;;  %v3568_v33 = vld [vmem:[#allocation2] sm:$0xe]  ;;  %vm1055_vm6 = vcmask 162944  }
  0x21   : > { %v624_v12 = vrot.slane %v622_v8, 4  ;;  %v3046_v49 = vrot.slane %v3568_v33, 9  ;;  %vm1444_vm11 = vcmask 294144   ;;  %vm1480_vm12 = vcmask 293888   ;;  %s3370_s17 = smov 48   ;;  %s3371_s20 = smov 40  }
  0x22   : > { %v627_v13 = vrot.slane %v625_v9, 5  ;;  %s3372_s21 = smov 64  }
  0x24   : > { %v628_v6 = vor.u32 %v627_v13, %v624_v12  ;;  %v529_v13 = vld [vmem:[#allocation2 + $0x18] sm:$0xf] }
  0x26   : > { %v1213_v10 = vld [vmem:[#allocation2 + $0x48] sm:$0xf]  ;;  %v603_v17 = vld [vmem:[#allocation2 + $0x4] sm:$0x1] }
  0x27   : > { %v1314_v18 = vshrl.u32 %v1213_v10, 16  ;;  %v1317_v19 = vshll.u32 %v1213_v10, 16  ;;  %v3570_v34 = vld [vmem:[#allocation2 + $0x4] sm:$0x1]  ;;  %v631_v38 = vshll.u32 %v603_v17, 16 }
  0x28   : > { %v799_v50 = vrot.slane %v3570_v34, 5 }
  0x29   : > { %v3574_v44 = vrot.slane %v1314_v18, 4  ;;  %v3576_v45 = vrot.slane %v1317_v19, 5  ;;  %v3586_v58 = vrot.slane %v631_v38, 5 }
  0x2b   : > { %v1320_v60 = vor.u32 %v3576_v45, %v3574_v44 }
  0x85   : > { %v3288_v23 = vpop.permute.xlu1 %3287 }
  0x86   : > { %v3290_v26 = vunpack.i.h.bf16 %v3288_v23  ;;  %v3289_v27 = vunpack.i.l.bf16 %v3288_v23  ;;  %v3278_v32 = vpop.permute.xlu0 %3277  ;;  %v532_v23 = vld [vmem:[#allocation2 + $0x1c] sm:$0x1] }
  0x87   : > { %v3280_v36 = vunpack.i.h.bf16 %v3278_v32  ;;  %v3279_v37 = vunpack.i.l.bf16 %v3278_v32 }
  0x88   : > { %v311_v42 = vmax.f32 %v3468_v15, %v3290_v26  ;;  %v310_v43 = vmax.f32 %v3465_v14, %v3289_v27  ;;  %v3582_v15 = vrot.slane %v628_v6, 4  ;;  %v3584_v14 = vld [vmem:[#allocation2 + $0x4c] sm:$0x1]  ;;  %v517_v26 = vld [vmem:[#allocation2 + $0x8] sm:$0xf] }
  0x89   : > { %v307_v46 = vmax.f32 %v3480_v20, %v3280_v36  ;;  %v306_v47 = vmax.f32 %v3471_v16, %v3279_v37  ;;  %v3293_v48 = vpop.permute.xlu1 %3292  ;;  %v1323_v3 = vshll.u32 %v3584_v14, 16 }
  0x8a   : > { %v324_v51 = vmax.f32 %v310_v43, %v311_v42  ;;  %v3295_v52 = vunpack.i.h.bf16 %v3293_v48  ;;  %v3294_v53 = vunpack.i.l.bf16 %v3293_v48  ;;  %v3283_v54 = vpop.permute.xlu0 %3282  ;;  %v520_v42 = vld [vmem:[#allocation2 + $0xc] sm:$0x1] }
  0x8b   : > { %v322_v55 = vmax.f32 %v306_v47, %v307_v46  ;;  %v3285_v56 = vunpack.i.h.bf16 %v3283_v54  ;;  %v3284_v57 = vunpack.i.l.bf16 %v3283_v54 }
  0x8c   : > { %v3190_v20 = vpack.c.bf16 %v324_v51, %v324_v51  ;;  %v313_v16 = vmax.f32 %v3486_v22, %v3295_v52  ;;  %v312_v59 = vmax.f32 %v3483_v21, %v3294_v53 }
  0x8d   : > { %v3188_v61 = vpack.c.bf16 %v322_v55, %v322_v55  ;;  %v309_v62 = vmax.f32 %v3494_v25, %v3285_v56  ;;  %v308_v63 = vmax.f32 %v3491_v24, %v3284_v57  ;;  %v3303_v1 = vpop.permute.xlu1 %3302 }
  0x8e   : > { %v451_v4 = vshrl.u32 %v3190_v20, 16  ;;  %v454_v5 = vshll.u32 %v3190_v20, 16  ;;  %v325_v7 = vmax.f32 %v312_v59, %v313_v16  ;;  %v3305_v8 = vunpack.i.h.bf16 %v3303_v1  ;;  %v3298_v9 = vpop.permute.xlu0 %3297  ;;  %v535_v20 = vld [vmem:[#allocation2 + $0x20] sm:$0xf]  ;;  %v538_v16 = vld [vmem:[#allocation2 + $0x24] sm:$0x1] }
  0x8f   : > { %v435_v10 = vshrl.u32 %v3188_v61, 16  ;;  %v438_v22 = vshll.u32 %v3188_v61, 16  ;;  %v323_v12 = vmax.f32 %v308_v63, %v309_v62  ;;  %v3304_v21 = vunpack.i.l.bf16 %v3303_v1  ;;  %v523_v1 = vld [vmem:[#allocation2 + $0x10] sm:$0xf] }
  0x90   : > { %v453_v17 = vrot.slane %v451_v4, 7  ;;  %v3191_v18 = vpack.c.bf16 %v325_v7, %v325_v7  ;;  %v317_v19 = vmax.f32 %v3506_v29, %v3305_v8  ;;  %v3300_v25 = vunpack.i.h.bf16 %v3298_v9  ;;  %v526_v4 = vld [vmem:[#allocation2 + $0x14] sm:$0x1] }
  0x91   : > { %v437_v27 = vrot.slane %v435_v10, 7  ;;  %v3189_v32 = vpack.c.bf16 %v323_v12, %v323_v12  ;;  %v316_v6 = vmax.f32 %v3503_v28, %v3304_v21  ;;  %v3299_v36 = vunpack.i.l.bf16 %v3298_v9  ;;  %v3313_v56 = vpop.permute.xlu1 %3312 }
  0x92   : > { %v456_v37 = vor.u32 %v454_v5, %v453_v17  ;;  %v457_v38 = vrot.slane %v453_v17, 4  ;;  %v459_v43 = vshrl.u32 %v3191_v18, 16  ;;  %v462_v46 = vshll.u32 %v3191_v18, 16  ;;  %v3308_v12 = vpop.permute.xlu0 %3307  ;;  %v3617_v18 = vld [vmem:[#allocation2 + $0x48] sm:$0xe] }
  0x93   : > { %v440_v29 = vor.u32 %v438_v22, %v437_v27  ;;  %v441_v47 = vrot.slane %v437_v27, 4  ;;  %v443_v48 = vshrl.u32 %v3189_v32, 16  ;;  %v446_v51 = vshll.u32 %v3189_v32, 16  ;;  %v547_v27 = vld [vmem:[#allocation2 + $0x30] sm:$0xf] }
  0x94   : > { %v530_v52 = vsel %vm3598_vm8, %v456_v37, %v529_v13  ;;  %v533_v53 = vsel %vm3434_vm5, %v457_v38, %v532_v23  ;;  %v461_v54 = vrot.slane %v459_v43, 7  ;;  %v327_v55 = vmax.f32 %v316_v6, %v317_v19  ;;  %v3619_v19 = vld [vmem:[#allocation2 + $0x4c] sm:$0x1]  ;;  %v550_v38 = vld [vmem:[#allocation2 + $0x34] sm:$0x1] }
  0x95   : > { %531 = vst [vmem:[#allocation2 + $0x18] sm:$0xf] %v530_v52  ;;  %534 = vst [vmem:[#allocation2 + $0x1c] sm:$0x1] %v533_v53  ;;  %v518_v28 = vsel %vm3598_vm8, %v440_v29, %v517_v26  ;;  %v521_v57 = vsel %vm3434_vm5, %v441_v47, %v520_v42  ;;  %v445_v59 = vrot.slane %v443_v48, 7  ;;  %v315_v61 = vmax.f32 %v3512_v31, %v3300_v25 }
  0x96   : > { %519 = vst [vmem:[#allocation2 + $0x8] sm:$0xf] %v518_v28  ;;  %522 = vst [vmem:[#allocation2 + $0xc] sm:$0x1] %v521_v57  ;;  %v464_v62 = vor.u32 %v462_v46, %v461_v54  ;;  %v465_v63 = vrot.slane %v461_v54, 4  ;;  %v3193_v5 = vpack.c.bf16 %v327_v55, %v327_v55  ;;  %v314_v7 = vmax.f32 %v3509_v30, %v3299_v36 }
  0x97   : > { %v448_v8 = vor.u32 %v446_v51, %v445_v59  ;;  %v449_v9 = vrot.slane %v445_v59, 4  ;;  %v3315_v10 = vunpack.i.h.bf16 %v3313_v56  ;;  %v3314_v22 = vunpack.i.l.bf16 %v3313_v56  ;;  %v544_v55 = vld [vmem:[#allocation2 + $0x2c] sm:$0x1] }
  0x98   : > { %v536_v21 = vsel %vm3598_vm8, %v464_v62, %v535_v20  ;;  %v539_v31 = vsel %vm3434_vm5, %v465_v63, %v538_v16  ;;  %v475_v13 = vshrl.u32 %v3193_v5, 16  ;;  %v478_v17 = vshll.u32 %v3193_v5, 16  ;;  %v559_v5 = vld [vmem:[#allocation2 + $0x40] sm:$0xf] }
  0x99   : > { %537 = vst [vmem:[#allocation2 + $0x20] sm:$0xf] %v536_v21  ;;  %540 = vst [vmem:[#allocation2 + $0x24] sm:$0x1] %v539_v31  ;;  %v524_v30 = vsel %vm3598_vm8, %v448_v8, %v523_v1  ;;  %v527_v25 = vsel %vm3434_vm5, %v449_v9, %v526_v4  ;;  %v326_v23 = vmax.f32 %v314_v7, %v315_v61  ;;  %v3310_v36 = vunpack.i.h.bf16 %v3308_v12  ;;  %v562_v7 = vld [vmem:[#allocation2 + $0x44] sm:$0x1] }
  0x9a   : > { %v321_v26 = vmax.f32 %v3526_v39, %v3315_v10  ;;  %525 = vst [vmem:[#allocation2 + $0x10] sm:$0xf] %v524_v30  ;;  %528 = vst [vmem:[#allocation2 + $0x14] sm:$0x1] %v527_v25  ;;  %v477_v32 = vrot.slane %v475_v13, 7  ;;  %v320_v6 = vmax.f32 %v3520_v35, %v3314_v22  ;;  %v3309_v37 = vunpack.i.l.bf16 %v3308_v12 }
  0x9b   : > { %v3192_v42 = vpack.c.bf16 %v326_v23, %v326_v23  ;;  %v3630_v43 = vrot.slane %v1320_v60, 4  ;;  %v3093_v46 = vrot.slane %v3617_v18, 9  ;;  %v1418_v29 = vrot.slane %v3619_v19, 5  ;;  %v541_v60 = vld [vmem:[#allocation2 + $0x28] sm:$0xf] }
  0x9c   : > { %v480_v39 = vor.u32 %v478_v17, %v477_v32  ;;  %v481_v47 = vrot.slane %v477_v32, 4  ;;  %v329_v48 = vmax.f32 %v320_v6, %v321_v26  ;;  %v319_v51 = vmax.f32 %v3532_v41, %v3310_v36  ;;  %v3636_v54 = vld [vmem:[#allocation2 + $0x18] sm:$0xe]  ;;  %v3642_v28 = vld [vmem:[#allocation2 + $0x1c] sm:$0x1] }
  0x9d   : > { %v467_v52 = vshrl.u32 %v3192_v42, 16  ;;  %v470_v35 = vshll.u32 %v3192_v42, 16  ;;  %v318_v53 = vmax.f32 %v3529_v40, %v3309_v37  ;;  %v3646_v41 = vrot.slane %v1323_v3, 5  ;;  %v3649_v16 = vld [vmem:[#allocation2 + $0x8] sm:$0xe] }
  0x9e   : > { %v548_v44 = vsel %vm3598_vm8, %v480_v39, %v547_v27  ;;  %v551_v45 = vsel %vm3434_vm5, %v481_v47, %v550_v38  ;;  %v3195_v56 = vpack.c.bf16 %v329_v48, %v329_v48  ;;  %v3049_v20 = vrot.slane %v3636_v54, 9  ;;  %v3651_v59 = vld [vmem:[#allocation2 + $0xc] sm:$0x1]  ;;  %v553_v23 = vld [vmem:[#allocation2 + $0x38] sm:$0xf] }
  0x9f   : > { %549 = vst [vmem:[#allocation2 + $0x30] sm:$0xf] %v548_v44  ;;  %552 = vst [vmem:[#allocation2 + $0x34] sm:$0x1] %v551_v45  ;;  %v469_v40 = vrot.slane %v467_v52, 7  ;;  %v328_v57 = vmax.f32 %v318_v53, %v319_v51  ;;  %v811_v8 = vrot.slane %v3642_v28, 5 }
  0xa0   : > { %v491_v61 = vshrl.u32 %v3195_v56, 16  ;;  %v494_v62 = vshll.u32 %v3195_v56, 16  ;;  %v3316_v63 = vld [vmem:[#allocation2 + $0x18] ss:$8 sps:$4 sm:$0xff]   ;;  %v3047_v10 = vrot.slane %v3649_v16, 9  ;;  %v803_v32 = vrot.slane %v3651_v59, 5 }
  0xa1   : > { %v472_v1 = vor.u32 %v470_v35, %v469_v40  ;;  %v473_v4 = vrot.slane %v469_v40, 4  ;;  %v3194_v14 = vpack.c.bf16 %v328_v57, %v328_v57  ;;  %v3317_v3 = vld [vmem:[#allocation2 + $0x8] ss:$8 sps:$4 sm:$0xff]   ;;  %888 = vrot.lane.b32.xlu1 %v3316_v63, %s3362_s26  ;;  %v556_v26 = vld [vmem:[#allocation2 + $0x3c] sm:$0x1] }
  0xa2   : > { %v493_v9 = vrot.slane %v491_v61, 7  ;;  %886 = vrot.lane.b32.xlu0 %v3317_v3, %s3362_s26  ;;  %v3319_v13 = vld [vmem:[#allocation2 + $0x10] ss:$8 sps:$4 sm:$0xff]   ;;  %v767_v27 = vld [vmem:[#allocation2 + $0x14] sm:$0x1] }
  0xa3   : > { %v542_v22 = vsel %vm3598_vm8, %v472_v1, %v541_v60  ;;  %v545_v12 = vsel %vm3434_vm5, %v473_v4, %v544_v55  ;;  %v483_v21 = vshrl.u32 %v3194_v14, 16  ;;  %v486_v31 = vshll.u32 %v3194_v14, 16  ;;  %v766_v17 = vld [vmem:[#allocation2 + $0x10] sm:$0xe]  ;;  %v3662_v6 = vld [vmem:[#allocation2 + $0x18] sm:$0xe] }
  0xa4   : > { %543 = vst [vmem:[#allocation2 + $0x28] sm:$0xf] %v542_v22  ;;  %546 = vst [vmem:[#allocation2 + $0x2c] sm:$0x1] %v545_v12  ;;  %v496_v30 = vor.u32 %v494_v62, %v493_v9  ;;  %v497_v25 = vrot.slane %v493_v9, 4  ;;  %v3048_v37 = vrot.slane %v766_v17, 9  ;;  %v804_v17 = vsel %vm3676_vm13, %v3047_v10, %v803_v32 }
  0xa5   : > { %v485_v36 = vrot.slane %v483_v21, 7  ;;  %v1065_v38 = vld [vmem:[#allocation2 + $0x1c] sm:$0x1]  ;;  %v1066_v42 = vld [vmem:[#allocation2 + $0x20] sm:$0xe]  ;;  %v807_v35 = vrot.slane %v767_v27, 5 }
  0xa6   : > { %v560_v39 = vsel %vm3598_vm8, %v496_v30, %v559_v5  ;;  %v563_v47 = vsel %vm3434_vm5, %v497_v25, %v562_v7  ;;  %v1067_v48 = vld [vmem:[#allocation2 + $0x24] sm:$0x1]  ;;  %1182 = vrot.lane.b32.xlu0 %v3319_v13, %s3363_s27  ;;  %v1060_v53 = vld [vmem:[#allocation2 + $0x8] sm:$0xe]  ;;  %v1061_v44 = vld [vmem:[#allocation2 + $0xc] sm:$0x1]  ;;  %v800_v13 = vsel %vm3676_vm13, %v3046_v49, %v799_v50 }
  0xa7   : > { %561 = vst [vmem:[#allocation2 + $0x40] sm:$0xf] %v560_v39  ;;  %564 = vst [vmem:[#allocation2 + $0x44] sm:$0x1] %v563_v47  ;;  %v488_v51 = vor.u32 %v486_v31, %v485_v36  ;;  %v489_v52 = vrot.slane %v485_v36, 4  ;;  %v3068_v45 = vrot.slane %v3662_v6, 9 }
  0xa8   : > { %v1102_v60 = vrot.slane %v1065_v38, 5  ;;  %v3069_v55 = vrot.slane %v1066_v42, 9  ;;  %v1106_v56 = vrot.slane %v1067_v48, 5  ;;  %v1062_v61 = vld [vmem:[#allocation2 + $0x10] sm:$0xe]  ;;  %v3066_v63 = vrot.slane %v1060_v53, 9 }
  0xa9   : > { %v554_v40 = vsel %vm3598_vm8, %v488_v51, %v553_v23  ;;  %v557_v57 = vsel %vm3434_vm5, %v489_v52, %v556_v26  ;;  %v1063_v62 = vld [vmem:[#allocation2 + $0x14] sm:$0x1]  ;;  %v1094_v1 = vrot.slane %v1061_v44, 5  ;;  %v774_v4 = vld [vmem:[#allocation2 + $0x30] sm:$0xe]  ;;  %v3067_v3 = vrot.slane %v1062_v61, 9 }
  0xaa   : > { %555 = vst [vmem:[#allocation2 + $0x38] sm:$0xf] %v554_v40  ;;  %558 = vst [vmem:[#allocation2 + $0x3c] sm:$0x1] %v557_v57  ;;  %v775_v5 = vld [vmem:[#allocation2 + $0x34] sm:$0x1]  ;;  %v3694_v23 = vsel %vm3676_vm13, %v3048_v37, %v807_v35  ;;  %v3698_v26 = vsel %vm3676_vm13, %v3069_v55, %v1106_v56  ;;  %v812_v37 = vsel %vm3676_vm13, %v3049_v20, %v811_v8 }
  0xab   : > { %v1356_v7 = vld [vmem:[#allocation2 + $0x10] sm:$0xe]  ;;  %v3318_v24 = vld [vmem:[#allocation2 + $0x20] ss:$8 sps:$4 sm:$0xff]   ;;  %v1098_v2 = vrot.slane %v1063_v62, 5  ;;  %v3052_v22 = vrot.slane %v774_v4, 9  ;;  %v3714_v38 = vsel %vm3676_vm13, %v3068_v45, %v1102_v60  ;;  %v3055_v47 = vcombine.low %v3694_v23, %v812_v37 }
  0xac   : > { %v3321_v14 = vld [vmem:[#allocation2 + $0x28] ss:$8 sps:$4 sm:$0xff]   ;;  %v1357_v9 = vld [vmem:[#allocation2 + $0x14] sm:$0x1]  ;;  %1184 = vrot.lane.b32.xlu1 %v3318_v24, %s3363_s27  ;;  %v823_v12 = vrot.slane %v775_v5, 5  ;;  %v3086_v30 = vrot.slane %v1356_v7, 9  ;;  %v3054_v48 = vcombine.low %v800_v13, %v804_v17  ;;  %v3075_v28 = vcombine.low %v3714_v38, %v3698_v26 }
  0xad   : > { %v1358_v21 = vld [vmem:[#allocation2 + $0x18] sm:$0xe]  ;;  %v1359_v31 = vld [vmem:[#allocation2 + $0x1c] sm:$0x1]  ;;  %890 = vrot.lane.b32.xlu0 %v3321_v14, %s3362_s26  ;;  %v1390_v25 = vrot.slane %v1357_v9, 5  ;;  %v3718_v42 = vsel %vm3676_vm13, %v3067_v3, %v1098_v2  ;;  %v634_v20 = vsel %vm3702_vm14, %v3582_v15, %v3586_v58  ;;  %v1095_v52 = vsel %vm3676_vm13, %v3066_v63, %v1094_v1 }
  0xae   : > { %v3087_v34 = vrot.slane %v1358_v21, 9  ;;  %v1394_v33 = vrot.slane %v1359_v31, 5  ;;  %v1074_v27 = vld [vmem:[#allocation2 + $0x40] sm:$0xe]  ;;  %v1075_v6 = vld [vmem:[#allocation2 + $0x44] sm:$0x1]  ;;  %v3074_v55 = vcombine.low %v1095_v52, %v3718_v42  ;;  %v3738_v56 = vsel %vm3676_vm13, %v3052_v22, %v823_v12 }
  0xaf   : > { %v3073_v50 = vrot.slane %v1074_v27, 9  ;;  %v1122_v16 = vrot.slane %v1075_v6, 5  ;;  %v1360_v10 = vld [vmem:[#allocation2 + $0x20] sm:$0xe]  ;;  %v1361_v32 = vld [vmem:[#allocation2 + $0x24] sm:$0x1]  ;;  %v3732_v44 = vsel %vm3676_vm13, %v3086_v30, %v1390_v25 }
  0xb0   : > { %v3322_v8 = vld [vmem:[#allocation2 + $0x40] ss:$8 sps:$4 sm:$0xff]   ;;  %v1363_v62 = vld [vmem:[#allocation2 + $0x2c] sm:$0x1]  ;;  %v3742_v63 = vsel %vm3676_vm13, %v3087_v34, %v1394_v33  ;;  %v3088_v1 = vrot.slane %v1360_v10, 9  ;;  %v1398_v4 = vrot.slane %v1361_v32, 5 }
  0xb1   : > { %v3320_v36 = vld [vmem:[#allocation2 + $0x38] ss:$8 sps:$4 sm:$0xff]   ;;  %v777_v54 = vld [vmem:[#allocation2 + $0x3c] sm:$0x1]  ;;  %v1362_v61 = vld [vmem:[#allocation2 + $0x28] sm:$0xe]  ;;  %v3094_v24 = vcombine.low %v3732_v44, %v3742_v63  ;;  %v3748_v14 = vsel %vm3676_vm13, %v3073_v50, %v1122_v16 }
  0xb2   : > { %v3323_v39 = vld [vmem:[#allocation2 + $0x30] ss:$8 sps:$4 sm:$0xff]   ;;  %892 = vrot.lane.b32.xlu1 %v3320_v36, %s3362_s26  ;;  %v827_v53 = vrot.slane %v777_v54, 5  ;;  %v1073_v60 = vld [vmem:[#allocation2 + $0x3c] sm:$0x1]  ;;  %v3089_v5 = vrot.slane %v1362_v61, 9  ;;  %v3762_v25 = vsel %vm3676_vm13, %v3088_v1, %v1398_v4 }
  0xb3   : > { %v776_v51 = vld [vmem:[#allocation2 + $0x38] sm:$0xe]  ;;  %1186 = vrot.lane.b32.xlu0 %v3323_v39, %s3363_s27  ;;  %v1118_v57 = vrot.slane %v1073_v60, 5  ;;  %v606_v7 = vld [vmem:[#allocation2 + $0x10] sm:$0xf]  ;;  %v1402_v3 = vrot.slane %v1363_v62, 5 }
  0xb4   : > { %v3053_v35 = vrot.slane %v776_v51, 9  ;;  %v1072_v45 = vld [vmem:[#allocation2 + $0x38] sm:$0xe]  ;;  %v607_v2 = vld [vmem:[#allocation2 + $0x14] sm:$0x1]  ;;  %v650_v22 = vshrl.u32 %v606_v7, 16 }
  0xb5   : > { %v3072_v40 = vrot.slane %v1072_v45, 9  ;;  %v608_v9 = vld [vmem:[#allocation2 + $0x18] sm:$0xf]  ;;  %v609_v31 = vld [vmem:[#allocation2 + $0x1c] sm:$0x1]  ;;  %v653_v13 = vshll.u32 %v606_v7, 16  ;;  %v3766_v6 = vsel %vm3676_vm13, %v3089_v5, %v1402_v3 }
  0xb6   : > { %1188 = vrot.lane.b32.xlu1 %v3322_v8, %s3363_s27  ;;  %v3753_v12 = vsel %vm3676_vm13, %v3053_v35, %v827_v53  ;;  %v659_v17 = vshll.u32 %v607_v2, 16  ;;  %v770_v30 = vld [vmem:[#allocation2 + $0x20] sm:$0xe]  ;;  %v652_v23 = vrot.slane %v650_v22, 4  ;;  %v664_v34 = vshrl.u32 %v608_v9, 16  ;;  %s3373_s26 = smov 56  }
  0xb7   : > { %v3757_v21 = vsel %vm3676_vm13, %v3072_v40, %v1118_v57  ;;  %841 = vrot.lane.b32.xlu0 %v3054_v48, %s3364_s28  ;;  %v667_v33 = vshll.u32 %v608_v9, 16  ;;  %v771_v27 = vld [vmem:[#allocation2 + $0x24] sm:$0x1]  ;;  %v655_v50 = vrot.slane %v653_v13, 5  ;;  %v673_v10 = vshll.u32 %v609_v31, 16 }
  0xb8   : > { %v661_v16 = vrot.slane %v659_v17, 5  ;;  %v772_v32 = vld [vmem:[#allocation2 + $0x28] sm:$0xe]  ;;  %v666_v36 = vrot.slane %v664_v34, 4  ;;  %v773_v42 = vld [vmem:[#allocation2 + $0x2c] sm:$0x1]  ;;  %v3057_v53 = vcombine.low %v3738_v56, %v3753_v12  ;;  %v3077_v44 = vcombine.low %v3757_v21, %v3748_v14 }
  0xb9   : > { %v669_v37 = vrot.slane %v667_v33, 5  ;;  %v3050_v39 = vrot.slane %v770_v30, 9  ;;  %v815_v48 = vrot.slane %v771_v27, 5  ;;  %v656_v51 = vor.u32 %v655_v50, %v652_v23  ;;  %v907_v35 = vld [vmem:[#allocation2 + $0x18] sm:$0xf] }
  0xba   : > { %843 = vrot.lane.b32.xlu1 %v3055_v47, %s3364_s28  ;;  %v675_v54 = vrot.slane %v673_v10, 5  ;;  %v3051_v8 = vrot.slane %v772_v32, 9  ;;  %v819_v52 = vrot.slane %v773_v42, 5  ;;  %v3095_v45 = vcombine.low %v3762_v25, %v3766_v6  ;;  %v908_v40 = vld [vmem:[#allocation2 + $0x1c] sm:$0x1] }
  0xbb   : > { %1136 = vrot.lane.b32.xlu0 %v3074_v55, %s3365_s29  ;;  %v670_v60 = vor.u32 %v669_v37, %v666_v36  ;;  %v909_v47 = vld [vmem:[#allocation2 + $0x20] sm:$0xf]  ;;  %v910_v57 = vld [vmem:[#allocation2 + $0x24] sm:$0x1]  ;;  %v657_v61 = vrot.slane %v656_v51, 4  ;;  %v948_v63 = vshrl.u32 %v907_v35, 16  ;;  %v816_v56 = vsel %vm3676_vm13, %v3050_v39, %v815_v48 }
  0xbc   : > { %v820_v62 = vsel %vm3676_vm13, %v3051_v8, %v819_v52  ;;  %v951_v1 = vshll.u32 %v907_v35, 16  ;;  %v1068_v55 = vld [vmem:[#allocation2 + $0x28] sm:$0xe]  ;;  %v957_v5 = vshll.u32 %v908_v40, 16  ;;  %v962_v7 = vshrl.u32 %v909_v47, 16 }
  0xbd   : > { %v671_v4 = vrot.slane %v670_v60, 4  ;;  %v1069_v14 = vld [vmem:[#allocation2 + $0x2c] sm:$0x1]  ;;  %v662_v3 = vsel %vm3702_vm14, %v657_v61, %v661_v16  ;;  %v950_v2 = vrot.slane %v948_v63, 4  ;;  %v965_v22 = vshll.u32 %v909_v47, 16 }
  0xbe   : > { %1138 = vrot.lane.b32.xlu1 %v3075_v28, %s3365_s29  ;;  %v953_v9 = vrot.slane %v951_v1, 5  ;;  %v1070_v12 = vld [vmem:[#allocation2 + $0x30] sm:$0xe]  ;;  %v3056_v21 = vcombine.low %v816_v56, %v820_v62  ;;  %v959_v31 = vrot.slane %v957_v5, 5  ;;  %v964_v13 = vrot.slane %v962_v7, 4 }
  0xbf   : > { %1432 = vrot.lane.b32.xlu0 %v3094_v24, %s3366_s30  ;;  %v971_v17 = vshll.u32 %v910_v57, 16  ;;  %v1071_v30 = vld [vmem:[#allocation2 + $0x34] sm:$0x1]  ;;  %v676_v25 = vsel %vm3702_vm14, %v671_v4, %v675_v54  ;;  %v967_v38 = vrot.slane %v965_v22, 5  ;;  %v3070_v28 = vrot.slane %v1068_v55, 9 }
  0xc0   : > { %v954_v26 = vor.u32 %v953_v9, %v950_v2  ;;  %v1203_v23 = vld [vmem:[#allocation2 + $0x20] sm:$0xf]  ;;  %v1204_v34 = vld [vmem:[#allocation2 + $0x24] sm:$0x1]  ;;  %v3043_v33 = vcombine.low %v662_v3, %v676_v25  ;;  %v1110_v27 = vrot.slane %v1069_v14, 5  ;;  %v3071_v6 = vrot.slane %v1070_v12, 9 }
  0xc1   : > { %v1114_v50 = vrot.slane %v1071_v30, 5  ;;  %v1205_v16 = vld [vmem:[#allocation2 + $0x28] sm:$0xf]  ;;  %v968_v10 = vor.u32 %v967_v38, %v964_v13  ;;  %v1244_v32 = vshrl.u32 %v1203_v23, 16  ;;  %v1247_v36 = vshll.u32 %v1203_v23, 16 }
  0xc2   : > { %847 = vrot.lane.b32.xlu1 %v3057_v53, %s3364_s28  ;;  %v955_v24 = vrot.slane %v954_v26, 4  ;;  %v1111_v37 = vsel %vm3676_vm13, %v3070_v28, %v1110_v27  ;;  %v1206_v39 = vld [vmem:[#allocation2 + $0x2c] sm:$0x1]  ;;  %v1253_v48 = vshll.u32 %v1204_v34, 16  ;;  %v1258_v51 = vshrl.u32 %v1205_v16, 16 }
  0xc3   : > { %1434 = vrot.lane.b32.xlu0 %v3095_v45, %s3366_s30  ;;  %v1115_v42 = vsel %vm3676_vm13, %v3071_v6, %v1114_v50  ;;  %v604_v54 = vld [vmem:[#allocation2 + $0x8] sm:$0xf]  ;;  %v969_v52 = vrot.slane %v968_v10, 4  ;;  %v973_v35 = vrot.slane %v971_v17, 5  ;;  %v1246_v53 = vrot.slane %v1244_v32, 4 }
  0xc4   : > { %v960_v8 = vsel %vm3702_vm14, %v955_v24, %v959_v31  ;;  %v605_v60 = vld [vmem:[#allocation2 + $0xc] sm:$0x1]  ;;  %v3076_v40 = vcombine.low %v1111_v37, %v1115_v42  ;;  %v1249_v47 = vrot.slane %v1247_v36, 5  ;;  %v1260_v45 = vrot.slane %v1258_v51, 4  ;;  %v610_v61 = vld [vmem:[#allocation2 + $0x20] sm:$0xf] }
  0xc5   : > { %v1261_v57 = vshll.u32 %v1205_v16, 16  ;;  %v974_v62 = vsel %vm3702_vm14, %v969_v52, %v973_v35  ;;  %v1267_v63 = vshll.u32 %v1206_v39, 16  ;;  %v636_v1 = vshrl.u32 %v604_v54, 16  ;;  %v611_v4 = vld [vmem:[#allocation2 + $0x24] sm:$0x1] }
  0xc6   : > { %1142 = vrot.lane.b32.xlu1 %v3077_v44, %s3365_s29  ;;  %v639_v55 = vshll.u32 %v604_v54, 16  ;;  %v1250_v56 = vor.u32 %v1249_v47, %v1246_v53  ;;  %v1255_v5 = vrot.slane %v1253_v48, 5  ;;  %v645_v14 = vshll.u32 %v605_v60, 16  ;;  %v612_v3 = vld [vmem:[#allocation2 + $0x28] sm:$0xf] }
  0xc7   : > { %845 = vrot.lane.b32.xlu0 %v3056_v21, %s3364_s28  ;;  %v1263_v7 = vrot.slane %v1261_v57, 5  ;;  %v3063_v2 = vcombine.low %v960_v8, %v974_v62  ;;  %v638_v9 = vrot.slane %v636_v1, 4  ;;  %v678_v12 = vshrl.u32 %v610_v61, 16  ;;  %v613_v17 = vld [vmem:[#allocation2 + $0x2c] sm:$0x1] }
  0xc8   : > { %v641_v22 = vrot.slane %v639_v55, 5  ;;  %v1251_v31 = vrot.slane %v1250_v56, 4  ;;  %v1269_v13 = vrot.slane %v1267_v63, 5  ;;  %v681_v30 = vshll.u32 %v610_v61, 16  ;;  %v903_v28 = vld [vmem:[#allocation2 + $0x8] sm:$0xf] }
  0xc9   : > { %v1264_v44 = vor.u32 %v1263_v7, %v1260_v45  ;;  %v680_v26 = vrot.slane %v678_v12, 4  ;;  %v687_v21 = vshll.u32 %v611_v4, 16  ;;  %v692_v38 = vshrl.u32 %v612_v3, 16  ;;  %v904_v37 = vld [vmem:[#allocation2 + $0xc] sm:$0x1] }
  0xca   : > { %747 = vrot.lane.b32.xlu1 %v3043_v33, %s3367_s6  ;;  %v642_v25 = vor.u32 %v641_v22, %v638_v9  ;;  %v647_v34 = vrot.slane %v645_v14, 5  ;;  %v683_v27 = vrot.slane %v681_v30, 5  ;;  %v695_v6 = vshll.u32 %v612_v3, 16  ;;  %v905_v42 = vld [vmem:[#allocation2 + $0x10] sm:$0xf] }
  0xcb   : > { %1140 = vrot.lane.b32.xlu0 %v3076_v40, %s3365_s29  ;;  %v1265_v23 = vrot.slane %v1264_v44, 4  ;;  %v1256_v50 = vsel %vm3702_vm14, %v1251_v31, %v1255_v5  ;;  %v694_v24 = vrot.slane %v692_v38, 4  ;;  %v701_v10 = vshll.u32 %v613_v17, 16  ;;  %v906_v8 = vld [vmem:[#allocation2 + $0x14] sm:$0x1]  ;;  %v3327_v5 = vld [vmem:[%s4330_s1] sm:$0xff]  }
  0xcc   : > { %v643_v16 = vrot.slane %v642_v25, 4  ;;  %v684_v32 = vor.u32 %v683_v27, %v680_v26  ;;  %v697_v36 = vrot.slane %v695_v6, 5  ;;  %v920_v39 = vshrl.u32 %v903_v28, 16  ;;  %v614_v35 = vld [vmem:[#allocation2 + $0x30] sm:$0xf]  ;;  %3220 = vmatprep.subr.bf16.mxu0 %v3327_v5 }
  0xcd   : > { %v1270_v33 = vsel %vm3702_vm14, %v1265_v23, %v1269_v13  ;;  %v689_v54 = vrot.slane %v687_v21, 5  ;;  %v923_v52 = vshll.u32 %v903_v28, 16  ;;  %v929_v57 = vshll.u32 %v904_v37, 16  ;;  %v615_v63 = vld [vmem:[#allocation2 + $0x34] sm:$0x1]  ;;  %3221 = vmatpush3.bf16.msra.mxu0 %v3327_v5 }
  0xce   : > { %1045 = vrot.lane.b32.xlu1 %v3063_v2, %s3368_s7  ;;  %v3083_v48 = vcombine.low %v1256_v50, %v1270_v33  ;;  %v648_v51 = vsel %vm3702_vm14, %v643_v16, %v647_v34  ;;  %v685_v60 = vrot.slane %v684_v32, 4  ;;  %v698_v40 = vor.u32 %v697_v36, %v694_v24  ;;  %v616_v14 = vld [vmem:[#allocation2 + $0x38] sm:$0xf]  ;;  %v617_v3 = vld [vmem:[#allocation2 + $0x3c] sm:$0x1] }
  0xcf   : > { %v3042_v53 = vcombine.low %v634_v20, %v648_v51  ;;  %v922_v47 = vrot.slane %v920_v39, 4  ;;  %v925_v45 = vrot.slane %v923_v52, 5  ;;  %v934_v61 = vshrl.u32 %v905_v42, 16  ;;  %v1199_v31 = vld [vmem:[#allocation2 + $0x10] sm:$0xf] }
  0xd0   : > { %v937_v62 = vshll.u32 %v905_v42, 16  ;;  %v699_v1 = vrot.slane %v698_v40, 4  ;;  %v703_v55 = vrot.slane %v701_v10, 5  ;;  %v943_v4 = vshll.u32 %v906_v8, 16  ;;  %v1200_v28 = vld [vmem:[#allocation2 + $0x14] sm:$0x1] }
  0xd1   : > { %745 = vrot.lane.b32.xlu0 %v3042_v53, %s3367_s6  ;;  %v706_v56 = vshrl.u32 %v614_v35, 16  ;;  %v690_v15 = vsel %vm3702_vm14, %v685_v60, %v689_v54  ;;  %v926_v58 = vor.u32 %v925_v45, %v922_v47  ;;  %v936_v20 = vrot.slane %v934_v61, 4  ;;  %v1201_v6 = vld [vmem:[#allocation2 + $0x18] sm:$0xf]  ;;  %v1202_v32 = vld [vmem:[#allocation2 + $0x1c] sm:$0x1] }
  0xd2   : > { %1341 = vrot.lane.b32.xlu1 %v3083_v48, %s3369_s10  ;;  %v939_v7 = vrot.slane %v937_v62, 5  ;;  %v704_v2 = vsel %vm3702_vm14, %v699_v1, %v703_v55  ;;  %v931_v9 = vrot.slane %v929_v57, 5  ;;  %v709_v12 = vshll.u32 %v614_v35, 16  ;;  %v915_v48 = vld [vmem:[#allocation2 + $0x38] sm:$0xf]  ;;  %v3329_v1 = vld [vmem:[%s4330_s1 + $0x8] sm:$0xff]  }
  0xd3   : > { %v708_v22 = vrot.slane %v706_v56, 4  ;;  %v3044_v44 = vcombine.low %v690_v15, %v704_v2  ;;  %v927_v13 = vrot.slane %v926_v58, 4  ;;  %v715_v30 = vshll.u32 %v615_v63, 16  ;;  %v916_v35 = vld [vmem:[#allocation2 + $0x3c] sm:$0x1]  ;;  %3222 = vmatprep.subr.bf16.mxu0 %v3329_v1 }
  0xd4   : > { %v940_v17 = vor.u32 %v939_v7, %v936_v20  ;;  %v945_v25 = vrot.slane %v943_v4, 5  ;;  %v711_v26 = vrot.slane %v709_v12, 5  ;;  %v720_v21 = vshrl.u32 %v616_v14, 16  ;;  %v917_v45 = vld [vmem:[#allocation2 + $0x40] sm:$0xf]  ;;  %3223 = vmatpush3.bf16.msra.mxu0 %v3329_v1 }
  0xd5   : > { %v723_v38 = vshll.u32 %v616_v14, 16  ;;  %v932_v23 = vsel %vm3702_vm14, %v927_v13, %v931_v9  ;;  %v729_v27 = vshll.u32 %v617_v3, 16  ;;  %v1216_v50 = vshrl.u32 %v1199_v31, 16  ;;  %v918_v5 = vld [vmem:[#allocation2 + $0x44] sm:$0x1] }
  0xd6   : > { %749 = vrot.lane.b32.xlu1 %v3044_v44, %s3367_s6  ;;  %v941_v34 = vrot.slane %v940_v17, 4  ;;  %v712_v16 = vor.u32 %v711_v26, %v708_v22  ;;  %v717_v24 = vrot.slane %v715_v30, 5  ;;  %v722_v10 = vrot.slane %v720_v21, 4  ;;  %v911_v3 = vld [vmem:[#allocation2 + $0x28] sm:$0xf] }
  0xd7   : > { %v725_v33 = vrot.slane %v723_v38, 5  ;;  %v1218_v37 = vrot.slane %v1216_v50, 4  ;;  %v1219_v42 = vshll.u32 %v1199_v31, 16  ;;  %v1225_v39 = vshll.u32 %v1200_v28, 16  ;;  %v912_v31 = vld [vmem:[#allocation2 + $0x2c] sm:$0x1] }
  0xd8   : > { %v946_v36 = vsel %vm3702_vm14, %v941_v34, %v945_v25  ;;  %v713_v54 = vrot.slane %v712_v16, 4  ;;  %v1230_v52 = vshrl.u32 %v1201_v6, 16  ;;  %v731_v53 = vrot.slane %v729_v27, 5  ;;  %v913_v44 = vld [vmem:[#allocation2 + $0x30] sm:$0xf] }
  0xd9   : > { %v3062_v51 = vcombine.low %v932_v23, %v946_v36  ;;  %v726_v8 = vor.u32 %v725_v33, %v722_v10  ;;  %v1221_v60 = vrot.slane %v1219_v42, 5  ;;  %v1227_v40 = vrot.slane %v1225_v39, 5  ;;  %v914_v26 = vld [vmem:[#allocation2 + $0x34] sm:$0x1]  ;;  %v1211_v34 = vld [vmem:[#allocation2 + $0x40] sm:$0xf] }
  0xda   : > { %v1233_v47 = vshll.u32 %v1201_v6, 16  ;;  %v1232_v61 = vrot.slane %v1230_v52, 4  ;;  %v1239_v62 = vshll.u32 %v1202_v32, 16  ;;  %v1004_v63 = vshrl.u32 %v915_v48, 16  ;;  %v1207_v10 = vld [vmem:[#allocation2 + $0x30] sm:$0xf] }
  0xdb   : > { %1043 = vrot.lane.b32.xlu0 %v3062_v51, %s3368_s7  ;;  %v727_v57 = vrot.slane %v726_v8, 4  ;;  %v718_v55 = vsel %vm3702_vm14, %v713_v54, %v717_v24  ;;  %v1222_v4 = vor.u32 %v1221_v60, %v1218_v37  ;;  %v1007_v15 = vshll.u32 %v915_v48, 16  ;;  %v1212_v24 = vld [vmem:[#allocation2 + $0x44] sm:$0x1]  ;;  %v3324_v33 = vld [vmem:[#allocation2 + $0x10] ss:$8 sps:$4 sm:$0xff]  }
  0xdc   : > { %v1235_v56 = vrot.slane %v1233_v47, 5  ;;  %v1006_v20 = vrot.slane %v1004_v63, 4  ;;  %v1013_v7 = vshll.u32 %v916_v35, 16  ;;  %v1018_v14 = vshrl.u32 %v917_v45, 16  ;;  %599 = vst.msk [vmem:[#allocation3 + $0x8] sm:$0xff] %vm597_vm15, %v3324_v33 }
  0xdd   : > { %v732_v58 = vsel %vm3702_vm14, %v727_v57, %v731_v53  ;;  %v1223_v9 = vrot.slane %v1222_v4, 4  ;;  %v1009_v12 = vrot.slane %v1007_v15, 5  ;;  %v1241_v13 = vrot.slane %v1239_v62, 5  ;;  %v3325_v8 = vld [vmem:[#allocation2] ss:$8 sps:$4 sm:$0xff]  }
  0xde   : > { %v3045_v2 = vcombine.low %v718_v55, %v732_v58  ;;  %v1236_v22 = vor.u32 %v1235_v56, %v1232_v61  ;;  %v1020_v17 = vrot.slane %v1018_v14, 4  ;;  %v1021_v30 = vshll.u32 %v917_v45, 16  ;;  %v1209_v61 = vld [vmem:[#allocation2 + $0x38] sm:$0xf]  ;;  %598 = vst.msk [vmem:[#allocation3] sm:$0xff] %vm597_vm15, %v3325_v8 }
  0xdf   : > { %v1027_v25 = vshll.u32 %v918_v5, 16  ;;  %v1228_v21 = vsel %vm3702_vm14, %v1223_v9, %v1227_v40  ;;  %v1010_v28 = vor.u32 %v1009_v12, %v1006_v20  ;;  %v976_v23 = vshrl.u32 %v911_v3, 16  ;;  %v3326_v62 = vld [vmem:[#allocation2 + $0x20] ss:$8 sps:$4 sm:$0xff]   ;;  %v1208_v4 = vld [vmem:[#allocation2 + $0x34] sm:$0x1] }
  0xe0   : > { %751 = vrot.lane.b32.xlu1 %v3045_v2, %s3367_s6  ;;  %v1237_v38 = vrot.slane %v1236_v22, 4  ;;  %v1015_v27 = vrot.slane %v1013_v7, 5  ;;  %v1023_v6 = vrot.slane %v1021_v30, 5  ;;  %v979_v16 = vshll.u32 %v911_v3, 16  ;;  %600 = vst.msk [vmem:[#allocation3 + $0x10] sm:$0xff] %vm597_vm15, %v3326_v62 }
  0xe1   : > { %v1029_v50 = vrot.slane %v1027_v25, 5  ;;  %v1011_v36 = vrot.slane %v1010_v28, 4  ;;  %v978_v37 = vrot.slane %v976_v23, 4  ;;  %v990_v42 = vshrl.u32 %v913_v44, 16  ;;  %v1368_v9 = vld [vmem:[#allocation2 + $0x40] sm:$0xe] }
  0xe2   : > { %v1242_v32 = vsel %vm3702_vm14, %v1237_v38, %v1241_v13  ;;  %v1024_v48 = vor.u32 %v1023_v6, %v1020_v17  ;;  %v981_v51 = vrot.slane %v979_v16, 5  ;;  %v985_v54 = vshll.u32 %v912_v31, 16  ;;  %v3328_v22 = vld [vmem:[#allocation2 + $0x30] ss:$8 sps:$4 sm:$0xff]  }
  0xe3   : > { %v3082_v39 = vcombine.low %v1228_v21, %v1242_v32  ;;  %v1016_v52 = vsel %vm3702_vm14, %v1011_v36, %v1015_v27  ;;  %v992_v35 = vrot.slane %v990_v42, 4  ;;  %v993_v53 = vshll.u32 %v913_v44, 16  ;;  %v1210_v44 = vld [vmem:[#allocation2 + $0x3c] sm:$0x1]  ;;  %601 = vst.msk [vmem:[#allocation3 + $0x18] sm:$0xff] %vm597_vm15, %v3328_v22 }
  0xe4   : > { %v999_v60 = vshll.u32 %v914_v26, 16  ;;  %v1025_v40 = vrot.slane %v1024_v48, 4  ;;  %v982_v47 = vor.u32 %v981_v51, %v978_v37  ;;  %v1300_v45 = vshrl.u32 %v1211_v34, 16  ;;  %v1369_v26 = vld [vmem:[#allocation2 + $0x44] sm:$0x1] }
  0xe5   : > { %1339 = vrot.lane.b32.xlu0 %v3082_v39, %s3369_s10  ;;  %v1303_v57 = vshll.u32 %v1211_v34, 16  ;;  %v995_v63 = vrot.slane %v993_v53, 5  ;;  %v1309_v1 = vshll.u32 %v1212_v24, 16  ;;  %v1326_v55 = vsel %vm3702_vm14, %v3630_v43, %v3646_v41  ;;  %v1366_v32 = vld [vmem:[#allocation2 + $0x38] sm:$0xe] }
  0xe6   : > { %v1272_v56 = vshrl.u32 %v1207_v10, 16  ;;  %v1030_v5 = vsel %vm3702_vm14, %v1025_v40, %v1029_v50  ;;  %v983_v15 = vrot.slane %v982_v47, 4  ;;  %v1302_v58 = vrot.slane %v1300_v45, 4  ;;  %v1367_v36 = vld [vmem:[#allocation2 + $0x3c] sm:$0x1] }
  0xe7   : > { %v1305_v20 = vrot.slane %v1303_v57, 5  ;;  %v3065_v7 = vcombine.low %v1016_v52, %v1030_v5  ;;  %v987_v14 = vrot.slane %v985_v54, 5  ;;  %v996_v3 = vor.u32 %v995_v63, %v992_v35  ;;  %v1364_v39 = vld [vmem:[#allocation2 + $0x30] sm:$0xe]  ;;  %v1365_v52 = vld [vmem:[#allocation2 + $0x34] sm:$0x1] }
  0xe8   : > { %v1001_v2 = vrot.slane %v999_v60, 5  ;;  %v1311_v31 = vrot.slane %v1309_v1, 5  ;;  %v1274_v43 = vrot.slane %v1272_v56, 4  ;;  %v1275_v41 = vshll.u32 %v1207_v10, 16 }
  0xe9   : > { %v1306_v12 = vor.u32 %v1305_v20, %v1302_v58  ;;  %1049 = vrot.lane.b32.xlu1 %v3065_v7, %s3368_s7  ;;  %v988_v13 = vsel %vm3702_vm14, %v983_v15, %v987_v14  ;;  %v997_v17 = vrot.slane %v996_v3, 4  ;;  %v1286_v30 = vshrl.u32 %v1209_v61, 16  ;;  %v3330_v45 = vld [vmem:[%s4330_s1 + $0x10] ss:$0 sps:$4 sm:$0x33]  }
  0xea   : > { %v1289_v25 = vshll.u32 %v1209_v61, 16  ;;  %v1277_v38 = vrot.slane %v1275_v41, 5  ;;  %v1281_v28 = vshll.u32 %v1208_v4, 16  ;;  %v3092_v23 = vrot.slane %v1368_v9, 9  ;;  %3252 = vmatprep.subr.msk.bf16.mxu0 %vm1493_vm0, %v3330_v45 }
  0xeb   : > { %v1307_v21 = vrot.slane %v1306_v12, 4  ;;  %v1002_v34 = vsel %vm3702_vm14, %v997_v17, %v1001_v2  ;;  %v1288_v27 = vrot.slane %v1286_v30, 4  ;;  %v1295_v50 = vshll.u32 %v1210_v44, 16 }
  0xec   : > { %v1291_v6 = vrot.slane %v1289_v25, 5  ;;  %v3064_v16 = vcombine.low %v988_v13, %v1002_v34  ;;  %v1278_v10 = vor.u32 %v1277_v38, %v1274_v43  ;;  %v1414_v33 = vrot.slane %v1369_v26, 5 }
  0xed   : > { %v1312_v24 = vsel %vm3702_vm14, %v1307_v21, %v1311_v31  ;;  %v1283_v51 = vrot.slane %v1281_v28, 5  ;;  %v1419_v8 = vsel %vm3676_vm13, %v3093_v46, %v1418_v29  ;;  %v1297_v53 = vrot.slane %v1295_v50, 5 }
  0xee   : > { %v3085_v37 = vcombine.low %v1312_v24, %v1326_v55  ;;  %v1292_v42 = vor.u32 %v1291_v6, %v1288_v27  ;;  %1047 = vrot.lane.b32.xlu0 %v3064_v16, %s3368_s7  ;;  %v1279_v48 = vrot.slane %v1278_v10, 4  ;;  %v1415_v54 = vsel %vm3676_vm13, %v3092_v23, %v1414_v33 }
  0xef   : > { %v3091_v60 = vrot.slane %v1366_v32, 9  ;;  %v1410_v40 = vrot.slane %v1367_v36, 5  ;;  %v3090_v47 = vrot.slane %v1364_v39, 9  ;;  %v3097_v57 = vcombine.low %v1415_v54, %v1419_v8  ;;  %v1653_v36 = vld [vmem:[#allocation4 + $0x8] sm:$0x1] }
  0xf0   : > { %1345 = vrot.lane.b32.xlu1 %v3085_v37, %s3369_s10  ;;  %v1293_v35 = vrot.slane %v1292_v42, 4  ;;  %v1284_v19 = vsel %vm3702_vm14, %v1279_v48, %v1283_v51  ;;  %v1406_v46 = vrot.slane %v1365_v52, 5  ;;  %v1495_v62 = vsel %vm1493_vm0, %v3330_v45, 0  ;;  %v1656_v37 = vld [vmem:[#allocation4 + $0x10] sm:$0x1]  ;;  %vm3935_vm0 = vmand %vm1643_vm2, %vm370_vm4 }
  0xf1   : > { %v1411_v61 = vsel %vm3676_vm13, %v3091_v60, %v1410_v40  ;;  %3225 = vmatpush3.bf16.msra.mxu0 %v1495_v62  ;;  %vm898_vm5 = vcmask 130144   ;;  %vm1148_vm8 = vcmask 195744   ;;  %vm1641_vm15 = vcmask 60416   ;;  %v1659_v48 = vld [vmem:[#allocation4 + $0x18] sm:$0x1] }
  0xf2   : > { %v1298_v18 = vsel %vm3702_vm14, %v1293_v35, %v1297_v53  ;;  %v1407_v63 = vsel %vm3676_vm13, %v3090_v47, %v1406_v46  ;;  %1642 = vst.msk [vmem:[#allocation4] sm:$0xf] %vm1641_vm15, %v3360_v0  ;;  %1646 = vst.msk [vmem:[#allocation4 + $0x48] sm:$0xf] %vm1641_vm15, %v3360_v0  ;;  %v1654_v42 = vsel %vm3460_vm7, 0, %v1653_v36  ;;  %v1657_v39 = vsel %vm3460_vm7, 0, %v1656_v37 }
  0xf3   : > { %v3084_v29 = vcombine.low %v1284_v19, %v1298_v18  ;;  %v3096_v1 = vcombine.low %v1407_v63, %v1411_v61  ;;  %v1662_v51 = vld [vmem:[#allocation4 + $0x20] sm:$0x1]  ;;  %1655 = vst [vmem:[#allocation4 + $0x8] sm:$0x1] %v1654_v42  ;;  %1658 = vst [vmem:[#allocation4 + $0x10] sm:$0x1] %v1657_v39 }
  0xf4   : > { %1438 = vrot.lane.b32.xlu1 %v3097_v57, %s3366_s30  ;;  %v1660_v8 = vsel %vm3460_vm7, 0, %v1659_v48  ;;  %v1663_v0 = vsel %vm3460_vm7, 0, %v1662_v51  ;;  %v1665_v52 = vld [vmem:[#allocation4 + $0x28] sm:$0x1]  ;;  %v1668_v35 = vld [vmem:[#allocation4 + $0x30] sm:$0x1] }
  0xf5   : > { %1343 = vrot.lane.b32.xlu0 %v3084_v29, %s3369_s10  ;;  %1661 = vst [vmem:[#allocation4 + $0x18] sm:$0x1] %v1660_v8  ;;  %1664 = vst [vmem:[#allocation4 + $0x20] sm:$0x1] %v1663_v0  ;;  %v1666_v53 = vsel %vm3460_vm7, 0, %v1665_v52  ;;  %v1669_v60 = vsel %vm3460_vm7, 0, %v1668_v35 }
  0xf6   : > { %v1671_v40 = vld [vmem:[#allocation4 + $0x38] sm:$0x1]  ;;  %v1674_v47 = vld [vmem:[#allocation4 + $0x40] sm:$0x1]  ;;  %1667 = vst [vmem:[#allocation4 + $0x28] sm:$0x1] %v1666_v53 }
  0xf7   : > { %1670 = vst [vmem:[#allocation4 + $0x30] sm:$0x1] %v1669_v60  ;;  %v1672_v45 = vsel %vm3460_vm7, 0, %v1671_v40  ;;  %v1675_v19 = vsel %vm3460_vm7, 0, %v1674_v47  ;;  %v1684_v18 = vld [vmem:[#allocation4 + $0xc] sm:$0x1] }
  0xf8   : > { %v1687_v57 = vld [vmem:[#allocation4 + $0x14] sm:$0x1]  ;;  %1673 = vst [vmem:[#allocation4 + $0x38] sm:$0x1] %v1672_v45  ;;  %1676 = vst [vmem:[#allocation4 + $0x40] sm:$0x1] %v1675_v19 }
  0xf9   : > { %1436 = vrot.lane.b32.xlu0 %v3096_v1, %s3366_s30  ;;  %v1685_v46 = vsel %vm3935_vm0, 0, %v1684_v18  ;;  %v1688_v29 = vsel %vm3935_vm0, 0, %v1687_v57  ;;  %v1690_v61 = vld [vmem:[#allocation4 + $0x1c] sm:$0x1]  ;;  %v1693_v62 = vld [vmem:[#allocation4 + $0x24] sm:$0x1] }
  0xfa   : > { %1686 = vst [vmem:[#allocation4 + $0xc] sm:$0x1] %v1685_v46  ;;  %1689 = vst [vmem:[#allocation4 + $0x14] sm:$0x1] %v1688_v29  ;;  %v1691_v63 = vsel %vm3935_vm0, 0, %v1690_v61  ;;  %v1694_v1 = vsel %vm3935_vm0, 0, %v1693_v62 }
  0xfb   : > { %1692 = vst [vmem:[#allocation4 + $0x1c] sm:$0x1] %v1691_v63  ;;  %1695 = vst [vmem:[#allocation4 + $0x24] sm:$0x1] %v1694_v1  ;;  %vm1562_vm2 = vcmask 64512   ;;  %s3187_s10 = sshll.u32 %s4353_s19, 6 }
  0xfc   : > { %s224_s13 = scalar_lea.vmem %s4334_s5, %s3187_s10 }
 0x113   : > { %v889_v4 = vpop.permute.xlu1 %888 }
 0x114   : > { %v887_v55 = vpop.permute.xlu0 %886 }
 0x118   : > { %v1183_v56 = vpop.permute.xlu0 %1182 }
 0x11e   : > { %v1185_v5 = vpop.permute.xlu1 %1184 }
 0x11f   : > { %v891_v15 = vpop.permute.xlu0 %890 }
 0x124   : > { %v893_v58 = vpop.permute.xlu1 %892 }
 0x125   : > { %v3886_v20 = vpop.permute.xlu0 %1186 }
 0x128   : > { %v1189_v7 = vpop.permute.xlu1 %1188 }
 0x129   : > { %v842_v14 = vpop.permute.xlu0 %841 }
 0x12c   : > { %v844_v3 = vpop.permute.xlu1 %843 }
 0x12d   : > { %v1137_v2 = vpop.permute.xlu0 %1136 }
 0x130   : > { %v1139_v9 = vpop.permute.xlu1 %1138 }
 0x131   : > { %v1433_v22 = vpop.permute.xlu0 %1432 }
 0x134   : > { %v848_v12 = vpop.permute.xlu1 %847 }
 0x135   : > { %v1435_v31 = vpop.permute.xlu0 %1434 }
 0x138   : > { %v1143_v44 = vpop.permute.xlu1 %1142 }
 0x139   : > { %v846_v43 = vpop.permute.xlu0 %845 }
 0x13c   : > { %v748_v41 = vpop.permute.xlu1 %747 }
 0x13d   : > { %759 = vst.msk [vmem:[#allocation3 + $0x8] sm:$0xff] %vm757_vm1, %v748_v41  ;;  %v1141_v13 = vpop.permute.xlu0 %1140 }
 0x13e   : > { %855 = vst.msk [vmem:[#allocation3 + $0x8] sm:$0xff] %vm853_vm3, %v844_v3 }
 0x13f   : > { %900 = vst.msk [vmem:[#allocation3 + $0x8] sm:$0xff] %vm898_vm5, %v889_v4  ;;  %v1699_v4 = vld [vmem:[#allocation4 + $0x34] sm:$0x1] }
 0x140   : > { %v1046_v17 = vpop.permute.xlu1 %1045 }
 0x141   : > { %1057 = vst.msk [vmem:[#allocation3 + $0x8] sm:$0xff] %vm1055_vm6, %v1046_v17 }
 0x142   : > { %1150 = vst.msk [vmem:[#allocation3 + $0x8] sm:$0xff] %vm1148_vm8, %v1139_v9  ;;  %v3098_v9 = vld [vmem:[%s4331_s2] ss:$0 sm:$0xff] }
 0x143   : > { %1196 = vst.msk [vmem:[#allocation3 + $0x8] sm:$0xff] %vm1194_vm9, %v1185_v5  ;;  %v746_v30 = vpop.permute.xlu0 %745  ;;  %v1700_v5 = vsel %vm3935_vm0, 0, %v1699_v4 }
 0x144   : > { %v1342_v25 = vpop.permute.xlu1 %1341  ;;  %758 = vst.msk [vmem:[#allocation3] sm:$0xff] %vm757_vm1, %v746_v30  ;;  %1701 = vst [vmem:[#allocation4 + $0x34] sm:$0x1] %v1700_v5 }
 0x145   : > { %1353 = vst.msk [vmem:[#allocation3 + $0x8] sm:$0xff] %vm1351_vm10, %v1342_v25 }
 0x146   : > { %854 = vst.msk [vmem:[#allocation3] sm:$0xff] %vm853_vm3, %v842_v14 }
 0x147   : > { %1446 = vst.msk [vmem:[#allocation3 + $0x8] sm:$0xff] %vm1444_vm11, %v1435_v31 }
 0x148   : > { %899 = vst.msk [vmem:[#allocation3] sm:$0xff] %vm898_vm5, %v887_v55  ;;  %v750_v26 = vpop.permute.xlu1 %749  ;;  %v1696_v55 = vld [vmem:[#allocation4 + $0x2c] sm:$0x1] }
 0x149   : > { %760 = vst.msk [vmem:[#allocation3 + $0x10] sm:$0xff] %vm757_vm1, %v750_v26 }
 0x14a   : > { %856 = vst.msk [vmem:[#allocation3 + $0x10] sm:$0xff] %vm853_vm3, %v846_v43 }
 0x14b   : > { %901 = vst.msk [vmem:[#allocation3 + $0x10] sm:$0xff] %vm898_vm5, %v891_v15  ;;  %v1702_v15 = vld [vmem:[#allocation4 + $0x3c] sm:$0x1] }
 0x14d   : > { %v1044_v21 = vpop.permute.xlu0 %1043 }
 0x14e   : > { %1056 = vst.msk [vmem:[#allocation3] sm:$0xff] %vm1055_vm6, %v1044_v21  ;;  %v1450_v6 = vld [vmem:[#allocation3 + $0x8] sm:$0xff]  ;;  %v1681_v21 = vld [vmem:[#allocation4 + $0x4] sm:$0x1] }
 0x14f   : > { %1149 = vst.msk [vmem:[#allocation3] sm:$0xff] %vm1148_vm8, %v1137_v2  ;;  %v1677_v2 = vld [vmem:[#allocation4 + $0x48] sm:$0x1] }
 0x150   : > { %1195 = vst.msk [vmem:[#allocation3] sm:$0xff] %vm1194_vm9, %v1183_v56  ;;  %v1697_v56 = vsel %vm3935_vm0, 0, %v1696_v55 }
 0x151   : > { %1698 = vst [vmem:[#allocation4 + $0x2c] sm:$0x1] %v1697_v56 }
 0x152   : > { %v752_v38 = vpop.permute.xlu1 %751 }
 0x153   : > { %761 = vst.msk [vmem:[#allocation3 + $0x18] sm:$0xff] %vm757_vm1, %v752_v38  ;;  %vm4018_vm1 = vmand %vm1641_vm15, %vm370_vm4  ;;  %vm2811_vm4 = vcmask 1043456  }
 0x154   : > { %857 = vst.msk [vmem:[#allocation3 + $0x18] sm:$0xff] %vm853_vm3, %v848_v12  ;;  %vm2357_vm3 = vcmask 326912  }
 0x155   : > { %902 = vst.msk [vmem:[#allocation3 + $0x18] sm:$0xff] %vm898_vm5, %v893_v58  ;;  %v1705_v58 = vld [vmem:[#allocation4 + $0x44] sm:$0x1]  ;;  %vm2450_vm5 = vcmask 392512  }
 0x156   : > { %v1706_v14 = vsel %vm3935_vm0, 0, %v1705_v58 }
 0x157   : > { %v1340_v28 = vpop.permute.xlu0 %1339  ;;  %1707 = vst [vmem:[#allocation4 + $0x44] sm:$0x1] %v1706_v14 }
 0x158   : > { %1352 = vst.msk [vmem:[#allocation3] sm:$0xff] %vm1351_vm10, %v1340_v28  ;;  %v1682_v28 = vsel %vm3935_vm0, 0, %v1681_v21 }
 0x159   : > { %1445 = vst.msk [vmem:[#allocation3] sm:$0xff] %vm1444_vm11, %v1433_v22  ;;  %v1678_v22 = vsel %vm3460_vm7, 0, %v1677_v2  ;;  %1683 = vst [vmem:[#allocation4 + $0x4] sm:$0x1] %v1682_v28 }
 0x15a   : > { %1679 = vst [vmem:[#allocation4 + $0x48] sm:$0x1] %v1678_v22 }
 0x15b   : > { %v1050_v23 = vpop.permute.xlu1 %1049 }
 0x15c   : > { %1059 = vst.msk [vmem:[#allocation3 + $0x18] sm:$0xff] %vm1055_vm6, %v1050_v23 }
 0x15d   : > { %1152 = vst.msk [vmem:[#allocation3 + $0x18] sm:$0xff] %vm1148_vm8, %v1143_v44 }
 0x15e   : > { %1198 = vst.msk [vmem:[#allocation3 + $0x18] sm:$0xff] %vm1194_vm9, %v1189_v7  ;;  %v1703_v7 = vsel %vm3935_vm0, 0, %v1702_v15  ;;  %v1708_v15 = vld [vmem:[#allocation4 + $0x4c] sm:$0x1] }
 0x15f   : > { %1704 = vst [vmem:[#allocation4 + $0x3c] sm:$0x1] %v1703_v7 }
 0x160   : > { %v1449_v34 = vld [vmem:[#allocation3] sm:$0xff]  ;;  %v1048_v27 = vpop.permute.xlu0 %1047 }
 0x161   : > { %3226 = vmatprep.mubr.msk.bf16.mxu0 %vm1480_vm12, %v1449_v34  ;;  %1058 = vst.msk [vmem:[#allocation3 + $0x10] sm:$0xff] %vm1055_vm6, %v1048_v27  ;;  %vm2496_vm6 = vcmask 458112  }
 0x162   : > { %v1346_v50 = vpop.permute.xlu1 %1345  ;;  %3227 = vmatmul.mubr.msk.bf16.vlgmr.msra.gmra.mrb[0].mxu0 %vm1480_vm12, %v1450_v6  ;;  %1151 = vst.msk [vmem:[#allocation3 + $0x10] sm:$0xff] %vm1148_vm8, %v1141_v13  ;;  %vm2653_vm8 = vcmask 523712  }
 0x163   : > { %1355 = vst.msk [vmem:[#allocation3 + $0x18] sm:$0xff] %vm1351_vm10, %v1346_v50 }
 0x164   : > { %1197 = vst.msk [vmem:[#allocation3 + $0x10] sm:$0xff] %vm1194_vm9, %v3886_v20  ;;  %v1650_v20 = vld [vmem:[#allocation4] sm:$0x1]  ;;  %vm2746_vm9 = vcmask 589312  }
 0x165   : > { %v1651_v3 = vsel %vm3460_vm7, 0, %v1650_v20 }
 0x166   : > { %v1439_v16 = vpop.permute.xlu1 %1438  ;;  %1652 = vst [vmem:[#allocation4] sm:$0x1] %v1651_v3 }
 0x167   : > { %v1344_v24 = vpop.permute.xlu0 %1343  ;;  %1448 = vst.msk [vmem:[#allocation3 + $0x18] sm:$0xff] %vm1444_vm11, %v1439_v16 }
 0x168   : > { %1354 = vst.msk [vmem:[#allocation3 + $0x10] sm:$0xff] %vm1351_vm10, %v1344_v24  ;;  %vm2798_vm10 = vcmask 588800  }
 0x16b   : > { %v1437_v10 = vpop.permute.xlu0 %1436 }
 0x16c   : > { %1447 = vst.msk [vmem:[#allocation3 + $0x10] sm:$0xff] %vm1444_vm11, %v1437_v10 }
 0x16e   : > { %v1452_v33 = vld [vmem:[#allocation3 + $0x18] sm:$0xff] }
 0x173   : > { %v1451_v32 = vld [vmem:[#allocation3 + $0x10] sm:$0xff] }
 0x174   : > { %3230 = vmatprep.mubr.msk.bf16.mxu0 %vm1480_vm12, %v1451_v32 }
 0x175   : > { %3231 = vmatmul.mubr.msk.bf16.gmra.mrb[4].mxu0 %vm1480_vm12, %v1452_v33 }
 0x235   : > { %v3228_v12 = vpop.f32.mrb[0].mxu0 }
 0x236   : > { %v1531_v31 = vpop.f32.mrb[1].mxu0  ;;  %v1540_v13 = vadd.f32 %v3228_v12, %v3098_v9 }
 0x237   : > { %v1532_v44 = vadd.f32 %v3098_v9, %v1531_v31  ;;  %v3229_v43 = vpop.f32.mrb[2].mxu0 }
 0x238   : > { %v1534_v41 = vpop.f32.mrb[3].mxu0  ;;  %v1543_v25 = vadd.f32 %v3229_v43, %v3098_v9  ;;  %v1566_v23 = vsel %vm1562_vm2, %v1540_v13, 0.0 }
 0x239   : > { %v1535_v17 = vadd.f32 %v3098_v9, %v1534_v41  ;;  %v1563_v30 = vsel %vm1562_vm2, %v1532_v44, 0.0 }
 0x23a   : > { %v1568_v27 = vsel %vm1562_vm2, %v1543_v25, 0.0 }
 0x23b   : > { %v1564_v26 = vsel %vm1562_vm2, %v1535_v17, 0.0 }
 0x23c   : > { %v1565_v38 = vadd.f32 %v1564_v26, %v1563_v30 }
 0x23e   : > { %v1567_v34 = vadd.f32 %v1566_v23, %v1565_v38 }
 0x240   : > { %v1569_v6 = vadd.f32 %v1568_v27, %v1567_v34 }
 0x248   : > { %v3232_v50 = vpop.f32.mrb[4].mxu0 }
 0x249   : > { %v1547_v16 = vpop.f32.mrb[5].mxu0  ;;  %v1556_v32 = vadd.f32 %v3232_v50, %v3098_v9 }
 0x24a   : > { %v1548_v24 = vadd.f32 %v3098_v9, %v1547_v16  ;;  %v3233_v10 = vpop.f32.mrb[6].mxu0 }
 0x24b   : > { %v1550_v33 = vpop.f32.mrb[7].mxu0  ;;  %v1559_v39 = vadd.f32 %v3233_v10, %v3098_v9  ;;  %v1574_v8 = vsel %vm1562_vm2, %v1556_v32, 0.0  ;;  %v1910_v10 = vld [vmem:[#allocation4] sm:$0xf] }
 0x24c   : > { %v1570_v36 = vsel %vm1562_vm2, %v1548_v24, 0.0  ;;  %v1551_v37 = vadd.f32 %v3098_v9, %v1550_v33  ;;  %v1709_v9 = vsel %vm3935_vm0, 0, %v1708_v15  ;;  %v2515_v33 = vld [vmem:[#allocation4 + $0x48] sm:$0xf] }
 0x24d   : > { %v1571_v42 = vadd.f32 %v1570_v36, %v1569_v6  ;;  %v1576_v52 = vsel %vm1562_vm2, %v1559_v39, 0.0  ;;  %1710 = vst [vmem:[#allocation4 + $0x4c] sm:$0x1] %v1709_v9  ;;  %v1930_v36 = vshll.u32 %v1910_v10, 16 }
 0x24e   : > { %v1572_v48 = vsel %vm1562_vm2, %v1551_v37, 0.0 }
 0x24f   : > { %v1573_v51 = vadd.f32 %v1572_v48, %v1571_v42  ;;  %v2619_v42 = vshll.u32 %v2515_v33, 16  ;;  %v3996_v48 = vrot.slane %v1930_v36, 5  ;;  %v1832_v36 = vld [vmem:[#allocation4 + $0x10] sm:$0xf] }
 0x251   : > { %v1575_v0 = vadd.f32 %v1574_v8, %v1573_v51  ;;  %v4000_v8 = vrot.slane %v2619_v42, 5 }
 0x253   : > { %v1577_v35 = vadd.f32 %v1576_v52, %v1575_v0  ;;  %v4002_v0 = vld [vmem:[#allocation4 + $0x4] sm:$0x1] }
 0x254   : > { %v4004_v52 = vld [vmem:[#allocation4 + $0x4c] sm:$0x1] }
 0x255   : > { %v1578_v53 = vrot.slane %v1577_v35, 4 }
 0x257   : > { %v1579_v60 = vadd.f32 %v1578_v53, %v1577_v35 }
 0x259   : > { %v1580_v40 = vrot.slane %v1579_v60, 2 }
 0x25b   : > { %v1581_v47 = vadd.f32 %v1580_v40, %v1579_v60  ;;  %v1936_v60 = vshll.u32 %v4002_v0, 16 }
 0x25d   : > { %v1582_v45 = vrot.slane %v1581_v47, 1 }
 0x25f   : > { %v1583_v19 = vadd.f32 %v1582_v45, %v1581_v47  ;;  %v2625_v47 = vshll.u32 %v4004_v52, 16 }
 0x261   : > { %v1584_v18 = vmul.f32 0.015625, %v1583_v19 }
 0x263   : > { %v1585_v57 = vsub.f32 %v1532_v44, %v1584_v18  ;;  %v1586_v46 = vsub.f32 %v1535_v17, %v1584_v18  ;;  %v1587_v29 = vsub.f32 %v1540_v13, %v1584_v18  ;;  %v1588_v61 = vsub.f32 %v1543_v25, %v1584_v18 }
 0x264   : > { %v1589_v62 = vsub.f32 %v1548_v24, %v1584_v18  ;;  %v1590_v63 = vsub.f32 %v1551_v37, %v1584_v18  ;;  %v1591_v1 = vsub.f32 %v1556_v32, %v1584_v18  ;;  %v1592_v55 = vsub.f32 %v1559_v39, %v1584_v18 }
 0x265   : > { %v1593_v4 = vmul.f32 %v1585_v57, %v1585_v57  ;;  %v1594_v56 = vmul.f32 %v1586_v46, %v1586_v46  ;;  %v1595_v5 = vmul.f32 %v1587_v29, %v1587_v29  ;;  %v1596_v58 = vmul.f32 %v1588_v61, %v1588_v61 }
 0x266   : > { %v1597_v3 = vmul.f32 %v1589_v62, %v1589_v62  ;;  %v1598_v12 = vmul.f32 %v1590_v63, %v1590_v63  ;;  %v1599_v43 = vmul.f32 %v1591_v1, %v1591_v1  ;;  %v1600_v17 = vmul.f32 %v1592_v55, %v1592_v55 }
 0x267   : > { %v1601_v20 = vsel %vm1562_vm2, %v1593_v4, 0.0  ;;  %v1602_v7 = vsel %vm1562_vm2, %v1594_v56, 0.0  ;;  %v1604_v2 = vsel %vm1562_vm2, %v1595_v5, 0.0  ;;  %v1606_v31 = vsel %vm1562_vm2, %v1596_v58, 0.0 }
 0x268   : > { %v1603_v14 = vadd.f32 %v1602_v7, %v1601_v20  ;;  %v1608_v41 = vsel %vm1562_vm2, %v1597_v3, 0.0  ;;  %v1610_v30 = vsel %vm1562_vm2, %v1598_v12, 0.0  ;;  %v1612_v26 = vsel %vm1562_vm2, %v1599_v43, 0.0 }
 0x269   : > { %v1614_v54 = vsel %vm1562_vm2, %v1600_v17, 0.0  ;;  %v1927_v32 = vshrl.u32 %v1910_v10, 16  ;;  %v2616_v37 = vshrl.u32 %v2515_v33, 16 }
 0x26a   : > { %v1605_v22 = vadd.f32 %v1604_v2, %v1603_v14 }
 0x26b   : > { %v3994_v39 = vrot.slane %v1927_v32, 4  ;;  %v3998_v51 = vrot.slane %v2616_v37, 4  ;;  %v1835_v37 = vld [vmem:[#allocation4 + $0x14] sm:$0x1]  ;;  %v4069_v32 = vrot.slane %v1936_v60, 5 }
 0x26c   : > { %v1607_v44 = vadd.f32 %v1606_v31, %v1605_v22 }
 0x26d   : > { %v1933_v53 = vor.u32 %v3996_v48, %v3994_v39  ;;  %v2622_v40 = vor.u32 %v4000_v8, %v3998_v51 }
 0x26e   : > { %v1609_v13 = vadd.f32 %v1608_v41, %v1607_v44 }
 0x26f   : > { %v4074_v11 = vrot.slane %v2622_v40, 4 }
 0x270   : > { %v1611_v25 = vadd.f32 %v1610_v30, %v1609_v13 }
 0x272   : > { %v1613_v21 = vadd.f32 %v1612_v26, %v1611_v25 }
 0x274   : > { %v1615_v38 = vadd.f32 %v1614_v54, %v1613_v21 }
 0x276   : > { %v1616_v28 = vrot.slane %v1615_v38, 4 }
 0x278   : > { %v1617_v23 = vadd.f32 %v1616_v28, %v1615_v38  ;;  %v1826_v28 = vld [vmem:[#allocation4 + $0x8] sm:$0xf] }
 0x27a   : > { %v1618_v34 = vrot.slane %v1617_v23, 2 }
 0x27c   : > { %v1619_v27 = vadd.f32 %v1618_v34, %v1617_v23 }
 0x27e   : > { %v1620_v6 = vrot.slane %v1619_v27, 1 }
 0x280   : > { %v1621_v50 = vadd.f32 %v1620_v6, %v1619_v27 }
 0x282   : > { %v1622_v16 = vmul.f32 0.015625, %v1621_v50  ;;  %v1829_v50 = vld [vmem:[#allocation4 + $0xc] sm:$0x1] }
 0x284   : > { %v1623_v24 = vadd.f32 1e-05, %v1622_v16 }
 0x286   : > { %3348 = vrsqrt.f32 %v1623_v24 }
 0x290   : > { %v3349_v35 = vpop.eup %3348 }
 0x291   : > { %v1625_v45 = vmul.f32 %v3349_v35, %v1585_v57  ;;  %v1626_v19 = vmul.f32 %v3349_v35, %v1586_v46  ;;  %v1627_v18 = vmul.f32 %v3349_v35, %v1587_v29  ;;  %v1628_v4 = vmul.f32 %v3349_v35, %v1588_v61 }
 0x292   : > { %v1629_v56 = vmul.f32 %v3349_v35, %v1589_v62  ;;  %v1630_v5 = vmul.f32 %v3349_v35, %v1590_v63  ;;  %v1631_v15 = vmul.f32 %v3349_v35, %v1591_v1  ;;  %v1632_v58 = vmul.f32 %v3349_v35, %v1592_v55 }
 0x293   : > { %v1633_v20 = vmax.f32 %v1625_v45, 0.0  ;;  %v1634_v7 = vmax.f32 %v1626_v19, 0.0  ;;  %v1635_v14 = vmax.f32 %v1627_v18, 0.0  ;;  %v1636_v3 = vmax.f32 %v1628_v4, 0.0  ;;  %v1838_v18 = vld [vmem:[#allocation4 + $0x18] sm:$0xf] }
 0x294   : > { %v1637_v2 = vmax.f32 %v1629_v56, 0.0  ;;  %v1638_v9 = vmax.f32 %v1630_v5, 0.0  ;;  %v1639_v22 = vmax.f32 %v1631_v15, 0.0  ;;  %v1640_v12 = vmax.f32 %v1632_v58, 0.0  ;;  %v1841_v4 = vld [vmem:[#allocation4 + $0x1c] sm:$0x1] }
 0x295   : > { %v3196_v31 = vpack.c.bf16 %v1633_v20, %v1633_v20  ;;  %v3197_v44 = vpack.c.bf16 %v1634_v7, %v1634_v7  ;;  %v3198_v43 = vpack.c.bf16 %v1635_v14, %v1635_v14  ;;  %v3199_v41 = vpack.c.bf16 %v1636_v3, %v1636_v3  ;;  %v1844_v20 = vld [vmem:[#allocation4 + $0x20] sm:$0xf] }
 0x296   : > { %v3200_v57 = vpack.c.bf16 %v1637_v2, %v1637_v2  ;;  %v3201_v46 = vpack.c.bf16 %v1638_v9, %v1638_v9  ;;  %v4012_v29 = vpack.c.bf16 %v1639_v22, %v1639_v22  ;;  %v4014_v61 = vpack.c.bf16 %v1640_v12, %v1640_v12  ;;  %v1847_v9 = vld [vmem:[#allocation4 + $0x24] sm:$0x1]  ;;  %v1850_v22 = vld [vmem:[#allocation4 + $0x28] sm:$0xf] }
 0x297   : > { %v1744_v62 = vshrl.u32 %v3196_v31, 16  ;;  %v1747_v63 = vshll.u32 %v3196_v31, 16  ;;  %v1752_v1 = vshrl.u32 %v3197_v44, 16  ;;  %v1755_v55 = vshll.u32 %v3197_v44, 16 }
 0x298   : > { %v1760_v13 = vshrl.u32 %v3198_v43, 16  ;;  %v1763_v17 = vshll.u32 %v3198_v43, 16  ;;  %v1768_v30 = vshrl.u32 %v3199_v41, 16  ;;  %v1771_v25 = vshll.u32 %v3199_v41, 16  ;;  %v1853_v41 = vld [vmem:[#allocation4 + $0x2c] sm:$0x1] }
 0x299   : > { %v1746_v26 = vrot.slane %v1744_v62, 7  ;;  %v1754_v21 = vrot.slane %v1752_v1, 7  ;;  %v1776_v54 = vshrl.u32 %v3200_v57, 16  ;;  %v1779_v38 = vshll.u32 %v3200_v57, 16  ;;  %v1856_v57 = vld [vmem:[#allocation4 + $0x30] sm:$0xf] }
 0x29a   : > { %v1762_v23 = vrot.slane %v1760_v13, 7  ;;  %v1770_v34 = vrot.slane %v1768_v30, 7  ;;  %v1784_v27 = vshrl.u32 %v3201_v46, 16  ;;  %v1787_v6 = vshll.u32 %v3201_v46, 16  ;;  %v1862_v1 = vld [vmem:[#allocation4 + $0x38] sm:$0xf] }
 0x29b   : > { %v1749_v16 = vor.u32 %v1747_v63, %v1746_v26  ;;  %v1750_v24 = vrot.slane %v1746_v26, 4  ;;  %v1757_v10 = vor.u32 %v1755_v55, %v1754_v21  ;;  %v1758_v33 = vrot.slane %v1754_v21, 4  ;;  %v1859_v63 = vld [vmem:[#allocation4 + $0x34] sm:$0x1]  ;;  %v1868_v26 = vld [vmem:[#allocation4 + $0x40] sm:$0xf] }
 0x29c   : > { %v1765_v42 = vor.u32 %v1763_v17, %v1762_v23  ;;  %v1766_v35 = vrot.slane %v1762_v23, 4  ;;  %v1773_v45 = vor.u32 %v1771_v25, %v1770_v34  ;;  %v1774_v19 = vrot.slane %v1770_v34, 4  ;;  %v1865_v25 = vld [vmem:[#allocation4 + $0x3c] sm:$0x1]  ;;  %v1871_v21 = vld [vmem:[#allocation4 + $0x44] sm:$0x1] }
 0x29d   : > { %v1778_v56 = vrot.slane %v1776_v54, 7  ;;  %v1786_v5 = vrot.slane %v1784_v27, 7  ;;  %v1792_v15 = vshrl.u32 %v4012_v29, 16  ;;  %v1795_v58 = vshll.u32 %v4012_v29, 16 }
 0x29e   : > { %v1800_v7 = vshrl.u32 %v4014_v61, 16  ;;  %v1803_v14 = vshll.u32 %v4014_v61, 16  ;;  %v1827_v3 = vsel %vm4018_vm1, %v1749_v16, %v1826_v28  ;;  %v1830_v2 = vsel %vm3460_vm7, %v1750_v24, %v1829_v50  ;;  %v2067_v16 = vld [vmem:[#allocation4] sm:$0xe]  ;;  %v2068_v24 = vld [vmem:[#allocation4 + $0x4] sm:$0x1] }
 0x29f   : > { %v1781_v12 = vor.u32 %v1779_v38, %v1778_v56  ;;  %v1782_v31 = vrot.slane %v1778_v56, 4  ;;  %v1789_v44 = vor.u32 %v1787_v6, %v1786_v5  ;;  %v1790_v43 = vrot.slane %v1786_v5, 4  ;;  %1828 = vst [vmem:[#allocation4 + $0x8] sm:$0xf] %v1827_v3  ;;  %1831 = vst [vmem:[#allocation4 + $0xc] sm:$0x1] %v1830_v2 }
 0x2a0   : > { %v1794_v46 = vrot.slane %v1792_v15, 7  ;;  %v1802_v29 = vrot.slane %v1800_v7, 7  ;;  %v1833_v61 = vsel %vm4018_vm1, %v1757_v10, %v1832_v36  ;;  %v1836_v62 = vsel %vm3460_vm7, %v1758_v33, %v1835_v37 }
 0x2a1   : > { %1834 = vst [vmem:[#allocation4 + $0x10] sm:$0xf] %v1833_v61  ;;  %1837 = vst [vmem:[#allocation4 + $0x14] sm:$0x1] %v1836_v62  ;;  %v1839_v55 = vsel %vm4018_vm1, %v1765_v42, %v1838_v18  ;;  %v1842_v13 = vsel %vm3460_vm7, %v1766_v35, %v1841_v4  ;;  %v1845_v17 = vsel %vm4018_vm1, %v1773_v45, %v1844_v20  ;;  %v4058_v42 = vld [vmem:[#allocation4 + $0x48] sm:$0xe] }
 0x2a2   : > { %v1848_v30 = vsel %vm3460_vm7, %v1774_v19, %v1847_v9  ;;  %v1797_v54 = vor.u32 %v1795_v58, %v1794_v46  ;;  %v1798_v38 = vrot.slane %v1794_v46, 4  ;;  %v1805_v28 = vor.u32 %v1803_v14, %v1802_v29  ;;  %1840 = vst [vmem:[#allocation4 + $0x18] sm:$0xf] %v1839_v55  ;;  %1843 = vst [vmem:[#allocation4 + $0x1c] sm:$0x1] %v1842_v13 }
 0x2a3   : > { %v1806_v23 = vrot.slane %v1802_v29, 4  ;;  %1846 = vst [vmem:[#allocation4 + $0x20] sm:$0xf] %v1845_v17  ;;  %1849 = vst [vmem:[#allocation4 + $0x24] sm:$0x1] %v1848_v30  ;;  %v1851_v34 = vsel %vm4018_vm1, %v1781_v12, %v1850_v22  ;;  %v1854_v27 = vsel %vm3460_vm7, %v1782_v31, %v1853_v41  ;;  %v1857_v6 = vsel %vm4018_vm1, %v1789_v44, %v1856_v57 }
 0x2a4   : > { %v1860_v50 = vsel %vm3460_vm7, %v1790_v43, %v1859_v63  ;;  %1852 = vst [vmem:[#allocation4 + $0x28] sm:$0xf] %v1851_v34  ;;  %1855 = vst [vmem:[#allocation4 + $0x2c] sm:$0x1] %v1854_v27  ;;  %v1863_v10 = vsel %vm4018_vm1, %v1797_v54, %v1862_v1  ;;  %v1866_v33 = vsel %vm3460_vm7, %v1798_v38, %v1865_v25  ;;  %v4060_v35 = vld [vmem:[#allocation4 + $0x4c] sm:$0x1] }
 0x2a5   : > { %1858 = vst [vmem:[#allocation4 + $0x30] sm:$0xf] %v1857_v6  ;;  %1861 = vst [vmem:[#allocation4 + $0x34] sm:$0x1] %v1860_v50  ;;  %v1869_v36 = vsel %vm4018_vm1, %v1805_v28, %v1868_v26  ;;  %v1872_v37 = vsel %vm3460_vm7, %v1806_v23, %v1871_v21  ;;  %v3122_v45 = vrot.slane %v2067_v16, 9  ;;  %v2101_v19 = vrot.slane %v2068_v24, 5 }
 0x2a6   : > { %1864 = vst [vmem:[#allocation4 + $0x38] sm:$0xf] %v1863_v10  ;;  %1867 = vst [vmem:[#allocation4 + $0x3c] sm:$0x1] %v1866_v33  ;;  %v4065_v18 = vrot.slane %v1933_v53, 4  ;;  %v4078_v4 = vrot.slane %v2625_v47, 5 }
 0x2a7   : > { %1870 = vst [vmem:[#allocation4 + $0x40] sm:$0xf] %v1869_v36  ;;  %1873 = vst [vmem:[#allocation4 + $0x44] sm:$0x1] %v1872_v37  ;;  %v3169_v56 = vrot.slane %v4058_v42, 9  ;;  %v2720_v5 = vrot.slane %v4060_v35, 5  ;;  %v2102_v62 = vsel %vm3676_vm13, %v3122_v45, %v2101_v19 }
 0x2a8   : > { %v3332_v39 = vld [vmem:[#allocation4 + $0x8] ss:$8 sps:$4 sm:$0xff]   ;;  %v2070_v53 = vld [vmem:[#allocation4 + $0xc] sm:$0x1]  ;;  %v2072_v58 = vld [vmem:[#allocation4 + $0x14] sm:$0x1] }
 0x2a9   : > { %2188 = vrot.lane.b32.xlu0 %v3332_v39, %s3363_s27  ;;  %v2069_v0 = vld [vmem:[#allocation4 + $0x8] sm:$0xe]  ;;  %v3334_v60 = vld [vmem:[#allocation4 + $0x10] ss:$8 sps:$4 sm:$0xff]   ;;  %v2105_v52 = vrot.slane %v2070_v53, 5  ;;  %v2109_v9 = vrot.slane %v2072_v58, 5 }
 0x2aa   : > { %v3331_v48 = vld [vmem:[#allocation4 + $0x18] ss:$8 sps:$4 sm:$0xff]   ;;  %v3123_v8 = vrot.slane %v2069_v0, 9  ;;  %v2071_v15 = vld [vmem:[#allocation4 + $0x10] sm:$0xe]  ;;  %vm2062_vm7 = vcmask 130112  }
 0x2ab   : > { %2190 = vrot.lane.b32.xlu1 %v3331_v48, %s3363_s27  ;;  %v3333_v51 = vld [vmem:[#allocation4 + $0x20] ss:$8 sps:$4 sm:$0xff]   ;;  %v2363_v7 = vld [vmem:[#allocation4 + $0xc] sm:$0x1]  ;;  %v2073_v14 = vld [vmem:[#allocation4 + $0x18] sm:$0xe]  ;;  %v1939_v48 = vsel %vm3702_vm14, %v4065_v18, %v4069_v32 }
 0x2ac   : > { %v3336_v47 = vld [vmem:[#allocation4 + $0x28] ss:$8 sps:$4 sm:$0xff]   ;;  %v2074_v3 = vld [vmem:[#allocation4 + $0x1c] sm:$0x1]  ;;  %v3124_v2 = vrot.slane %v2071_v15, 9  ;;  %v3125_v22 = vrot.slane %v2073_v14, 9  ;;  %v2106_v63 = vsel %vm3676_vm13, %v3123_v8, %v2105_v52 }
 0x2ad   : > { %2484 = vrot.lane.b32.xlu0 %v3334_v60, %s3370_s17  ;;  %v2362_v20 = vld [vmem:[#allocation4 + $0x8] sm:$0xe]  ;;  %v2113_v12 = vrot.slane %v2074_v3, 5  ;;  %v2366_v31 = vld [vmem:[#allocation4 + $0x18] sm:$0xe]  ;;  %v2396_v21 = vrot.slane %v2363_v7, 5  ;;  %v3130_v36 = vcombine.low %v2102_v62, %v2106_v63 }
 0x2ae   : > { %v3335_v40 = vld [vmem:[#allocation4 + $0x38] ss:$8 sps:$4 sm:$0xff]   ;;  %v2367_v44 = vld [vmem:[#allocation4 + $0x1c] sm:$0x1]  ;;  %v2369_v57 = vld [vmem:[#allocation4 + $0x24] sm:$0x1]  ;;  %v2110_v30 = vsel %vm3676_vm13, %v3124_v2, %v2109_v9 }
 0x2af   : > { %2486 = vrot.lane.b32.xlu1 %v3333_v51, %s3370_s17  ;;  %v3338_v43 = vld [vmem:[#allocation4 + $0x30] ss:$8 sps:$4 sm:$0xff]   ;;  %v2368_v41 = vld [vmem:[#allocation4 + $0x20] sm:$0xe]  ;;  %v3144_v46 = vrot.slane %v2366_v31, 9  ;;  %v2404_v29 = vrot.slane %v2367_v44, 5  ;;  %v2114_v25 = vsel %vm3676_vm13, %v3125_v22, %v2113_v12 }
 0x2b0   : > { %v3337_v61 = vld [vmem:[#allocation4 + $0x40] ss:$8 sps:$4 sm:$0xff]   ;;  %v3145_v1 = vrot.slane %v2368_v41, 9  ;;  %v2408_v55 = vrot.slane %v2369_v57, 5  ;;  %v2364_v13 = vld [vmem:[#allocation4 + $0x10] sm:$0xe]  ;;  %v3131_v0 = vcombine.low %v2110_v30, %v2114_v25 }
 0x2b1   : > { %2192 = vrot.lane.b32.xlu0 %v3336_v47, %s3363_s27  ;;  %v2365_v17 = vld [vmem:[#allocation4 + $0x14] sm:$0x1]  ;;  %v3142_v26 = vrot.slane %v2362_v20, 9  ;;  %v2079_v54 = vld [vmem:[#allocation4 + $0x30] sm:$0xe]  ;;  %v4098_v28 = vsel %vm3676_vm13, %v3144_v46, %v2404_v29  ;;  %v3143_v34 = vrot.slane %v2364_v13, 9 }
 0x2b2   : > { %v2080_v38 = vld [vmem:[#allocation4 + $0x34] sm:$0x1]  ;;  %v4102_v23 = vsel %vm3676_vm13, %v3145_v1, %v2408_v55  ;;  %v2400_v27 = vrot.slane %v2365_v17, 5  ;;  %v2081_v6 = vld [vmem:[#allocation4 + $0x38] sm:$0xe]  ;;  %v3128_v16 = vrot.slane %v2079_v54, 9 }
 0x2b3   : > { %2194 = vrot.lane.b32.xlu1 %v3335_v40, %s3363_s27  ;;  %v2082_v50 = vld [vmem:[#allocation4 + $0x3c] sm:$0x1]  ;;  %v2125_v24 = vrot.slane %v2080_v38, 5  ;;  %v2658_v10 = vld [vmem:[#allocation4 + $0x10] sm:$0xe]  ;;  %v3129_v37 = vrot.slane %v2081_v6, 9  ;;  %v3151_v53 = vcombine.low %v4098_v28, %v4102_v23  ;;  %v2397_v40 = vsel %vm3676_vm13, %v3142_v26, %v2396_v21 }
 0x2b4   : > { %v2659_v33 = vld [vmem:[#allocation4 + $0x14] sm:$0x1]  ;;  %v2129_v45 = vrot.slane %v2082_v50, 5  ;;  %v2660_v19 = vld [vmem:[#allocation4 + $0x18] sm:$0xe]  ;;  %v3162_v60 = vrot.slane %v2658_v10, 9  ;;  %v2401_v47 = vsel %vm3676_vm13, %v3143_v34, %v2400_v27 }
 0x2b5   : > { %2488 = vrot.lane.b32.xlu0 %v3338_v43, %s3370_s17  ;;  %v2661_v39 = vld [vmem:[#allocation4 + $0x1c] sm:$0x1]  ;;  %v2692_v51 = vrot.slane %v2659_v33, 5  ;;  %v2374_v8 = vld [vmem:[#allocation4 + $0x38] sm:$0xe]  ;;  %v3163_v15 = vrot.slane %v2660_v19, 9  ;;  %v2126_v14 = vsel %vm3676_vm13, %v3128_v16, %v2125_v24  ;;  %v3150_v29 = vcombine.low %v2397_v40, %v2401_v47 }
 0x2b6   : > { %v2375_v52 = vld [vmem:[#allocation4 + $0x3c] sm:$0x1]  ;;  %v2696_v58 = vrot.slane %v2661_v39, 5  ;;  %v2376_v20 = vld [vmem:[#allocation4 + $0x40] sm:$0xe]  ;;  %v2130_v3 = vsel %vm3676_vm13, %v3129_v37, %v2129_v45  ;;  %v3148_v2 = vrot.slane %v2374_v8, 9 }
 0x2b7   : > { %2490 = vrot.lane.b32.xlu1 %v3337_v61, %s3370_s17  ;;  %v2377_v7 = vld [vmem:[#allocation4 + $0x44] sm:$0x1]  ;;  %v2420_v9 = vrot.slane %v2375_v52, 5  ;;  %v2662_v22 = vld [vmem:[#allocation4 + $0x20] sm:$0xe]  ;;  %v2693_v31 = vsel %vm3676_vm13, %v3162_v60, %v2692_v51  ;;  %v3149_v43 = vrot.slane %v2376_v20, 9  ;;  %v3133_v13 = vcombine.low %v2126_v14, %v2130_v3 }
 0x2b8   : > { %v2663_v12 = vld [vmem:[#allocation4 + $0x24] sm:$0x1]  ;;  %v2697_v44 = vsel %vm3676_vm13, %v3163_v15, %v2696_v58  ;;  %v2424_v41 = vrot.slane %v2377_v7, 5  ;;  %v2664_v57 = vld [vmem:[#allocation4 + $0x28] sm:$0xe]  ;;  %v3164_v62 = vrot.slane %v2662_v22, 9 }
 0x2b9   : > { %2143 = vrot.lane.b32.xlu0 %v3130_v36, %s3368_s7  ;;  %v2665_v46 = vld [vmem:[#allocation4 + $0x2c] sm:$0x1]  ;;  %v4128_v61 = vsel %vm3676_vm13, %v3148_v2, %v2420_v9  ;;  %v2700_v63 = vrot.slane %v2663_v12, 5  ;;  %v1914_v1 = vld [vmem:[#allocation4 + $0x10] sm:$0xf]  ;;  %v3165_v30 = vrot.slane %v2664_v57, 9  ;;  %v3170_v54 = vcombine.low %v2693_v31, %v2697_v44 }
 0x2ba   : > { %v1915_v55 = vld [vmem:[#allocation4 + $0x14] sm:$0x1]  ;;  %v2425_v17 = vsel %vm3676_vm13, %v3149_v43, %v2424_v41  ;;  %v2704_v25 = vrot.slane %v2665_v46, 5  ;;  %v1916_v26 = vld [vmem:[#allocation4 + $0x18] sm:$0xf]  ;;  %v1955_v28 = vshrl.u32 %v1914_v1, 16 }
 0x2bb   : > { %2145 = vrot.lane.b32.xlu1 %v3131_v0, %s3368_s7  ;;  %v1917_v21 = vld [vmem:[#allocation4 + $0x1c] sm:$0x1]  ;;  %v3153_v38 = vcombine.low %v4128_v61, %v2425_v17  ;;  %v1958_v23 = vshll.u32 %v1914_v1, 16  ;;  %v2075_v34 = vld [vmem:[#allocation4 + $0x20] sm:$0xe]  ;;  %v2701_v6 = vsel %vm3676_vm13, %v3164_v62, %v2700_v63  ;;  %v1964_v50 = vshll.u32 %v1915_v55, 16 }
 0x2bc   : > { %v2076_v27 = vld [vmem:[#allocation4 + $0x24] sm:$0x1]  ;;  %v1969_v16 = vshrl.u32 %v1916_v26, 16  ;;  %v1972_v24 = vshll.u32 %v1916_v26, 16  ;;  %v2077_v10 = vld [vmem:[#allocation4 + $0x28] sm:$0xe]  ;;  %v2705_v33 = vsel %vm3676_vm13, %v3165_v30, %v2704_v25 }
 0x2bd   : > { %2438 = vrot.lane.b32.xlu0 %v3150_v29, %s3371_s20  ;;  %v1957_v36 = vrot.slane %v1955_v28, 4  ;;  %v1960_v37 = vrot.slane %v1958_v23, 5  ;;  %v1978_v45 = vshll.u32 %v1917_v21, 16  ;;  %v2078_v19 = vld [vmem:[#allocation4 + $0x2c] sm:$0x1]  ;;  %v1966_v39 = vrot.slane %v1964_v50, 5 }
 0x2be   : > { %v1971_v0 = vrot.slane %v1969_v16, 4  ;;  %v1974_v60 = vrot.slane %v1972_v24, 5  ;;  %v3126_v51 = vrot.slane %v2075_v34, 9  ;;  %v2209_v8 = vld [vmem:[#allocation4 + $0x18] sm:$0xf]  ;;  %v2117_v40 = vrot.slane %v2076_v27, 5 }
 0x2bf   : > { %2440 = vrot.lane.b32.xlu1 %v3151_v53, %s3371_s20  ;;  %v1961_v53 = vor.u32 %v1960_v37, %v1957_v36  ;;  %v1980_v52 = vrot.slane %v1978_v45, 5  ;;  %v3127_v47 = vrot.slane %v2077_v10, 9  ;;  %v2210_v15 = vld [vmem:[#allocation4 + $0x1c] sm:$0x1]  ;;  %v3171_v58 = vcombine.low %v2701_v6, %v2705_v33  ;;  %v2211_v14 = vld [vmem:[#allocation4 + $0x20] sm:$0xf] }
 0x2c0   : > { %v1975_v20 = vor.u32 %v1974_v60, %v1971_v0  ;;  %v2121_v7 = vrot.slane %v2078_v19, 5  ;;  %v2212_v3 = vld [vmem:[#allocation4 + $0x24] sm:$0x1]  ;;  %v2250_v2 = vshrl.u32 %v2209_v8, 16  ;;  %v2118_v22 = vsel %vm3676_vm13, %v3126_v51, %v2117_v40  ;;  %v2370_v44 = vld [vmem:[#allocation4 + $0x28] sm:$0xe] }
 0x2c1   : > { %2734 = vrot.lane.b32.xlu0 %v3170_v54, %s3372_s21  ;;  %v1962_v9 = vrot.slane %v1961_v53, 4  ;;  %v2253_v12 = vshll.u32 %v2209_v8, 16  ;;  %v2259_v31 = vshll.u32 %v2210_v15, 16  ;;  %v2264_v46 = vshrl.u32 %v2211_v14, 16  ;;  %v2371_v29 = vld [vmem:[#allocation4 + $0x2c] sm:$0x1] }
 0x2c2   : > { %v1976_v43 = vrot.slane %v1975_v20, 4  ;;  %v2122_v41 = vsel %vm3676_vm13, %v3127_v47, %v2121_v7  ;;  %v2252_v57 = vrot.slane %v2250_v2, 4  ;;  %v2372_v55 = vld [vmem:[#allocation4 + $0x30] sm:$0xe]  ;;  %v2267_v25 = vshll.u32 %v2211_v14, 16 }
 0x2c3   : > { %2149 = vrot.lane.b32.xlu1 %v3133_v13, %s3368_s7  ;;  %v1967_v61 = vsel %vm3702_vm14, %v1962_v9, %v1966_v39  ;;  %v3132_v62 = vcombine.low %v2118_v22, %v2122_v41  ;;  %v2255_v63 = vrot.slane %v2253_v12, 5  ;;  %v2261_v1 = vrot.slane %v2259_v31, 5  ;;  %v2373_v13 = vld [vmem:[#allocation4 + $0x34] sm:$0x1]  ;;  %v2505_v21 = vld [vmem:[#allocation4 + $0x20] sm:$0xf] }
 0x2c4   : > { %v1981_v17 = vsel %vm3702_vm14, %v1976_v43, %v1980_v52  ;;  %v2266_v30 = vrot.slane %v2264_v46, 4  ;;  %v2273_v26 = vshll.u32 %v2212_v3, 16  ;;  %v3340_v54 = vld [vmem:[%s4332_s3] sm:$0xff]   ;;  %v3146_v34 = vrot.slane %v2370_v44, 9  ;;  %v2506_v6 = vld [vmem:[#allocation4 + $0x24] sm:$0x1] }
 0x2c5   : > { %2736 = vrot.lane.b32.xlu0 %v3171_v58, %s3372_s21  ;;  %v3119_v28 = vcombine.low %v1967_v61, %v1981_v17  ;;  %v2256_v23 = vor.u32 %v2255_v63, %v2252_v57  ;;  %v2412_v27 = vrot.slane %v2371_v29, 5  ;;  %v2507_v50 = vld [vmem:[#allocation4 + $0x28] sm:$0xf]  ;;  %v2269_v16 = vrot.slane %v2267_v25, 5  ;;  %3234 = vmatprep.subr.bf16.mxu1 %v3340_v54  ;;  %v2508_v0 = vld [vmem:[#allocation4 + $0x2c] sm:$0x1] }
 0x2c6   : > { %v2275_v24 = vrot.slane %v2273_v26, 5  ;;  %v2416_v10 = vrot.slane %v2373_v13, 5  ;;  %v2546_v37 = vshrl.u32 %v2505_v21, 16  ;;  %v2549_v45 = vshll.u32 %v2505_v21, 16  ;;  %3235 = vmatpush3.bf16.msra.mxu1 %v3340_v54  ;;  %v1912_v8 = vld [vmem:[#allocation4 + $0x8] sm:$0xf] }
 0x2c7   : > { %2444 = vrot.lane.b32.xlu1 %v3153_v38, %s3371_s20  ;;  %v3147_v38 = vrot.slane %v2372_v55, 9  ;;  %v2257_v33 = vrot.slane %v2256_v23, 4  ;;  %v2413_v36 = vsel %vm3676_vm13, %v3146_v34, %v2412_v27  ;;  %v2270_v19 = vor.u32 %v2269_v16, %v2266_v30  ;;  %v1913_v47 = vld [vmem:[#allocation4 + $0xc] sm:$0x1]  ;;  %v1918_v15 = vld [vmem:[#allocation4 + $0x20] sm:$0xf] }
 0x2c8   : > { %v2555_v60 = vshll.u32 %v2506_v6, 16  ;;  %v2560_v51 = vshrl.u32 %v2507_v50, 16  ;;  %v2548_v52 = vrot.slane %v2546_v37, 4  ;;  %v2551_v40 = vrot.slane %v2549_v45, 5  ;;  %v1919_v31 = vld [vmem:[#allocation4 + $0x24] sm:$0x1] }
 0x2c9   : > { %2147 = vrot.lane.b32.xlu0 %v3132_v62, %s3368_s7  ;;  %v2417_v39 = vsel %vm3676_vm13, %v3147_v38, %v2416_v10  ;;  %v2628_v58 = vsel %vm3702_vm14, %v4074_v11, %v4078_v4  ;;  %v2262_v20 = vsel %vm3702_vm14, %v2257_v33, %v2261_v1  ;;  %v2271_v7 = vrot.slane %v2270_v19, 4  ;;  %v1920_v57 = vld [vmem:[#allocation4 + $0x28] sm:$0xf]  ;;  %v3342_v29 = vld [vmem:[%s4332_s3 + $0x8] sm:$0xff]   ;;  %v1921_v55 = vld [vmem:[#allocation4 + $0x2c] sm:$0x1] }
 0x2ca   : > { %v3152_v53 = vcombine.low %v2413_v36, %v2417_v39  ;;  %v2562_v14 = vrot.slane %v2560_v51, 4  ;;  %v2563_v3 = vshll.u32 %v2507_v50, 16  ;;  %v2552_v2 = vor.u32 %v2551_v40, %v2548_v52  ;;  %v2205_v26 = vld [vmem:[#allocation4 + $0x8] sm:$0xf]  ;;  %3236 = vmatprep.subr.bf16.mxu1 %v3342_v29  ;;  %v2206_v16 = vld [vmem:[#allocation4 + $0xc] sm:$0x1] }
 0x2cb   : > { %2052 = vrot.lane.b32.xlu1 %v3119_v28, %s3364_s28  ;;  %v2569_v9 = vshll.u32 %v2508_v0, 16  ;;  %v1941_v22 = vshrl.u32 %v1912_v8, 16  ;;  %v1944_v12 = vshll.u32 %v1912_v8, 16  ;;  %v2276_v44 = vsel %vm3702_vm14, %v2271_v7, %v2275_v24  ;;  %3237 = vmatpush3.bf16.msra.mxu1 %v3342_v29  ;;  %v2207_v33 = vld [vmem:[#allocation4 + $0x10] sm:$0xf] }
 0x2cc   : > { %v2565_v43 = vrot.slane %v2563_v3, 5  ;;  %v1950_v41 = vshll.u32 %v1913_v47, 16  ;;  %v1983_v46 = vshrl.u32 %v1918_v15, 16  ;;  %v3139_v61 = vcombine.low %v2262_v20, %v2276_v44  ;;  %v2208_v51 = vld [vmem:[#allocation4 + $0x14] sm:$0x1] }
 0x2cd   : > { %2442 = vrot.lane.b32.xlu0 %v3152_v53, %s3371_s20  ;;  %v2553_v62 = vrot.slane %v2552_v2, 4  ;;  %v2557_v63 = vrot.slane %v2555_v60, 5  ;;  %v1943_v1 = vrot.slane %v1941_v22, 4  ;;  %v2571_v17 = vrot.slane %v2569_v9, 5  ;;  %v1922_v20 = vld [vmem:[#allocation4 + $0x30] sm:$0xf] }
 0x2ce   : > { %v2566_v13 = vor.u32 %v2565_v43, %v2562_v14  ;;  %v1946_v30 = vrot.slane %v1944_v12, 5  ;;  %v1952_v25 = vrot.slane %v1950_v41, 5  ;;  %v1985_v21 = vrot.slane %v1983_v46, 4  ;;  %v1923_v9 = vld [vmem:[#allocation4 + $0x34] sm:$0x1]  ;;  %v3344_v22 = vld [vmem:[%s4332_s3 + $0x10] sm:$0xff]  }
 0x2cf   : > { %2347 = vrot.lane.b32.xlu1 %v3139_v61, %s3366_s30  ;;  %v1986_v54 = vshll.u32 %v1918_v15, 16  ;;  %v1992_v28 = vshll.u32 %v1919_v31, 16  ;;  %v1997_v23 = vshrl.u32 %v1920_v57, 16  ;;  %v2558_v34 = vsel %vm3702_vm14, %v2553_v62, %v2557_v63  ;;  %v1924_v32 = vld [vmem:[#allocation4 + $0x38] sm:$0xf]  ;;  %3238 = vmatprep.subr.bf16.mxu1 %v3344_v22 }
 0x2d0   : > { %v2567_v27 = vrot.slane %v2566_v13, 4  ;;  %v1947_v6 = vor.u32 %v1946_v30, %v1943_v1  ;;  %v2000_v50 = vshll.u32 %v1920_v57, 16  ;;  %v2006_v10 = vshll.u32 %v1921_v55, 16  ;;  %v2501_v1 = vld [vmem:[#allocation4 + $0x10] sm:$0xf]  ;;  %3239 = vmatpush3.bf16.msra.mxu1 %v3344_v22 }
 0x2d1   : > { %v1988_v24 = vrot.slane %v1986_v54, 5  ;;  %v1999_v38 = vrot.slane %v1997_v23, 4  ;;  %v2222_v36 = vshrl.u32 %v2205_v26, 16  ;;  %v1994_v19 = vrot.slane %v1992_v28, 5  ;;  %v2502_v28 = vld [vmem:[#allocation4 + $0x14] sm:$0x1] }
 0x2d2   : > { %v2572_v37 = vsel %vm3702_vm14, %v2567_v27, %v2571_v17  ;;  %v1948_v45 = vrot.slane %v1947_v6, 4  ;;  %v2002_v39 = vrot.slane %v2000_v50, 5  ;;  %v2225_v53 = vshll.u32 %v2205_v26, 16  ;;  %v2503_v6 = vld [vmem:[#allocation4 + $0x18] sm:$0xf] }
 0x2d3   : > { %v3159_v0 = vcombine.low %v2558_v34, %v2572_v37  ;;  %v1989_v60 = vor.u32 %v1988_v24, %v1985_v21  ;;  %v2224_v8 = vrot.slane %v2222_v36, 4  ;;  %v2231_v47 = vshll.u32 %v2206_v16, 16  ;;  %v3347_v35 = vld [vmem:[%s4332_s3 + $0x20] ss:$0 sps:$4 sm:$0xff]  }
 0x2d4   : > { %v1953_v52 = vsel %vm3702_vm14, %v1948_v45, %v1952_v25  ;;  %v2003_v40 = vor.u32 %v2002_v39, %v1999_v38  ;;  %v2236_v15 = vshrl.u32 %v2207_v33, 16  ;;  %v2227_v3 = vrot.slane %v2225_v53, 5  ;;  %v2217_v39 = vld [vmem:[#allocation4 + $0x38] sm:$0xf] }
 0x2d5   : > { %2643 = vrot.lane.b32.xlu1 %v3159_v0, %s3373_s26  ;;  %v3118_v7 = vcombine.low %v1939_v48, %v1953_v52  ;;  %v1990_v14 = vrot.slane %v1989_v60, 4  ;;  %v2239_v2 = vshll.u32 %v2207_v33, 16  ;;  %v2008_v31 = vrot.slane %v2006_v10, 5  ;;  %v1925_v48 = vld [vmem:[#allocation4 + $0x3c] sm:$0x1] }
 0x2d6   : > { %v2004_v12 = vrot.slane %v2003_v40, 4  ;;  %v2238_v44 = vrot.slane %v2236_v15, 4  ;;  %v2245_v43 = vshll.u32 %v2208_v51, 16  ;;  %v2228_v57 = vor.u32 %v2227_v3, %v2224_v8  ;;  %v2504_v10 = vld [vmem:[#allocation4 + $0x1c] sm:$0x1] }
 0x2d7   : > { %2050 = vrot.lane.b32.xlu0 %v3118_v7, %s3364_s28  ;;  %v1995_v41 = vsel %vm3702_vm14, %v1990_v14, %v1994_v19  ;;  %v2241_v18 = vrot.slane %v2239_v2, 5  ;;  %v2011_v46 = vshrl.u32 %v1922_v20, 16  ;;  %v2233_v61 = vrot.slane %v2231_v47, 5  ;;  %v2218_v15 = vld [vmem:[#allocation4 + $0x3c] sm:$0x1] }
 0x2d8   : > { %v2009_v29 = vsel %vm3702_vm14, %v2004_v12, %v2008_v31  ;;  %v2014_v62 = vshll.u32 %v1922_v20, 16  ;;  %v2020_v63 = vshll.u32 %v1923_v9, 16  ;;  %v2229_v13 = vrot.slane %v2228_v57, 4  ;;  %v2219_v3 = vld [vmem:[#allocation4 + $0x40] sm:$0xf] }
 0x2d9   : > { %v3120_v55 = vcombine.low %v1995_v41, %v2009_v29  ;;  %v2242_v17 = vor.u32 %v2241_v18, %v2238_v44  ;;  %v2013_v30 = vrot.slane %v2011_v46, 4  ;;  %v2247_v25 = vrot.slane %v2245_v43, 5  ;;  %v2220_v31 = vld [vmem:[#allocation4 + $0x44] sm:$0x1] }
 0x2da   : > { %v2016_v26 = vrot.slane %v2014_v62, 5  ;;  %v2025_v21 = vshrl.u32 %v1924_v32, 16  ;;  %v2028_v54 = vshll.u32 %v1924_v32, 16  ;;  %v2234_v23 = vsel %vm3702_vm14, %v2229_v13, %v2233_v61  ;;  %v2213_v32 = vld [vmem:[#allocation4 + $0x28] sm:$0xf] }
 0x2db   : > { %2054 = vrot.lane.b32.xlu1 %v3120_v55, %s3364_s28  ;;  %v2243_v34 = vrot.slane %v2242_v17, 4  ;;  %v2034_v27 = vshll.u32 %v1925_v48, 16  ;;  %v2518_v50 = vshrl.u32 %v2501_v1, 16  ;;  %v2521_v33 = vshll.u32 %v2501_v1, 16  ;;  %v3346_v48 = vld [vmem:[%s4332_s3 + $0x18] sm:$0xff]  }
 0x2dc   : > { %v2017_v16 = vor.u32 %v2016_v26, %v2013_v30  ;;  %v2027_v24 = vrot.slane %v2025_v21, 4  ;;  %v2030_v38 = vrot.slane %v2028_v54, 5  ;;  %v2022_v37 = vrot.slane %v2020_v63, 5  ;;  %v2214_v63 = vld [vmem:[#allocation4 + $0x2c] sm:$0x1]  ;;  %3240 = vmatprep.subr.bf16.mxu1 %v3346_v48 }
 0x2dd   : > { %v2248_v36 = vsel %vm3702_vm14, %v2243_v34, %v2247_v25  ;;  %v2520_v45 = vrot.slane %v2518_v50, 4  ;;  %v2527_v19 = vshll.u32 %v2502_v28, 16  ;;  %v2523_v8 = vrot.slane %v2521_v33, 5  ;;  %v2215_v1 = vld [vmem:[#allocation4 + $0x30] sm:$0xf]  ;;  %3241 = vmatpush3.bf16.msra.mxu1 %v3346_v48 }
 0x2de   : > { %v3138_v0 = vcombine.low %v2234_v23, %v2248_v36  ;;  %v2018_v60 = vrot.slane %v2017_v16, 4  ;;  %v2031_v51 = vor.u32 %v2030_v38, %v2027_v24  ;;  %v2036_v53 = vrot.slane %v2034_v27, 5  ;;  %v2216_v25 = vld [vmem:[#allocation4 + $0x34] sm:$0x1]  ;;  %v2513_v23 = vld [vmem:[#allocation4 + $0x40] sm:$0xf]  ;;  %3253 = vmatprep.subr.msk.bf16.mxu1 %vm2811_vm4, %v3347_v35 }
 0x2df   : > { %v2532_v52 = vshrl.u32 %v2503_v6, 16  ;;  %v2535_v40 = vshll.u32 %v2503_v6, 16  ;;  %v2541_v47 = vshll.u32 %v2504_v10, 16  ;;  %v2524_v14 = vor.u32 %v2523_v8, %v2520_v45  ;;  %v2514_v16 = vld [vmem:[#allocation4 + $0x44] sm:$0x1] }
 0x2e0   : > { %2345 = vrot.lane.b32.xlu0 %v3138_v0, %s3366_s30  ;;  %v2023_v20 = vsel %vm3702_vm14, %v2018_v60, %v2022_v37  ;;  %v2032_v7 = vrot.slane %v2031_v51, 4  ;;  %v2306_v2 = vshrl.u32 %v2217_v39, 16  ;;  %v2529_v9 = vrot.slane %v2527_v19, 5  ;;  %v2509_v24 = vld [vmem:[#allocation4 + $0x30] sm:$0xf] }
 0x2e1   : > { %v2534_v22 = vrot.slane %v2532_v52, 4  ;;  %v2537_v12 = vrot.slane %v2535_v40, 5  ;;  %v2309_v44 = vshll.u32 %v2217_v39, 16  ;;  %v2525_v41 = vrot.slane %v2524_v14, 4  ;;  %v3339_v38 = vld [vmem:[#allocation4 + $0x10] ss:$8 sps:$4 sm:$0xff]  }
 0x2e2   : > { %v2037_v43 = vsel %vm3702_vm14, %v2032_v7, %v2036_v53  ;;  %v2308_v57 = vrot.slane %v2306_v2, 4  ;;  %v2315_v18 = vshll.u32 %v2218_v15, 16  ;;  %v2320_v62 = vshrl.u32 %v2219_v3, 16  ;;  %1907 = vst.msk [vmem:[#allocation5 + $0x8] sm:$0xff] %vm1562_vm2, %v3339_v38  ;;  %v3341_v60 = vld [vmem:[#allocation4] ss:$8 sps:$4 sm:$0xff]  }
 0x2e3   : > { %v3121_v46 = vcombine.low %v2023_v20, %v2037_v43  ;;  %v2538_v29 = vor.u32 %v2537_v12, %v2534_v22  ;;  %v2311_v61 = vrot.slane %v2309_v44, 5  ;;  %v2530_v55 = vsel %vm3702_vm14, %v2525_v41, %v2529_v9  ;;  %v2510_v7 = vld [vmem:[#allocation4 + $0x34] sm:$0x1]  ;;  %v2511_v14 = vld [vmem:[#allocation4 + $0x38] sm:$0xf]  ;;  %1906 = vst.msk [vmem:[#allocation5] sm:$0xff] %vm1562_vm2, %v3341_v60 }
 0x2e4   : > { %v2543_v13 = vrot.slane %v2541_v47, 5  ;;  %v2323_v17 = vshll.u32 %v2219_v3, 16  ;;  %v2329_v30 = vshll.u32 %v2220_v31, 16  ;;  %v2322_v54 = vrot.slane %v2320_v62, 4  ;;  %v3343_v3 = vld [vmem:[#allocation4 + $0x20] ss:$8 sps:$4 sm:$0xff]  }
 0x2e5   : > { %2056 = vrot.lane.b32.xlu1 %v3121_v46, %s3364_s28  ;;  %v2539_v26 = vrot.slane %v2538_v29, 4  ;;  %v2312_v21 = vor.u32 %v2311_v61, %v2308_v57  ;;  %v2278_v28 = vshrl.u32 %v2213_v32, 16  ;;  %v2317_v34 = vrot.slane %v2315_v18, 5  ;;  %v2512_v12 = vld [vmem:[#allocation4 + $0x3c] sm:$0x1]  ;;  %1908 = vst.msk [vmem:[#allocation5 + $0x10] sm:$0xff] %vm1562_vm2, %v3343_v3 }
 0x2e6   : > { %v2325_v27 = vrot.slane %v2323_v17, 5  ;;  %v2281_v6 = vshll.u32 %v2213_v32, 16  ;;  %v2287_v50 = vshll.u32 %v2214_v63, 16  ;;  %v2292_v37 = vshrl.u32 %v2215_v1, 16  ;;  %v2670_v29 = vld [vmem:[#allocation4 + $0x40] sm:$0xe] }
 0x2e7   : > { %v2544_v10 = vsel %vm3702_vm14, %v2539_v26, %v2543_v13  ;;  %v2313_v33 = vrot.slane %v2312_v21, 4  ;;  %v2280_v36 = vrot.slane %v2278_v28, 4  ;;  %v2331_v39 = vrot.slane %v2329_v30, 5  ;;  %v3345_v61 = vld [vmem:[#allocation4 + $0x30] ss:$8 sps:$4 sm:$0xff]  }
 0x2e8   : > { %v3158_v45 = vcombine.low %v2530_v55, %v2544_v10  ;;  %v2326_v19 = vor.u32 %v2325_v27, %v2322_v54  ;;  %v2283_v0 = vrot.slane %v2281_v6, 5  ;;  %v2294_v8 = vrot.slane %v2292_v37, 4  ;;  %v2671_v26 = vld [vmem:[#allocation4 + $0x44] sm:$0x1]  ;;  %1909 = vst.msk [vmem:[#allocation5 + $0x18] sm:$0xff] %vm1562_vm2, %v3345_v61 }
 0x2e9   : > { %v2318_v51 = vsel %vm3702_vm14, %v2313_v33, %v2317_v34  ;;  %v2295_v53 = vshll.u32 %v2215_v1, 16  ;;  %v2301_v52 = vshll.u32 %v2216_v25, 16  ;;  %v2602_v15 = vshrl.u32 %v2513_v23, 16  ;;  %v2669_v37 = vld [vmem:[#allocation4 + $0x3c] sm:$0x1] }
 0x2ea   : > { %2641 = vrot.lane.b32.xlu0 %v3158_v45, %s3373_s26  ;;  %v2327_v40 = vrot.slane %v2326_v19, 4  ;;  %v2284_v47 = vor.u32 %v2283_v0, %v2280_v36  ;;  %v2605_v20 = vshll.u32 %v2513_v23, 16  ;;  %v2289_v2 = vrot.slane %v2287_v50, 5  ;;  %v2666_v50 = vld [vmem:[#allocation4 + $0x30] sm:$0xe] }
 0x2eb   : > { %v2297_v9 = vrot.slane %v2295_v53, 5  ;;  %v2611_v22 = vshll.u32 %v2514_v16, 16  ;;  %v2574_v31 = vshrl.u32 %v2509_v24, 16  ;;  %v2604_v41 = vrot.slane %v2602_v15, 4  ;;  %v2667_v16 = vld [vmem:[#allocation4 + $0x34] sm:$0x1] }
 0x2ec   : > { %v2332_v44 = vsel %vm3702_vm14, %v2327_v40, %v2331_v39  ;;  %v2285_v43 = vrot.slane %v2284_v47, 4  ;;  %v2607_v57 = vrot.slane %v2605_v20, 5  ;;  %v2303_v48 = vrot.slane %v2301_v52, 5  ;;  %v2668_v36 = vld [vmem:[#allocation4 + $0x38] sm:$0xe] }
 0x2ed   : > { %v3141_v18 = vcombine.low %v2318_v51, %v2332_v44  ;;  %v2298_v32 = vor.u32 %v2297_v9, %v2294_v8  ;;  %v2613_v46 = vrot.slane %v2611_v22, 5  ;;  %v2576_v1 = vrot.slane %v2574_v31, 4 }
 0x2ee   : > { %v2290_v62 = vsel %vm3702_vm14, %v2285_v43, %v2289_v2  ;;  %v2608_v63 = vor.u32 %v2607_v57, %v2604_v41  ;;  %v2577_v55 = vshll.u32 %v2509_v24, 16  ;;  %v2583_v17 = vshll.u32 %v2510_v7, 16 }
 0x2ef   : > { %2351 = vrot.lane.b32.xlu1 %v3141_v18, %s3366_s30  ;;  %v2299_v13 = vrot.slane %v2298_v32, 4  ;;  %v2588_v30 = vshrl.u32 %v2511_v14, 16  ;;  %v2591_v25 = vshll.u32 %v2511_v14, 16  ;;  %v2597_v28 = vshll.u32 %v2512_v12, 16 }
 0x2f0   : > { %v2609_v21 = vrot.slane %v2608_v63, 4  ;;  %v2579_v54 = vrot.slane %v2577_v55, 5  ;;  %v3168_v23 = vrot.slane %v2670_v29, 9  ;;  %v2716_v33 = vrot.slane %v2671_v26, 5 }
 0x2f1   : > { %v2304_v34 = vsel %vm3702_vm14, %v2299_v13, %v2303_v48  ;;  %v2590_v27 = vrot.slane %v2588_v30, 4  ;;  %v2593_v6 = vrot.slane %v2591_v25, 5  ;;  %v2585_v19 = vrot.slane %v2583_v17, 5 }
 0x2f2   : > { %v3140_v24 = vcombine.low %v2290_v62, %v2304_v34  ;;  %v2614_v38 = vsel %vm3702_vm14, %v2609_v21, %v2613_v46  ;;  %v2580_v10 = vor.u32 %v2579_v54, %v2576_v1  ;;  %v2721_v0 = vsel %vm3676_vm13, %v3169_v56, %v2720_v5 }
 0x2f3   : > { %v3161_v45 = vcombine.low %v2614_v38, %v2628_v58  ;;  %v2594_v39 = vor.u32 %v2593_v6, %v2590_v27  ;;  %v2599_v51 = vrot.slane %v2597_v28, 5  ;;  %v2717_v8 = vsel %vm3676_vm13, %v3168_v23, %v2716_v33 }
 0x2f4   : > { %2349 = vrot.lane.b32.xlu0 %v3140_v24, %s3366_s30  ;;  %v2581_v60 = vrot.slane %v2580_v10, 4  ;;  %v3166_v53 = vrot.slane %v2666_v50, 9  ;;  %v2708_v4 = vrot.slane %v2667_v16, 5  ;;  %v3167_v58 = vrot.slane %v2668_v36, 9  ;;  %v3174_v16 = vld [vmem:[%s4333_s4] ss:$0 sm:$0xff] }
 0x2f5   : > { %2647 = vrot.lane.b32.xlu1 %v3161_v45, %s3373_s26  ;;  %v2595_v11 = vrot.slane %v2594_v39, 4  ;;  %v2712_v52 = vrot.slane %v2669_v37, 5  ;;  %v3173_v5 = vcombine.low %v2717_v8, %v2721_v0  ;;  %v2813_v20 = vsel %vm2811_vm4, %v3347_v35, 0 }
 0x2f6   : > { %v2586_v42 = vsel %vm3702_vm14, %v2581_v60, %v2585_v19  ;;  %v2709_v47 = vsel %vm3676_vm13, %v3166_v53, %v2708_v4  ;;  %3243 = vmatpush3.bf16.msra.mxu1 %v2813_v20 }
 0x2f7   : > { %v2600_v56 = vsel %vm3702_vm14, %v2595_v11, %v2599_v51  ;;  %v2713_v15 = vsel %vm3676_vm13, %v3167_v58, %v2712_v52  ;;  %vm2155_vm13 = vcmask 195712   ;;  %vm2200_vm14 = vcmask 261312  }
 0x2f8   : > { %v3160_v40 = vcombine.low %v2586_v42, %v2600_v56  ;;  %v3172_v7 = vcombine.low %v2709_v47, %v2713_v15 }
 0x2f9   : > { %2740 = vrot.lane.b32.xlu1 %v3173_v5, %s3372_s21 }
 0x2fa   : > { %2645 = vrot.lane.b32.xlu0 %v3160_v40, %s3373_s26 }
 0x2fe   : > { %2738 = vrot.lane.b32.xlu0 %v3172_v7, %s3372_s21 }
 0x31b   : > { %v2189_v49 = vpop.permute.xlu0 %2188 }
 0x31d   : > { %v2191_v14 = vpop.permute.xlu1 %2190 }
 0x31f   : > { %v2485_v3 = vpop.permute.xlu0 %2484 }
 0x321   : > { %v2487_v2 = vpop.permute.xlu1 %2486 }
 0x323   : > { %v2193_v9 = vpop.permute.xlu0 %2192 }
 0x325   : > { %v2195_v22 = vpop.permute.xlu1 %2194 }
 0x327   : > { %v4256_v12 = vpop.permute.xlu0 %2488 }
 0x329   : > { %v2491_v31 = vpop.permute.xlu1 %2490 }
 0x32b   : > { %v2144_v59 = vpop.permute.xlu0 %2143 }
 0x32d   : > { %v2146_v44 = vpop.permute.xlu1 %2145 }
 0x32f   : > { %v2439_v43 = vpop.permute.xlu0 %2438 }
 0x331   : > { %v2441_v41 = vpop.permute.xlu1 %2440 }
 0x333   : > { %v2735_v57 = vpop.permute.xlu0 %2734 }
 0x335   : > { %v2150_v18 = vpop.permute.xlu1 %2149 }
 0x337   : > { %v2737_v48 = vpop.permute.xlu0 %2736 }
 0x339   : > { %v2445_v32 = vpop.permute.xlu1 %2444 }
 0x33b   : > { %v2148_v29 = vpop.permute.xlu0 %2147 }
 0x33d   : > { %v2053_v46 = vpop.permute.xlu1 %2052 }
 0x33e   : > { %2064 = vst.msk [vmem:[#allocation5 + $0x8] sm:$0xff] %vm2062_vm7, %v2053_v46 }
 0x33f   : > { %2157 = vst.msk [vmem:[#allocation5 + $0x8] sm:$0xff] %vm2155_vm13, %v2146_v44  ;;  %v2443_v62 = vpop.permute.xlu0 %2442 }
 0x340   : > { %2202 = vst.msk [vmem:[#allocation5 + $0x8] sm:$0xff] %vm2200_vm14, %v2191_v14 }
 0x341   : > { %v2348_v61 = vpop.permute.xlu1 %2347 }
 0x342   : > { %2359 = vst.msk [vmem:[#allocation5 + $0x8] sm:$0xff] %vm2357_vm3, %v2348_v61 }
 0x343   : > { %2452 = vst.msk [vmem:[#allocation5 + $0x8] sm:$0xff] %vm2450_vm5, %v2441_v41 }
 0x344   : > { %2498 = vst.msk [vmem:[#allocation5 + $0x8] sm:$0xff] %vm2496_vm6, %v2487_v2 }
 0x347   : > { %v2644_v63 = vpop.permute.xlu1 %2643 }
 0x348   : > { %2655 = vst.msk [vmem:[#allocation5 + $0x8] sm:$0xff] %vm2653_vm8, %v2644_v63 }
 0x349   : > { %2748 = vst.msk [vmem:[#allocation5 + $0x8] sm:$0xff] %vm2746_vm9, %v2737_v48  ;;  %v2051_v1 = vpop.permute.xlu0 %2050 }
 0x34a   : > { %2063 = vst.msk [vmem:[#allocation5] sm:$0xff] %vm2062_vm7, %v2051_v1 }
 0x34b   : > { %2156 = vst.msk [vmem:[#allocation5] sm:$0xff] %vm2155_vm13, %v2144_v59 }
 0x34c   : > { %2201 = vst.msk [vmem:[#allocation5] sm:$0xff] %vm2200_vm14, %v2189_v49 }
 0x34d   : > { %v2055_v55 = vpop.permute.xlu1 %2054 }
 0x34e   : > { %2065 = vst.msk [vmem:[#allocation5 + $0x10] sm:$0xff] %vm2062_vm7, %v2055_v55 }
 0x34f   : > { %2158 = vst.msk [vmem:[#allocation5 + $0x10] sm:$0xff] %vm2155_vm13, %v2148_v29 }
 0x350   : > { %2203 = vst.msk [vmem:[#allocation5 + $0x10] sm:$0xff] %vm2200_vm14, %v2193_v9  ;;  %v2752_v54 = vld [vmem:[#allocation5 + $0x8] sm:$0xff] }
 0x352   : > { %v2346_v13 = vpop.permute.xlu0 %2345 }
 0x353   : > { %2358 = vst.msk [vmem:[#allocation5] sm:$0xff] %vm2357_vm3, %v2346_v13 }
 0x354   : > { %2451 = vst.msk [vmem:[#allocation5] sm:$0xff] %vm2450_vm5, %v2439_v43 }
 0x355   : > { %2497 = vst.msk [vmem:[#allocation5] sm:$0xff] %vm2496_vm6, %v2485_v3 }
 0x357   : > { %v2057_v17 = vpop.permute.xlu1 %2056 }
 0x358   : > { %2066 = vst.msk [vmem:[#allocation5 + $0x18] sm:$0xff] %vm2062_vm7, %v2057_v17 }
 0x359   : > { %2159 = vst.msk [vmem:[#allocation5 + $0x18] sm:$0xff] %vm2155_vm13, %v2150_v18 }
 0x35a   : > { %2204 = vst.msk [vmem:[#allocation5 + $0x18] sm:$0xff] %vm2200_vm14, %v2195_v22 }
 0x35c   : > { %v2642_v30 = vpop.permute.xlu0 %2641 }
 0x35d   : > { %2654 = vst.msk [vmem:[#allocation5] sm:$0xff] %vm2653_vm8, %v2642_v30 }
 0x35e   : > { %2747 = vst.msk [vmem:[#allocation5] sm:$0xff] %vm2746_vm9, %v2735_v57 }
 0x361   : > { %v2352_v25 = vpop.permute.xlu1 %2351 }
 0x362   : > { %2361 = vst.msk [vmem:[#allocation5 + $0x18] sm:$0xff] %vm2357_vm3, %v2352_v25 }
 0x363   : > { %2454 = vst.msk [vmem:[#allocation5 + $0x18] sm:$0xff] %vm2450_vm5, %v2445_v32 }
 0x364   : > { %2500 = vst.msk [vmem:[#allocation5 + $0x18] sm:$0xff] %vm2496_vm6, %v2491_v31 }
 0x365   : > { %v2751_v26 = vld [vmem:[#allocation5] sm:$0xff] }
 0x366   : > { %v2350_v21 = vpop.permute.xlu0 %2349  ;;  %3244 = vmatprep.mubr.msk.bf16.mxu1 %vm2798_vm10, %v2751_v26 }
 0x367   : > { %2360 = vst.msk [vmem:[#allocation5 + $0x10] sm:$0xff] %vm2357_vm3, %v2350_v21  ;;  %v2648_v28 = vpop.permute.xlu1 %2647  ;;  %3245 = vmatmul.mubr.msk.bf16.vlgmr.msra.gmra.mrb[0].mxu1 %vm2798_vm10, %v2752_v54 }
 0x368   : > { %2453 = vst.msk [vmem:[#allocation5 + $0x10] sm:$0xff] %vm2450_vm5, %v2443_v62 }
 0x369   : > { %2657 = vst.msk [vmem:[#allocation5 + $0x18] sm:$0xff] %vm2653_vm8, %v2648_v28 }
 0x36a   : > { %2499 = vst.msk [vmem:[#allocation5 + $0x10] sm:$0xff] %vm2496_vm6, %v4256_v12 }
 0x36b   : > { %v2741_v23 = vpop.permute.xlu1 %2740 }
 0x36c   : > { %v2646_v34 = vpop.permute.xlu0 %2645  ;;  %2750 = vst.msk [vmem:[#allocation5 + $0x18] sm:$0xff] %vm2746_vm9, %v2741_v23 }
 0x36d   : > { %2656 = vst.msk [vmem:[#allocation5 + $0x10] sm:$0xff] %vm2653_vm8, %v2646_v34 }
 0x370   : > { %v2739_v27 = vpop.permute.xlu0 %2738 }
 0x371   : > { %2749 = vst.msk [vmem:[#allocation5 + $0x10] sm:$0xff] %vm2746_vm9, %v2739_v27 }
 0x373   : > { %v2754_v6 = vld [vmem:[#allocation5 + $0x18] sm:$0xff] }
 0x378   : > { %v2753_v50 = vld [vmem:[#allocation5 + $0x10] sm:$0xff] }
 0x379   : > { %3248 = vmatprep.mubr.msk.bf16.mxu1 %vm2798_vm10, %v2753_v50 }
 0x37a   : > { %3249 = vmatmul.mubr.msk.bf16.gmra.mrb[4].mxu1 %vm2798_vm10, %v2754_v6 }
 0x43a   : > { %v3246_v24 = vpop.f32.mrb[0].mxu1 }
 0x43b   : > { %v2849_v38 = vpop.f32.mrb[1].mxu1  ;;  %v2858_v37 = vadd.f32 %v3246_v24, %v3174_v16 }
 0x43c   : > { %v2850_v10 = vadd.f32 %v3174_v16, %v2849_v38  ;;  %v3247_v33 = vpop.f32.mrb[2].mxu1 }
 0x43d   : > { %v2852_v36 = vpop.f32.mrb[3].mxu1  ;;  %v2861_v39 = vadd.f32 %v3247_v33, %v3174_v16  ;;  %v2883_v51 = vsel %vm1562_vm2, %v2858_v37, 0.0 }
 0x43e   : > { %v2853_v45 = vadd.f32 %v3174_v16, %v2852_v36  ;;  %v2880_v19 = vsel %vm1562_vm2, %v2850_v10, 0.0 }
 0x43f   : > { %v2885_v53 = vsel %vm1562_vm2, %v2861_v39, 0.0 }
 0x440   : > { %v2881_v0 = vsel %vm1562_vm2, %v2853_v45, 0.0 }
 0x441   : > { %v2882_v60 = vadd.f32 %v2881_v0, %v2880_v19 }
 0x443   : > { %v2884_v8 = vadd.f32 %v2883_v51, %v2882_v60 }
 0x445   : > { %v2886_v11 = vadd.f32 %v2885_v53, %v2884_v8 }
 0x44d   : > { %v3250_v4 = vpop.f32.mrb[4].mxu1 }
 0x44e   : > { %v2865_v58 = vpop.f32.mrb[5].mxu1  ;;  %v2874_v56 = vadd.f32 %v3250_v4, %v3174_v16 }
 0x44f   : > { %v2866_v52 = vadd.f32 %v3174_v16, %v2865_v58  ;;  %v3251_v42 = vpop.f32.mrb[6].mxu1 }
 0x450   : > { %v2868_v35 = vpop.f32.mrb[7].mxu1  ;;  %v2877_v15 = vadd.f32 %v3251_v42, %v3174_v16  ;;  %v2891_v49 = vsel %vm1562_vm2, %v2874_v56, 0.0 }
 0x451   : > { %v2887_v5 = vsel %vm1562_vm2, %v2866_v52, 0.0  ;;  %v2869_v40 = vadd.f32 %v3174_v16, %v2868_v35 }
 0x452   : > { %v2888_v47 = vadd.f32 %v2887_v5, %v2886_v11  ;;  %v2893_v3 = vsel %vm1562_vm2, %v2877_v15, 0.0 }
 0x453   : > { %v2889_v20 = vsel %vm1562_vm2, %v2869_v40, 0.0 }
 0x454   : > { %v2890_v7 = vadd.f32 %v2889_v20, %v2888_v47 }
 0x456   : > { %v2892_v14 = vadd.f32 %v2891_v49, %v2890_v7 }
 0x458   : > { %v2894_v2 = vadd.f32 %v2893_v3, %v2892_v14 }
 0x45a   : > { %v2895_v9 = vrot.slane %v2894_v2, 4 }
 0x45c   : > { %v2896_v22 = vadd.f32 %v2895_v9, %v2894_v2 }
 0x45e   : > { %v2897_v12 = vrot.slane %v2896_v22, 2 }
 0x460   : > { %v2898_v31 = vadd.f32 %v2897_v12, %v2896_v22 }
 0x462   : > { %v2899_v59 = vrot.slane %v2898_v31, 1 }
 0x464   : > { %v2900_v44 = vadd.f32 %v2899_v59, %v2898_v31 }
 0x466   : > { %v2901_v43 = vmul.f32 0.015625, %v2900_v44 }
 0x468   : > { %v2902_v41 = vsub.f32 %v2850_v10, %v2901_v43  ;;  %v2903_v57 = vsub.f32 %v2853_v45, %v2901_v43  ;;  %v2904_v18 = vsub.f32 %v2858_v37, %v2901_v43  ;;  %v2905_v32 = vsub.f32 %v2861_v39, %v2901_v43 }
 0x469   : > { %v2906_v48 = vsub.f32 %v2866_v52, %v2901_v43  ;;  %v2907_v46 = vsub.f32 %v2869_v40, %v2901_v43  ;;  %v2908_v29 = vsub.f32 %v2874_v56, %v2901_v43  ;;  %v2909_v61 = vsub.f32 %v2877_v15, %v2901_v43 }
 0x46a   : > { %v2910_v62 = vmul.f32 %v2902_v41, %v2902_v41  ;;  %v2911_v63 = vmul.f32 %v2903_v57, %v2903_v57  ;;  %v2912_v1 = vmul.f32 %v2904_v18, %v2904_v18  ;;  %v2913_v55 = vmul.f32 %v2905_v32, %v2905_v32 }
 0x46b   : > { %v2914_v25 = vmul.f32 %v2906_v48, %v2906_v48  ;;  %v2915_v54 = vmul.f32 %v2907_v46, %v2907_v46  ;;  %v2916_v34 = vmul.f32 %v2908_v29, %v2908_v29  ;;  %v2917_v50 = vmul.f32 %v2909_v61, %v2909_v61 }
 0x46c   : > { %v2918_v13 = vsel %vm1562_vm2, %v2910_v62, 0.0  ;;  %v2919_v17 = vsel %vm1562_vm2, %v2911_v63, 0.0  ;;  %v2921_v26 = vsel %vm1562_vm2, %v2912_v1, 0.0  ;;  %v2923_v28 = vsel %vm1562_vm2, %v2913_v55, 0.0 }
 0x46d   : > { %v2920_v30 = vadd.f32 %v2919_v17, %v2918_v13  ;;  %v2925_v27 = vsel %vm1562_vm2, %v2914_v25, 0.0  ;;  %v2927_v16 = vsel %vm1562_vm2, %v2915_v54, 0.0  ;;  %v2929_v38 = vsel %vm1562_vm2, %v2916_v34, 0.0 }
 0x46e   : > { %v2931_v33 = vsel %vm1562_vm2, %v2917_v50, 0.0 }
 0x46f   : > { %v2922_v21 = vadd.f32 %v2921_v26, %v2920_v30 }
 0x471   : > { %v2924_v23 = vadd.f32 %v2923_v28, %v2922_v21 }
 0x473   : > { %v2926_v6 = vadd.f32 %v2925_v27, %v2924_v23 }
 0x475   : > { %v2928_v24 = vadd.f32 %v2927_v16, %v2926_v6 }
 0x477   : > { %v2930_v10 = vadd.f32 %v2929_v38, %v2928_v24 }
 0x479   : > { %v2932_v36 = vadd.f32 %v2931_v33, %v2930_v10 }
 0x47b   : > { %v2933_v37 = vrot.slane %v2932_v36, 4 }
 0x47d   : > { %v2934_v45 = vadd.f32 %v2933_v37, %v2932_v36 }
 0x47f   : > { %v2935_v19 = vrot.slane %v2934_v45, 2 }
 0x481   : > { %v2936_v39 = vadd.f32 %v2935_v19, %v2934_v45 }
 0x483   : > { %v2937_v0 = vrot.slane %v2936_v39, 1 }
 0x485   : > { %v2938_v60 = vadd.f32 %v2937_v0, %v2936_v39 }
 0x487   : > { %v2939_v51 = vmul.f32 0.015625, %v2938_v60 }
 0x489   : > { %v2940_v8 = vadd.f32 1e-05, %v2939_v51 }
 0x48b   : > { %3350 = vrsqrt.f32 %v2940_v8 }
 0x495   : > { %v3351_v53 = vpop.eup %3350 }
 0x496   : > { %v2942_v11 = vmul.f32 %v3351_v53, %v2902_v41  ;;  %v2943_v4 = vmul.f32 %v3351_v53, %v2903_v57  ;;  %v2944_v58 = vmul.f32 %v3351_v53, %v2904_v18  ;;  %v2945_v52 = vmul.f32 %v3351_v53, %v2905_v32 }
 0x497   : > { %v2946_v42 = vmul.f32 %v3351_v53, %v2906_v48  ;;  %v2947_v35 = vmul.f32 %v3351_v53, %v2907_v46  ;;  %v2948_v56 = vmul.f32 %v3351_v53, %v2908_v29  ;;  %v2949_v5 = vmul.f32 %v3351_v53, %v2909_v61 }
 0x498   : > { %v2950_v40 = vmax.f32 %v2942_v11, 0.0  ;;  %v2951_v47 = vmax.f32 %v2943_v4, 0.0  ;;  %v2952_v15 = vmax.f32 %v2944_v58, 0.0  ;;  %v2953_v20 = vmax.f32 %v2945_v52, 0.0 }
 0x499   : > { %v2954_v7 = vmax.f32 %v2946_v42, 0.0  ;;  %v2955_v49 = vmax.f32 %v2947_v35, 0.0  ;;  %v2956_v14 = vmax.f32 %v2948_v56, 0.0  ;;  %v2957_v3 = vmax.f32 %v2949_v5, 0.0 }
 0x49a   : > { %2958 = vst.msk [vmem:[%s224_s13] sm:$0xff] %vm1562_vm2, %v2950_v40  ;;  %2959 = vst.msk [vmem:[%s224_s13 + $0x8] sm:$0xff] %vm1562_vm2, %v2951_v47 }
 0x49b   : > { %2960 = vst.msk [vmem:[%s224_s13 + $0x10] sm:$0xff] %vm1562_vm2, %v2952_v15  ;;  %2961 = vst.msk [vmem:[%s224_s13 + $0x18] sm:$0xff] %vm1562_vm2, %v2953_v20 }
 0x49c   : > { %2962 = vst.msk [vmem:[%s224_s13 + $0x20] sm:$0xff] %vm1562_vm2, %v2954_v7  ;;  %2963 = vst.msk [vmem:[%s224_s13 + $0x28] sm:$0xff] %vm1562_vm2, %v2955_v49 }
 0x49d   : > { %2964 = vst.msk [vmem:[%s224_s13 + $0x30] sm:$0xff] %vm1562_vm2, %v2956_v14  ;;  %2965 = vst.msk [vmem:[%s224_s13 + $0x38] sm:$0xff] %vm1562_vm2, %v2957_v3 }
 0x49e PF: > { %s15_s18 = sadd.s32 1, %s3358_s18  }
 0x49f   : > { %p12_p4 = scmp.ge.s32.totalorder %s15_s18, 4  }
 0x4a1   :  { %14 = sbr.rel (!%p12_p4) target bundleno = 1 (0x1), region = 76 }

</bundles_post_ra>
